<compile_context>
chip_gen: v7x
topology: tpu7x:2x2x1
jax: 0.10.0
libtpu: 0.0.40
codegen_flags: <defaults>
</compile_context>

<pallas_src>
import math
import functools

import jax
import jax.numpy as jnp
from jax import lax
from jax.experimental import pallas as pl
from jax.experimental.pallas import tpu as pltpu


def causal_attn_kernel(x_ref, wqkv_ref, bqkv_ref, wo_ref, bo_ref, o_ref,
                       q_s, k_s, v_s, m_scr, l_scr, acc_scr,
                       *, n_head, d_k, tile, bf16_softmax):
    """One (batch, query-tile) grid step of fused causal self-attention."""
    qi = pl.program_id(1)
    D = n_head * d_k
    q_start = pl.multiple_of(qi * tile, tile)

    # ---- incremental fused QKV projection (this query tile's rows only) ----
    x_t = x_ref[0].astype(jnp.bfloat16)                              # (tile, D)
    qkv = (jnp.dot(x_t, wqkv_ref[...], preferred_element_type=jnp.float32)
           + bqkv_ref[...]).astype(jnp.bfloat16)                     # (tile, 3D)
    # Head-major restructuring: Q for this tile + append K/V rows to caches.
    for h in range(n_head):
        q_s[h] = qkv[:, h * d_k:(h + 1) * d_k]
        k_s[h, pl.ds(q_start, tile), :] = qkv[:, D + h * d_k:D + (h + 1) * d_k]
        v_s[h, pl.ds(q_start, tile), :] = qkv[:, 2 * D + h * d_k:2 * D + (h + 1) * d_k]
    q_t = q_s[...]                                                   # (H, tq, dk) bf16

    # ---- online softmax over causally visible KV tiles ----------------------
    m_scr[...] = jnp.full_like(m_scr, -1e30)
    l_scr[...] = jnp.zeros_like(l_scr)
    acc_scr[...] = jnp.zeros_like(acc_scr)

    def kv_step(kv_start, masked):
        k_t = k_s[:, pl.ds(kv_start, tile), :]                       # (H, tk, dk)
        v_t = v_s[:, pl.ds(kv_start, tile), :]
        s = jnp.einsum("hqd,hkd->hqk", q_t, k_t,
                       preferred_element_type=jnp.float32)           # (H, tq, tk)
        if masked:
            # Only the diagonal KV tile needs the causal mask; the relative
            # row/col mask is constant across grid steps.
            ri = lax.broadcasted_iota(jnp.int32, (tile, tile), 0)
            ci = lax.broadcasted_iota(jnp.int32, (tile, tile), 1)
            s = jnp.where((ri >= ci)[None, :, :], s, -1e10)
        m_prev = m_scr[...]
        m_cur = jnp.maximum(m_prev, s.max(axis=-1, keepdims=True))
        alpha = jnp.exp(m_prev - m_cur)
        if bf16_softmax:   # v6e/v7x: bf16 EUP path (~2x on the dominant exp)
            p = jnp.exp((s - m_cur).astype(jnp.bfloat16))
        else:              # v5e and older: no bf16 EUP/VPU, keep f32
            p = jnp.exp(s - m_cur)
        l_scr[...] = alpha * l_scr[...] + jnp.sum(p, axis=-1, keepdims=True,
                                                  dtype=jnp.float32)
        pv = jnp.einsum("hqk,hkd->hqd", p.astype(jnp.bfloat16), v_t,
                        preferred_element_type=jnp.float32)          # (H, tq, dk)
        acc_scr[...] = alpha * acc_scr[...] + pv
        m_scr[...] = m_cur

    @pl.loop(0, qi)                       # fully visible KV tiles: unmasked
    def _(j):
        kv_step(pl.multiple_of(j * tile, tile), False)

    kv_step(q_start, True)                # diagonal tile: apply causal mask

    # ---- normalize + head-wise output projection (no lane concatenate) -----
    # approx=True gives ~1e-3-level relative error; use approx=False if
    # tighter accuracy is ever required.
    inv_l = pl.reciprocal(l_scr[...], approx=True)                   # (H, tq, 1)
    y16 = (acc_scr[...] * inv_l).astype(jnp.bfloat16)                # (H, tq, dk)
    out = jnp.dot(y16[0], wo_ref[0], preferred_element_type=jnp.float32)
    for h in range(1, n_head):
        out = out + jnp.dot(y16[h], wo_ref[h], preferred_element_type=jnp.float32)
    o_ref[0] = (out + bo_ref[...]).astype(o_ref.dtype)


def causal_self_attention(x, params, n_head, *, tile=None, bf16_softmax=None):
    """x: (B, T, D) float32. params: dict of (D, D) weights and (1, D) biases."""
    B, T, D = x.shape
    assert D % n_head == 0, "n_embd must be divisible by n_head"
    d_k = D // n_head

    kind = jax.devices()[0].device_kind.lower()
    low_gen = any(t in kind for t in ("v2", "v3", "v4", "v5"))  # no bf16 VPU/EUP
    if bf16_softmax is None:
        bf16_softmax = not low_gen
    if tile is None:
        if T <= 128:
            tile = T
        elif (not low_gen) and T >= 512 and T % 256 == 0:
            tile = 256            # match the 2x256^2 MXU on v6e/v7x
        else:
            tile = 128
    assert T % tile == 0, "sequence length must be divisible by the query tile"
    n_q = T // tile

    # Host-side weight prep: fused QKV weight with 1/sqrt(d_k) folded into the
    # Q columns, head-major output weight, everything in bf16.
    scale = 1.0 / math.sqrt(d_k)
    wqkv = jnp.concatenate(
        [params["wq"] * scale, params["wk"], params["wv"]], axis=1
    ).astype(jnp.bfloat16)                                           # (D, 3D)
    bqkv = jnp.concatenate(
        [params["bq"] * scale, params["bk"], params["bv"]], axis=1
    ).astype(jnp.bfloat16)                                           # (1, 3D)
    wo_r = params["wo"].reshape(n_head, d_k, D).astype(jnp.bfloat16)  # (H, dk, D)
    bo = params["bo"].astype(jnp.bfloat16)                           # (1, D)

    kernel = functools.partial(causal_attn_kernel, n_head=n_head, d_k=d_k,
                               tile=tile, bf16_softmax=bf16_softmax)

    # Rough VMEM budget (resident bf16 weights + K/V caches + pipelined blocks).
    d_pad = ((d_k + 127) // 128) * 128
    est = 2 * int(wqkv.size + bqkv.size + wo_r.size + bo.size)       # bf16 weights
    est += 2 * n_head * T * d_pad * 2 + n_head * tile * d_pad * 2    # K/V + Q caches
    est += 2 * (2 * tile * D * 4)                                    # x + out blocks (2x buffered)
    est += n_head * tile * (d_pad + 2 * 128) * 4                     # acc + m/l scratch
    vmem_limit = max(32 * 1024 * 1024, min(2 * est, 96 * 1024 * 1024))
    if ("v7" in kind) or ("7x" in kind):
        vmem_limit = min(vmem_limit, 48 * 1024 * 1024)               # 64 MiB physical

    out_shape = jax.ShapeDtypeStruct((B, T, D), x.dtype)
    scratch = [
        pltpu.VMEM((n_head, tile, d_k), jnp.bfloat16),   # Q (current tile, head-major)
        pltpu.VMEM((n_head, T, d_k), jnp.bfloat16),      # K cache
        pltpu.VMEM((n_head, T, d_k), jnp.bfloat16),      # V cache
        pltpu.VMEM((n_head, tile, 1), jnp.float32),      # online max m
        pltpu.VMEM((n_head, tile, 1), jnp.float32),      # online sum l
        pltpu.VMEM((n_head, tile, d_k), jnp.float32),    # output accumulator
    ]

    def build(single_buffer_weights):
        if single_buffer_weights:
            def const_spec(shape):
                return pl.BlockSpec(shape, lambda b, q: (0,) * len(shape),
                                    pipeline_mode=pl.Buffered(1))
        else:
            def const_spec(shape):
                return pl.BlockSpec(shape, lambda b, q: (0,) * len(shape))
        return pl.pallas_call(
            kernel,
            out_shape=out_shape,
            grid_spec=pltpu.PrefetchScalarGridSpec(
                num_scalar_prefetch=0,
                grid=(B, n_q),
                in_specs=[
                    pl.BlockSpec((1, tile, D), lambda b, q: (b, q, 0)),  # x tile
                    const_spec((D, 3 * D)),           # fused QKV weight (resident)
                    const_spec((1, 3 * D)),           # fused QKV bias
                    const_spec((n_head, d_k, D)),     # output weight, head-major
                    const_spec((1, D)),               # output bias
                ],
                out_specs=pl.BlockSpec((1, tile, D), lambda b, q: (b, q, 0)),
                scratch_shapes=scratch),
            compiler_params=pltpu.CompilerParams(
                dimension_semantics=("parallel", "arbitrary"),
                vmem_limit_bytes=int(vmem_limit)))

    args = (x, wqkv, bqkv, wo_r, bo)
    try:
        # Constant index maps -> weights DMA'd once; Buffered(1) drops the
        # useless second buffer (halves their VMEM residency).
        return build(True)(*args)
    except Exception:
        # Fallback for jax builds without pipeline_mode support on TPU.
        return build(False)(*args)


def reference_jax(x, params, n_head):
    """Pure-JAX f32 reference mirroring the PyTorch forward (dropout = identity)."""
    B, T, D = x.shape
    d_k = D // n_head

    def lin(x, w, b):
        return x @ w + b[0]

    q = lin(x, params["wq"], params["bq"]).reshape(B, T, n_head, d_k).transpose(0, 2, 1, 3)
    k = lin(x, params["wk"], params["bk"]).reshape(B, T, n_head, d_k).transpose(0, 2, 1, 3)
    v = lin(x, params["wv"], params["bv"]).reshape(B, T, n_head, d_k).transpose(0, 2, 1, 3)

    scores = jnp.einsum("bhtd,bhsd->bhts", q, k) / math.sqrt(d_k)
    mask = jnp.tril(jnp.ones((T, T), jnp.float32))[None, None]
    scores = jnp.where(mask == 0, -1e10, scores)
    p = jax.nn.softmax(scores, axis=-1)
    y = jnp.einsum("bhts,bhsd->bhtd", p, v)
    y = y.transpose(0, 2, 1, 3).reshape(B, T, D)
    return lin(y, params["wo"], params["bo"])


def init_params(key, d_model):
    """Deterministic init mirroring nn.Linear's U(-1/sqrt(fan_in), 1/sqrt(fan_in))."""
    bound = 1.0 / math.sqrt(d_model)
    keys = jax.random.split(key, 8)
    p = {}
    for i, name in enumerate(("q", "k", "v", "o")):
        p[f"w{name}"] = jax.random.uniform(
            keys[2 * i], (d_model, d_model), jnp.float32, -bound, bound)
        p[f"b{name}"] = jax.random.uniform(
            keys[2 * i + 1], (1, d_model), jnp.float32, -bound, bound)
    return p


if __name__ == "__main__":
    def run_case(B, T, n_embd, n_head):
        key = jax.random.PRNGKey(0)
        kx, kp = jax.random.split(key)
        x = jax.random.normal(kx, (B, T, n_embd), jnp.float32)
        params = init_params(kp, n_embd)

        out = jax.block_until_ready(causal_self_attention(x, params, n_head))
        ref = reference_jax(x, params, n_head)
        assert out.shape == (B, T, n_embd)
        # bf16 matmul operands / bf16 exponent (f32 accumulation) vs f32 ref.
        err = float(jnp.max(jnp.abs(out - ref)))
        assert jnp.allclose(out, ref, atol=5e-2, rtol=5e-2), f"mismatch: {err}"

    # Toy shapes consistent with the module: B=2, block_size=8, n_embd=32, n_head=4.
    run_case(B=2, T=8, n_embd=32, n_head=4)
    # Multi-tile case exercising incremental QKV projection, the unmasked KV
    # loop and the masked diagonal tile.
    run_case(B=2, T=256, n_embd=128, n_head=4)

    print("KERNEL_OK")
</pallas_src>

<mosaic_0001>
module attributes {stable_mosaic.version = 11 : i64} {
  func.func @causal_attn_kernel(%arg0: i32, %arg1: i32, %arg2: memref<1x8x32xf32, #tpu.memory_space<vmem>>, %arg3: memref<32x96xbf16, #tpu.memory_space<vmem>>, %arg4: memref<1x96xbf16, #tpu.memory_space<vmem>>, %arg5: memref<4x8x32xbf16, #tpu.memory_space<vmem>>, %arg6: memref<1x32xbf16, #tpu.memory_space<vmem>>, %arg7: memref<1x8x32xf32, #tpu.memory_space<vmem>>, %arg8: memref<4x8x8xbf16, #tpu.memory_space<vmem>>, %arg9: memref<4x8x8xbf16, #tpu.memory_space<vmem>>, %arg10: memref<4x8x8xbf16, #tpu.memory_space<vmem>>, %arg11: memref<4x8x1xf32, #tpu.memory_space<vmem>>, %arg12: memref<4x8x1xf32, #tpu.memory_space<vmem>>, %arg13: memref<4x8x8xf32, #tpu.memory_space<vmem>>) attributes {dimension_semantics = [#tpu.dimension_semantics<parallel>, #tpu.dimension_semantics<arbitrary>], iteration_bounds = array<i64: 2, 1>, scalar_prefetch = 0 : i64, scratch_operands = 6 : i64, tpu.core_type = #tpu.core_type<tc>, window_params = [{transform_indices = @transform_0, window_bounds = array<i64: 1, 8, 32>}, {pipeline_mode = #tpu.pipeline_mode<synchronous>, transform_indices = @transform_1, window_bounds = array<i64: 32, 96>}, {pipeline_mode = #tpu.pipeline_mode<synchronous>, transform_indices = @transform_2, window_bounds = array<i64: 1, 96>}, {pipeline_mode = #tpu.pipeline_mode<synchronous>, transform_indices = @transform_3, window_bounds = array<i64: 4, 8, 32>}, {pipeline_mode = #tpu.pipeline_mode<synchronous>, transform_indices = @transform_4, window_bounds = array<i64: 1, 32>}, {transform_indices = @transform_5, window_bounds = array<i64: 1, 8, 32>}]} {
    %c8_i32 = arith.constant 8 : i32
    %0 = arith.muli %arg1, %c8_i32 : i32
    %1 = tpu.assume_multiple %0, 8 : i32
    %c0 = arith.constant 0 : index
    %c0_0 = arith.constant 0 : index
    %c0_1 = arith.constant 0 : index
    %2 = vector.load %arg2[%c0, %c0_0, %c0_1] : memref<1x8x32xf32, #tpu.memory_space<vmem>>, vector<1x8x32xf32>
    %3 = vector.shape_cast %2 : vector<1x8x32xf32> to vector<8x32xf32>
    %4 = arith.truncf %3 : vector<8x32xf32> to vector<8x32xbf16>
    %c0_2 = arith.constant 0 : index
    %c0_3 = arith.constant 0 : index
    %5 = vector.load %arg3[%c0_2, %c0_3] : memref<32x96xbf16, #tpu.memory_space<vmem>>, vector<32x96xbf16>
    %cst = arith.constant dense<0.000000e+00> : vector<8x96xf32>
    %6 = tpu.matmul %4, %5, %cst {dimension_numbers = #tpu.dot_dimension_numbers<[1], [0], [0], [1], [0, 0, 1, 1], [], []>} : vector<8x32xbf16>, vector<32x96xbf16>, vector<8x96xf32> -> vector<8x96xf32>
    %c0_4 = arith.constant 0 : index
    %c0_5 = arith.constant 0 : index
    %7 = vector.load %arg4[%c0_4, %c0_5] : memref<1x96xbf16, #tpu.memory_space<vmem>>, vector<1x96xbf16>
    %8 = arith.extf %7 : vector<1x96xbf16> to vector<1x96xf32>
    %9 = vector.broadcast %8 : vector<1x96xf32> to vector<8x96xf32>
    %10 = arith.addf %6, %9 : vector<8x96xf32>
    %11 = arith.truncf %10 : vector<8x96xf32> to vector<8x96xbf16>
    %12 = vector.extract_strided_slice %11 {offsets = [0, 0], sizes = [8, 8], strides = [1, 1]} : vector<8x96xbf16> to vector<8x8xbf16>
    %c0_6 = arith.constant 0 : index
    %c0_7 = arith.constant 0 : index
    %c0_8 = arith.constant 0 : index
    %13 = vector.load %arg8[%c0_6, %c0_7, %c0_8] : memref<4x8x8xbf16, #tpu.memory_space<vmem>>, vector<1x8x8xbf16>
    %14 = vector.shape_cast %13 : vector<1x8x8xbf16> to vector<8x8xbf16>
    %15 = vector.shape_cast %12 : vector<8x8xbf16> to vector<1x8x8xbf16>
    tpu.vector_store %arg8[%c0_6, %c0_7, %c0_8], %15 {strides = array<i32>} : memref<4x8x8xbf16, #tpu.memory_space<vmem>>, vector<1x8x8xbf16>,
    %16 = vector.extract_strided_slice %11 {offsets = [0, 32], sizes = [8, 8], strides = [1, 1]} : vector<8x96xbf16> to vector<8x8xbf16>
    %c0_9 = arith.constant 0 : index
    %17 = arith.index_cast %1 : i32 to index
    %c0_10 = arith.constant 0 : index
    %18 = vector.load %arg9[%c0_9, %17, %c0_10] : memref<4x8x8xbf16, #tpu.memory_space<vmem>>, vector<1x8x8xbf16>
    %19 = vector.shape_cast %18 : vector<1x8x8xbf16> to vector<8x8xbf16>
    %20 = vector.shape_cast %16 : vector<8x8xbf16> to vector<1x8x8xbf16>
    tpu.vector_store %arg9[%c0_9, %17, %c0_10], %20 {strides = array<i32>} : memref<4x8x8xbf16, #tpu.memory_space<vmem>>, vector<1x8x8xbf16>,
    %21 = vector.extract_strided_slice %11 {offsets = [0, 64], sizes = [8, 8], strides = [1, 1]} : vector<8x96xbf16> to vector<8x8xbf16>
    %c0_11 = arith.constant 0 : index
    %22 = arith.index_cast %1 : i32 to index
    %c0_12 = arith.constant 0 : index
    %23 = vector.load %arg10[%c0_11, %22, %c0_12] : memref<4x8x8xbf16, #tpu.memory_space<vmem>>, vector<1x8x8xbf16>
    %24 = vector.shape_cast %23 : vector<1x8x8xbf16> to vector<8x8xbf16>
    %25 = vector.shape_cast %21 : vector<8x8xbf16> to vector<1x8x8xbf16>
    tpu.vector_store %arg10[%c0_11, %22, %c0_12], %25 {strides = array<i32>} : memref<4x8x8xbf16, #tpu.memory_space<vmem>>, vector<1x8x8xbf16>,
    %26 = vector.extract_strided_slice %11 {offsets = [0, 8], sizes = [8, 8], strides = [1, 1]} : vector<8x96xbf16> to vector<8x8xbf16>
    %c1 = arith.constant 1 : index
    %c0_13 = arith.constant 0 : index
    %c0_14 = arith.constant 0 : index
    %27 = vector.load %arg8[%c1, %c0_13, %c0_14] : memref<4x8x8xbf16, #tpu.memory_space<vmem>>, vector<1x8x8xbf16>
    %28 = vector.shape_cast %27 : vector<1x8x8xbf16> to vector<8x8xbf16>
    %29 = vector.shape_cast %26 : vector<8x8xbf16> to vector<1x8x8xbf16>
    tpu.vector_store %arg8[%c1, %c0_13, %c0_14], %29 {strides = array<i32>} : memref<4x8x8xbf16, #tpu.memory_space<vmem>>, vector<1x8x8xbf16>,
    %30 = vector.extract_strided_slice %11 {offsets = [0, 40], sizes = [8, 8], strides = [1, 1]} : vector<8x96xbf16> to vector<8x8xbf16>
    %c1_15 = arith.constant 1 : index
    %31 = arith.index_cast %1 : i32 to index
    %c0_16 = arith.constant 0 : index
    %32 = vector.load %arg9[%c1_15, %31, %c0_16] : memref<4x8x8xbf16, #tpu.memory_space<vmem>>, vector<1x8x8xbf16>
    %33 = vector.shape_cast %32 : vector<1x8x8xbf16> to vector<8x8xbf16>
    %34 = vector.shape_cast %30 : vector<8x8xbf16> to vector<1x8x8xbf16>
    tpu.vector_store %arg9[%c1_15, %31, %c0_16], %34 {strides = array<i32>} : memref<4x8x8xbf16, #tpu.memory_space<vmem>>, vector<1x8x8xbf16>,
    %35 = vector.extract_strided_slice %11 {offsets = [0, 72], sizes = [8, 8], strides = [1, 1]} : vector<8x96xbf16> to vector<8x8xbf16>
    %c1_17 = arith.constant 1 : index
    %36 = arith.index_cast %1 : i32 to index
    %c0_18 = arith.constant 0 : index
    %37 = vector.load %arg10[%c1_17, %36, %c0_18] : memref<4x8x8xbf16, #tpu.memory_space<vmem>>, vector<1x8x8xbf16>
    %38 = vector.shape_cast %37 : vector<1x8x8xbf16> to vector<8x8xbf16>
    %39 = vector.shape_cast %35 : vector<8x8xbf16> to vector<1x8x8xbf16>
    tpu.vector_store %arg10[%c1_17, %36, %c0_18], %39 {strides = array<i32>} : memref<4x8x8xbf16, #tpu.memory_space<vmem>>, vector<1x8x8xbf16>,
    %40 = vector.extract_strided_slice %11 {offsets = [0, 16], sizes = [8, 8], strides = [1, 1]} : vector<8x96xbf16> to vector<8x8xbf16>
    %c2 = arith.constant 2 : index
    %c0_19 = arith.constant 0 : index
    %c0_20 = arith.constant 0 : index
    %41 = vector.load %arg8[%c2, %c0_19, %c0_20] : memref<4x8x8xbf16, #tpu.memory_space<vmem>>, vector<1x8x8xbf16>
    %42 = vector.shape_cast %41 : vector<1x8x8xbf16> to vector<8x8xbf16>
    %43 = vector.shape_cast %40 : vector<8x8xbf16> to vector<1x8x8xbf16>
    tpu.vector_store %arg8[%c2, %c0_19, %c0_20], %43 {strides = array<i32>} : memref<4x8x8xbf16, #tpu.memory_space<vmem>>, vector<1x8x8xbf16>,
    %44 = vector.extract_strided_slice %11 {offsets = [0, 48], sizes = [8, 8], strides = [1, 1]} : vector<8x96xbf16> to vector<8x8xbf16>
    %c2_21 = arith.constant 2 : index
    %45 = arith.index_cast %1 : i32 to index
    %c0_22 = arith.constant 0 : index
    %46 = vector.load %arg9[%c2_21, %45, %c0_22] : memref<4x8x8xbf16, #tpu.memory_space<vmem>>, vector<1x8x8xbf16>
    %47 = vector.shape_cast %46 : vector<1x8x8xbf16> to vector<8x8xbf16>
    %48 = vector.shape_cast %44 : vector<8x8xbf16> to vector<1x8x8xbf16>
    tpu.vector_store %arg9[%c2_21, %45, %c0_22], %48 {strides = array<i32>} : memref<4x8x8xbf16, #tpu.memory_space<vmem>>, vector<1x8x8xbf16>,
    %49 = vector.extract_strided_slice %11 {offsets = [0, 80], sizes = [8, 8], strides = [1, 1]} : vector<8x96xbf16> to vector<8x8xbf16>
    %c2_23 = arith.constant 2 : index
    %50 = arith.index_cast %1 : i32 to index
    %c0_24 = arith.constant 0 : index
    %51 = vector.load %arg10[%c2_23, %50, %c0_24] : memref<4x8x8xbf16, #tpu.memory_space<vmem>>, vector<1x8x8xbf16>
    %52 = vector.shape_cast %51 : vector<1x8x8xbf16> to vector<8x8xbf16>
    %53 = vector.shape_cast %49 : vector<8x8xbf16> to vector<1x8x8xbf16>
    tpu.vector_store %arg10[%c2_23, %50, %c0_24], %53 {strides = array<i32>} : memref<4x8x8xbf16, #tpu.memory_space<vmem>>, vector<1x8x8xbf16>,
    %54 = vector.extract_strided_slice %11 {offsets = [0, 24], sizes = [8, 8], strides = [1, 1]} : vector<8x96xbf16> to vector<8x8xbf16>
    %c3 = arith.constant 3 : index
    %c0_25 = arith.constant 0 : index
    %c0_26 = arith.constant 0 : index
    %55 = vector.load %arg8[%c3, %c0_25, %c0_26] : memref<4x8x8xbf16, #tpu.memory_space<vmem>>, vector<1x8x8xbf16>
    %56 = vector.shape_cast %55 : vector<1x8x8xbf16> to vector<8x8xbf16>
    %57 = vector.shape_cast %54 : vector<8x8xbf16> to vector<1x8x8xbf16>
    tpu.vector_store %arg8[%c3, %c0_25, %c0_26], %57 {strides = array<i32>} : memref<4x8x8xbf16, #tpu.memory_space<vmem>>, vector<1x8x8xbf16>,
    %58 = vector.extract_strided_slice %11 {offsets = [0, 56], sizes = [8, 8], strides = [1, 1]} : vector<8x96xbf16> to vector<8x8xbf16>
    %c3_27 = arith.constant 3 : index
    %59 = arith.index_cast %1 : i32 to index
    %c0_28 = arith.constant 0 : index
    %60 = vector.load %arg9[%c3_27, %59, %c0_28] : memref<4x8x8xbf16, #tpu.memory_space<vmem>>, vector<1x8x8xbf16>
    %61 = vector.shape_cast %60 : vector<1x8x8xbf16> to vector<8x8xbf16>
    %62 = vector.shape_cast %58 : vector<8x8xbf16> to vector<1x8x8xbf16>
    tpu.vector_store %arg9[%c3_27, %59, %c0_28], %62 {strides = array<i32>} : memref<4x8x8xbf16, #tpu.memory_space<vmem>>, vector<1x8x8xbf16>,
    %63 = vector.extract_strided_slice %11 {offsets = [0, 88], sizes = [8, 8], strides = [1, 1]} : vector<8x96xbf16> to vector<8x8xbf16>
    %c3_29 = arith.constant 3 : index
    %64 = arith.index_cast %1 : i32 to index
    %c0_30 = arith.constant 0 : index
    %65 = vector.load %arg10[%c3_29, %64, %c0_30] : memref<4x8x8xbf16, #tpu.memory_space<vmem>>, vector<1x8x8xbf16>
    %66 = vector.shape_cast %65 : vector<1x8x8xbf16> to vector<8x8xbf16>
    %67 = vector.shape_cast %63 : vector<8x8xbf16> to vector<1x8x8xbf16>
    tpu.vector_store %arg10[%c3_29, %64, %c0_30], %67 {strides = array<i32>} : memref<4x8x8xbf16, #tpu.memory_space<vmem>>, vector<1x8x8xbf16>,
    %c0_31 = arith.constant 0 : index
    %c0_32 = arith.constant 0 : index
    %c0_33 = arith.constant 0 : index
    %68 = vector.load %arg8[%c0_31, %c0_32, %c0_33] : memref<4x8x8xbf16, #tpu.memory_space<vmem>>, vector<4x8x8xbf16>
    %cst_34 = arith.constant -1.000000e+30 : f32
    %69 = vector.broadcast %cst_34 : f32 to vector<4x8x1xf32>
    %c0_35 = arith.constant 0 : index
    %c0_36 = arith.constant 0 : index
    %c0_37 = arith.constant 0 : index
    %70 = vector.load %arg11[%c0_35, %c0_36, %c0_37] : memref<4x8x1xf32, #tpu.memory_space<vmem>>, vector<4x8x1xf32>
    tpu.vector_store %arg11[%c0_35, %c0_36, %c0_37], %69 {strides = array<i32>} : memref<4x8x1xf32, #tpu.memory_space<vmem>>, vector<4x8x1xf32>,
    %cst_38 = arith.constant 0.000000e+00 : f32
    %71 = vector.broadcast %cst_38 : f32 to vector<4x8x1xf32>
    %c0_39 = arith.constant 0 : index
    %c0_40 = arith.constant 0 : index
    %c0_41 = arith.constant 0 : index
    %72 = vector.load %arg12[%c0_39, %c0_40, %c0_41] : memref<4x8x1xf32, #tpu.memory_space<vmem>>, vector<4x8x1xf32>
    tpu.vector_store %arg12[%c0_39, %c0_40, %c0_41], %71 {strides = array<i32>} : memref<4x8x1xf32, #tpu.memory_space<vmem>>, vector<4x8x1xf32>,
    %cst_42 = arith.constant 0.000000e+00 : f32
    %73 = vector.broadcast %cst_42 : f32 to vector<4x8x8xf32>
    %c0_43 = arith.constant 0 : index
    %c0_44 = arith.constant 0 : index
    %c0_45 = arith.constant 0 : index
    %74 = vector.load %arg13[%c0_43, %c0_44, %c0_45] : memref<4x8x8xf32, #tpu.memory_space<vmem>>, vector<4x8x8xf32>
    tpu.vector_store %arg13[%c0_43, %c0_44, %c0_45], %73 {strides = array<i32>} : memref<4x8x8xf32, #tpu.memory_space<vmem>>, vector<4x8x8xf32>,
    %c0_i32 = arith.constant 0 : i32
    %75 = arith.subi %arg1, %c0_i32 : i32
    %c1_i32 = arith.constant 1 : i32
    %c1_i32_46 = arith.constant 1 : i32
    %76 = arith.subi %c1_i32, %c1_i32_46 : i32
    %77 = arith.addi %75, %76 : i32
    %c1_i32_47 = arith.constant 1 : i32
    %78 = arith.divsi %77, %c1_i32_47 : i32
    %c1_i32_48 = arith.constant 1 : i32
    %c0_i32_49 = arith.constant 0 : i32
    %c0_i32_50 = arith.constant 0 : i32
    %79 = arith.subi %78, %c0_i32_50 : i32
    %80 = arith.addi %c0_i32_50, %79 : i32
    %c1_i32_51 = arith.constant 1 : i32
    scf.for %arg14 = %c0_i32_50 to %80 step %c1_i32_51  : i32 {
      %154 = arith.muli %arg14, %c1_i32_48 : i32
      %155 = arith.addi %c0_i32_49, %154 : i32
      %c8_i32_106 = arith.constant 8 : i32
      %156 = arith.muli %155, %c8_i32_106 : i32
      %157 = tpu.assume_multiple %156, 8 : i32
      %c0_107 = arith.constant 0 : index
      %158 = arith.index_cast %157 : i32 to index
      %c0_108 = arith.constant 0 : index
      %159 = vector.load %arg9[%c0_107, %158, %c0_108] : memref<4x8x8xbf16, #tpu.memory_space<vmem>>, vector<4x8x8xbf16>
      %c0_109 = arith.constant 0 : index
      %160 = arith.index_cast %157 : i32 to index
      %c0_110 = arith.constant 0 : index
      %161 = vector.load %arg10[%c0_109, %160, %c0_110] : memref<4x8x8xbf16, #tpu.memory_space<vmem>>, vector<4x8x8xbf16>
      "tpu.trace_start"() <{level = 10 : i32, message = "hqd,hkd->hqk"}> : () -> ()
      %cst_111 = arith.constant dense<0.000000e+00> : vector<4x8x8xf32>
      %162 = tpu.matmul %68, %159, %cst_111 {dimension_numbers = #tpu.dot_dimension_numbers<[2], [2], [1], [1], [0, 0, 0, 1, 1, 1], [0], [0]>} : vector<4x8x8xbf16>, vector<4x8x8xbf16>, vector<4x8x8xf32> -> vector<4x8x8xf32>
      "tpu.trace_stop"() : () -> ()
      %c0_112 = arith.constant 0 : index
      %c0_113 = arith.constant 0 : index
      %c0_114 = arith.constant 0 : index
      %163 = vector.load %arg11[%c0_112, %c0_113, %c0_114] : memref<4x8x1xf32, #tpu.memory_space<vmem>>, vector<4x8x1xf32>
      %cst_115 = arith.constant dense<0xFF800000> : vector<4x8xf32>
      %164 = vector.multi_reduction <maximumf>, %162, %cst_115 [2] : vector<4x8x8xf32> to vector<4x8xf32>
      %165 = vector.shape_cast %164 : vector<4x8xf32> to vector<4x8x1xf32>
      %166 = arith.maximumf %163, %165 : vector<4x8x1xf32>
      %167 = arith.subf %163, %166 : vector<4x8x1xf32>
      %168 = math.exp %167 : vector<4x8x1xf32>
      %169 = vector.broadcast %166 : vector<4x8x1xf32> to vector<4x8x8xf32>
      %170 = arith.subf %162, %169 : vector<4x8x8xf32>
      %171 = arith.truncf %170 : vector<4x8x8xf32> to vector<4x8x8xbf16>
      %172 = math.exp %171 : vector<4x8x8xbf16>
      %c0_116 = arith.constant 0 : index
      %c0_117 = arith.constant 0 : index
      %c0_118 = arith.constant 0 : index
      %173 = vector.load %arg12[%c0_116, %c0_117, %c0_118] : memref<4x8x1xf32, #tpu.memory_space<vmem>>, vector<4x8x1xf32>
      %174 = arith.mulf %168, %173 : vector<4x8x1xf32>
      %175 = arith.extf %172 : vector<4x8x8xbf16> to vector<4x8x8xf32>
      %cst_119 = arith.constant dense<0.000000e+00> : vector<4x8xf32>
      %176 = vector.multi_reduction <add>, %175, %cst_119 [2] : vector<4x8x8xf32> to vector<4x8xf32>
      %177 = vector.shape_cast %176 : vector<4x8xf32> to vector<4x8x1xf32>
      %178 = arith.addf %174, %177 : vector<4x8x1xf32>
      %c0_120 = arith.constant 0 : index
      %c0_121 = arith.constant 0 : index
      %c0_122 = arith.constant 0 : index
      %179 = vector.load %arg12[%c0_120, %c0_121, %c0_122] : memref<4x8x1xf32, #tpu.memory_space<vmem>>, vector<4x8x1xf32>
      tpu.vector_store %arg12[%c0_120, %c0_121, %c0_122], %178 {strides = array<i32>} : memref<4x8x1xf32, #tpu.memory_space<vmem>>, vector<4x8x1xf32>,
      "tpu.trace_start"() <{level = 10 : i32, message = "hqk,hkd->hqd"}> : () -> ()
      %cst_123 = arith.constant dense<0.000000e+00> : vector<4x8x8xf32>
      %180 = tpu.matmul %172, %161, %cst_123 {dimension_numbers = #tpu.dot_dimension_numbers<[2], [1], [1], [2], [0, 0, 0, 1, 1, 2], [0], [0]>} : vector<4x8x8xbf16>, vector<4x8x8xbf16>, vector<4x8x8xf32> -> vector<4x8x8xf32>
      "tpu.trace_stop"() : () -> ()
      %c0_124 = arith.constant 0 : index
      %c0_125 = arith.constant 0 : index
      %c0_126 = arith.constant 0 : index
      %181 = vector.load %arg13[%c0_124, %c0_125, %c0_126] : memref<4x8x8xf32, #tpu.memory_space<vmem>>, vector<4x8x8xf32>
      %182 = vector.broadcast %168 : vector<4x8x1xf32> to vector<4x8x8xf32>
      %183 = arith.mulf %182, %181 : vector<4x8x8xf32>
      %184 = arith.addf %183, %180 : vector<4x8x8xf32>
      %c0_127 = arith.constant 0 : index
      %c0_128 = arith.constant 0 : index
      %c0_129 = arith.constant 0 : index
      %185 = vector.load %arg13[%c0_127, %c0_128, %c0_129] : memref<4x8x8xf32, #tpu.memory_space<vmem>>, vector<4x8x8xf32>
      tpu.vector_store %arg13[%c0_127, %c0_128, %c0_129], %184 {strides = array<i32>} : memref<4x8x8xf32, #tpu.memory_space<vmem>>, vector<4x8x8xf32>,
      %c0_130 = arith.constant 0 : index
      %c0_131 = arith.constant 0 : index
      %c0_132 = arith.constant 0 : index
      %186 = vector.load %arg11[%c0_130, %c0_131, %c0_132] : memref<4x8x1xf32, #tpu.memory_space<vmem>>, vector<4x8x1xf32>
      tpu.vector_store %arg11[%c0_130, %c0_131, %c0_132], %166 {strides = array<i32>} : memref<4x8x1xf32, #tpu.memory_space<vmem>>, vector<4x8x1xf32>,
    }
    %c0_52 = arith.constant 0 : index
    %81 = arith.index_cast %1 : i32 to index
    %c0_53 = arith.constant 0 : index
    %82 = vector.load %arg9[%c0_52, %81, %c0_53] : memref<4x8x8xbf16, #tpu.memory_space<vmem>>, vector<4x8x8xbf16>
    %c0_54 = arith.constant 0 : index
    %83 = arith.index_cast %1 : i32 to index
    %c0_55 = arith.constant 0 : index
    %84 = vector.load %arg10[%c0_54, %83, %c0_55] : memref<4x8x8xbf16, #tpu.memory_space<vmem>>, vector<4x8x8xbf16>
    "tpu.trace_start"() <{level = 10 : i32, message = "hqd,hkd->hqk"}> : () -> ()
    %cst_56 = arith.constant dense<0.000000e+00> : vector<4x8x8xf32>
    %85 = tpu.matmul %68, %82, %cst_56 {dimension_numbers = #tpu.dot_dimension_numbers<[2], [2], [1], [1], [0, 0, 0, 1, 1, 1], [0], [0]>} : vector<4x8x8xbf16>, vector<4x8x8xbf16>, vector<4x8x8xf32> -> vector<4x8x8xf32>
    "tpu.trace_stop"() : () -> ()
    %86 = tpu.iota {dimensions = array<i32: 0>} : vector<8x8xi32>
    %87 = tpu.iota {dimensions = array<i32: 1>} : vector<8x8xi32>
    %88 = arith.cmpi sge, %86, %87 : vector<8x8xi32>
    %89 = vector.shape_cast %88 : vector<8x8xi1> to vector<1x8x8xi1>
    %cst_57 = arith.constant -1.000000e+10 : f32
    %90 = vector.shape_cast %89 : vector<1x8x8xi1> to vector<1x8x8xi1>
    %91 = vector.broadcast %90 : vector<1x8x8xi1> to vector<4x8x8xi1>
    %92 = vector.broadcast %cst_57 : f32 to vector<4x8x8xf32>
    %93 = arith.select %91, %85, %92 : vector<4x8x8xi1>, vector<4x8x8xf32>
    %c0_58 = arith.constant 0 : index
    %c0_59 = arith.constant 0 : index
    %c0_60 = arith.constant 0 : index
    %94 = vector.load %arg11[%c0_58, %c0_59, %c0_60] : memref<4x8x1xf32, #tpu.memory_space<vmem>>, vector<4x8x1xf32>
    %cst_61 = arith.constant dense<0xFF800000> : vector<4x8xf32>
    %95 = vector.multi_reduction <maximumf>, %93, %cst_61 [2] : vector<4x8x8xf32> to vector<4x8xf32>
    %96 = vector.shape_cast %95 : vector<4x8xf32> to vector<4x8x1xf32>
    %97 = arith.maximumf %94, %96 : vector<4x8x1xf32>
    %98 = arith.subf %94, %97 : vector<4x8x1xf32>
    %99 = math.exp %98 : vector<4x8x1xf32>
    %100 = vector.broadcast %97 : vector<4x8x1xf32> to vector<4x8x8xf32>
    %101 = arith.subf %93, %100 : vector<4x8x8xf32>
    %102 = arith.truncf %101 : vector<4x8x8xf32> to vector<4x8x8xbf16>
    %103 = math.exp %102 : vector<4x8x8xbf16>
    %c0_62 = arith.constant 0 : index
    %c0_63 = arith.constant 0 : index
    %c0_64 = arith.constant 0 : index
    %104 = vector.load %arg12[%c0_62, %c0_63, %c0_64] : memref<4x8x1xf32, #tpu.memory_space<vmem>>, vector<4x8x1xf32>
    %105 = arith.mulf %99, %104 : vector<4x8x1xf32>
    %106 = arith.extf %103 : vector<4x8x8xbf16> to vector<4x8x8xf32>
    %cst_65 = arith.constant dense<0.000000e+00> : vector<4x8xf32>
    %107 = vector.multi_reduction <add>, %106, %cst_65 [2] : vector<4x8x8xf32> to vector<4x8xf32>
    %108 = vector.shape_cast %107 : vector<4x8xf32> to vector<4x8x1xf32>
    %109 = arith.addf %105, %108 : vector<4x8x1xf32>
    %c0_66 = arith.constant 0 : index
    %c0_67 = arith.constant 0 : index
    %c0_68 = arith.constant 0 : index
    %110 = vector.load %arg12[%c0_66, %c0_67, %c0_68] : memref<4x8x1xf32, #tpu.memory_space<vmem>>, vector<4x8x1xf32>
    tpu.vector_store %arg12[%c0_66, %c0_67, %c0_68], %109 {strides = array<i32>} : memref<4x8x1xf32, #tpu.memory_space<vmem>>, vector<4x8x1xf32>,
    "tpu.trace_start"() <{level = 10 : i32, message = "hqk,hkd->hqd"}> : () -> ()
    %cst_69 = arith.constant dense<0.000000e+00> : vector<4x8x8xf32>
    %111 = tpu.matmul %103, %84, %cst_69 {dimension_numbers = #tpu.dot_dimension_numbers<[2], [1], [1], [2], [0, 0, 0, 1, 1, 2], [0], [0]>} : vector<4x8x8xbf16>, vector<4x8x8xbf16>, vector<4x8x8xf32> -> vector<4x8x8xf32>
    "tpu.trace_stop"() : () -> ()
    %c0_70 = arith.constant 0 : index
    %c0_71 = arith.constant 0 : index
    %c0_72 = arith.constant 0 : index
    %112 = vector.load %arg13[%c0_70, %c0_71, %c0_72] : memref<4x8x8xf32, #tpu.memory_space<vmem>>, vector<4x8x8xf32>
    %113 = vector.broadcast %99 : vector<4x8x1xf32> to vector<4x8x8xf32>
    %114 = arith.mulf %113, %112 : vector<4x8x8xf32>
    %115 = arith.addf %114, %111 : vector<4x8x8xf32>
    %c0_73 = arith.constant 0 : index
    %c0_74 = arith.constant 0 : index
    %c0_75 = arith.constant 0 : index
    %116 = vector.load %arg13[%c0_73, %c0_74, %c0_75] : memref<4x8x8xf32, #tpu.memory_space<vmem>>, vector<4x8x8xf32>
    tpu.vector_store %arg13[%c0_73, %c0_74, %c0_75], %115 {strides = array<i32>} : memref<4x8x8xf32, #tpu.memory_space<vmem>>, vector<4x8x8xf32>,
    %c0_76 = arith.constant 0 : index
    %c0_77 = arith.constant 0 : index
    %c0_78 = arith.constant 0 : index
    %117 = vector.load %arg11[%c0_76, %c0_77, %c0_78] : memref<4x8x1xf32, #tpu.memory_space<vmem>>, vector<4x8x1xf32>
    tpu.vector_store %arg11[%c0_76, %c0_77, %c0_78], %97 {strides = array<i32>} : memref<4x8x1xf32, #tpu.memory_space<vmem>>, vector<4x8x1xf32>,
    %c0_79 = arith.constant 0 : index
    %c0_80 = arith.constant 0 : index
    %c0_81 = arith.constant 0 : index
    %118 = vector.load %arg12[%c0_79, %c0_80, %c0_81] : memref<4x8x1xf32, #tpu.memory_space<vmem>>, vector<4x8x1xf32>
    %119 = tpu.reciprocal %118 {approx = true} : vector<4x8x1xf32> -> vector<4x8x1xf32>
    %c0_82 = arith.constant 0 : index
    %c0_83 = arith.constant 0 : index
    %c0_84 = arith.constant 0 : index
    %120 = vector.load %arg13[%c0_82, %c0_83, %c0_84] : memref<4x8x8xf32, #tpu.memory_space<vmem>>, vector<4x8x8xf32>
    %121 = vector.broadcast %119 : vector<4x8x1xf32> to vector<4x8x8xf32>
    %122 = arith.mulf %120, %121 : vector<4x8x8xf32>
    %123 = arith.truncf %122 : vector<4x8x8xf32> to vector<4x8x8xbf16>
    %124 = vector.extract_strided_slice %123 {offsets = [0, 0, 0], sizes = [1, 8, 8], strides = [1, 1, 1]} : vector<4x8x8xbf16> to vector<1x8x8xbf16>
    %125 = vector.shape_cast %124 : vector<1x8x8xbf16> to vector<8x8xbf16>
    %c0_85 = arith.constant 0 : index
    %c0_86 = arith.constant 0 : index
    %c0_87 = arith.constant 0 : index
    %126 = vector.load %arg5[%c0_85, %c0_86, %c0_87] : memref<4x8x32xbf16, #tpu.memory_space<vmem>>, vector<1x8x32xbf16>
    %127 = vector.shape_cast %126 : vector<1x8x32xbf16> to vector<8x32xbf16>
    %cst_88 = arith.constant dense<0.000000e+00> : vector<8x32xf32>
    %128 = tpu.matmul %125, %127, %cst_88 {dimension_numbers = #tpu.dot_dimension_numbers<[1], [0], [0], [1], [0, 0, 1, 1], [], []>} : vector<8x8xbf16>, vector<8x32xbf16>, vector<8x32xf32> -> vector<8x32xf32>
    %129 = vector.extract_strided_slice %123 {offsets = [1, 0, 0], sizes = [1, 8, 8], strides = [1, 1, 1]} : vector<4x8x8xbf16> to vector<1x8x8xbf16>
    %130 = vector.shape_cast %129 : vector<1x8x8xbf16> to vector<8x8xbf16>
    %c1_89 = arith.constant 1 : index
    %c0_90 = arith.constant 0 : index
    %c0_91 = arith.constant 0 : index
    %131 = vector.load %arg5[%c1_89, %c0_90, %c0_91] : memref<4x8x32xbf16, #tpu.memory_space<vmem>>, vector<1x8x32xbf16>
    %132 = vector.shape_cast %131 : vector<1x8x32xbf16> to vector<8x32xbf16>
    %cst_92 = arith.constant dense<0.000000e+00> : vector<8x32xf32>
    %133 = tpu.matmul %130, %132, %cst_92 {dimension_numbers = #tpu.dot_dimension_numbers<[1], [0], [0], [1], [0, 0, 1, 1], [], []>} : vector<8x8xbf16>, vector<8x32xbf16>, vector<8x32xf32> -> vector<8x32xf32>
    %134 = arith.addf %128, %133 : vector<8x32xf32>
    %135 = vector.extract_strided_slice %123 {offsets = [2, 0, 0], sizes = [1, 8, 8], strides = [1, 1, 1]} : vector<4x8x8xbf16> to vector<1x8x8xbf16>
    %136 = vector.shape_cast %135 : vector<1x8x8xbf16> to vector<8x8xbf16>
    %c2_93 = arith.constant 2 : index
    %c0_94 = arith.constant 0 : index
    %c0_95 = arith.constant 0 : index
    %137 = vector.load %arg5[%c2_93, %c0_94, %c0_95] : memref<4x8x32xbf16, #tpu.memory_space<vmem>>, vector<1x8x32xbf16>
    %138 = vector.shape_cast %137 : vector<1x8x32xbf16> to vector<8x32xbf16>
    %cst_96 = arith.constant dense<0.000000e+00> : vector<8x32xf32>
    %139 = tpu.matmul %136, %138, %cst_96 {dimension_numbers = #tpu.dot_dimension_numbers<[1], [0], [0], [1], [0, 0, 1, 1], [], []>} : vector<8x8xbf16>, vector<8x32xbf16>, vector<8x32xf32> -> vector<8x32xf32>
    %140 = arith.addf %134, %139 : vector<8x32xf32>
    %141 = vector.extract_strided_slice %123 {offsets = [3, 0, 0], sizes = [1, 8, 8], strides = [1, 1, 1]} : vector<4x8x8xbf16> to vector<1x8x8xbf16>
    %142 = vector.shape_cast %141 : vector<1x8x8xbf16> to vector<8x8xbf16>
    %c3_97 = arith.constant 3 : index
    %c0_98 = arith.constant 0 : index
    %c0_99 = arith.constant 0 : index
    %143 = vector.load %arg5[%c3_97, %c0_98, %c0_99] : memref<4x8x32xbf16, #tpu.memory_space<vmem>>, vector<1x8x32xbf16>
    %144 = vector.shape_cast %143 : vector<1x8x32xbf16> to vector<8x32xbf16>
    %cst_100 = arith.constant dense<0.000000e+00> : vector<8x32xf32>
    %145 = tpu.matmul %142, %144, %cst_100 {dimension_numbers = #tpu.dot_dimension_numbers<[1], [0], [0], [1], [0, 0, 1, 1], [], []>} : vector<8x8xbf16>, vector<8x32xbf16>, vector<8x32xf32> -> vector<8x32xf32>
    %146 = arith.addf %140, %145 : vector<8x32xf32>
    %c0_101 = arith.constant 0 : index
    %c0_102 = arith.constant 0 : index
    %147 = vector.load %arg6[%c0_101, %c0_102] : memref<1x32xbf16, #tpu.memory_space<vmem>>, vector<1x32xbf16>
    %148 = arith.extf %147 : vector<1x32xbf16> to vector<1x32xf32>
    %149 = vector.broadcast %148 : vector<1x32xf32> to vector<8x32xf32>
    %150 = arith.addf %146, %149 : vector<8x32xf32>
    %c0_103 = arith.constant 0 : index
    %c0_104 = arith.constant 0 : index
    %c0_105 = arith.constant 0 : index
    %151 = vector.load %arg7[%c0_103, %c0_104, %c0_105] : memref<1x8x32xf32, #tpu.memory_space<vmem>>, vector<1x8x32xf32>
    %152 = vector.shape_cast %151 : vector<1x8x32xf32> to vector<8x32xf32>
    %153 = vector.shape_cast %150 : vector<8x32xf32> to vector<1x8x32xf32>
    tpu.vector_store %arg7[%c0_103, %c0_104, %c0_105], %153 {strides = array<i32>} : memref<1x8x32xf32, #tpu.memory_space<vmem>>, vector<1x8x32xf32>,
    return
  }
  func.func @transform_0(%arg0: i32, %arg1: i32) -> (i32, i32, i32) {
    %c0_i32 = arith.constant 0 : i32
    %c0_i32_0 = arith.constant 0 : i32
    return %arg0, %arg1, %c0_i32 : i32, i32, i32
  }
  func.func @transform_1(%arg0: i32, %arg1: i32) -> (i32, i32) {
    %c0_i32 = arith.constant 0 : i32
    %c0_i32_0 = arith.constant 0 : i32
    %c0_i32_1 = arith.constant 0 : i32
    return %c0_i32, %c0_i32_0 : i32, i32
  }
  func.func @transform_2(%arg0: i32, %arg1: i32) -> (i32, i32) {
    %c0_i32 = arith.constant 0 : i32
    %c0_i32_0 = arith.constant 0 : i32
    %c0_i32_1 = arith.constant 0 : i32
    return %c0_i32, %c0_i32_0 : i32, i32
  }
  func.func @transform_3(%arg0: i32, %arg1: i32) -> (i32, i32, i32) {
    %c0_i32 = arith.constant 0 : i32
    %c0_i32_0 = arith.constant 0 : i32
    %c0_i32_1 = arith.constant 0 : i32
    %c0_i32_2 = arith.constant 0 : i32
    return %c0_i32, %c0_i32_0, %c0_i32_1 : i32, i32, i32
  }
  func.func @transform_4(%arg0: i32, %arg1: i32) -> (i32, i32) {
    %c0_i32 = arith.constant 0 : i32
    %c0_i32_0 = arith.constant 0 : i32
    %c0_i32_1 = arith.constant 0 : i32
    return %c0_i32, %c0_i32_0 : i32, i32
  }
  func.func @transform_5(%arg0: i32, %arg1: i32) -> (i32, i32, i32) {
    %c0_i32 = arith.constant 0 : i32
    %c0_i32_0 = arith.constant 0 : i32
    return %arg0, %arg1, %c0_i32 : i32, i32, i32
  }
}

module attributes {stable_mosaic.version = 11 : i64} {
  func.func @causal_attn_kernel(%arg0: i32, %arg1: i32, %arg2: memref<1x8x32xf32, #tpu.memory_space<vmem>>, %arg3: memref<32x96xbf16, #tpu.memory_space<vmem>>, %arg4: memref<1x96xbf16, #tpu.memory_space<vmem>>, %arg5: memref<4x8x32xbf16, #tpu.memory_space<vmem>>, %arg6: memref<1x32xbf16, #tpu.memory_space<vmem>>, %arg7: memref<1x8x32xf32, #tpu.memory_space<vmem>>, %arg8: memref<4x8x8xbf16, #tpu.memory_space<vmem>>, %arg9: memref<4x8x8xbf16, #tpu.memory_space<vmem>>, %arg10: memref<4x8x8xbf16, #tpu.memory_space<vmem>>, %arg11: memref<4x8x1xf32, #tpu.memory_space<vmem>>, %arg12: memref<4x8x1xf32, #tpu.memory_space<vmem>>, %arg13: memref<4x8x8xf32, #tpu.memory_space<vmem>>) attributes {dimension_semantics = [#tpu.dimension_semantics<parallel>, #tpu.dimension_semantics<arbitrary>], iteration_bounds = array<i64: 2, 1>, scalar_prefetch = 0 : i64, scratch_operands = 6 : i64, tpu.core_type = #tpu.core_type<tc>, window_params = [{transform_indices = @transform_0, window_bounds = array<i64: 1, 8, 32>}, {pipeline_mode = #tpu.pipeline_mode<synchronous>, transform_indices = @transform_1, window_bounds = array<i64: 32, 96>}, {pipeline_mode = #tpu.pipeline_mode<synchronous>, transform_indices = @transform_2, window_bounds = array<i64: 1, 96>}, {pipeline_mode = #tpu.pipeline_mode<synchronous>, transform_indices = @transform_3, window_bounds = array<i64: 4, 8, 32>}, {pipeline_mode = #tpu.pipeline_mode<synchronous>, transform_indices = @transform_4, window_bounds = array<i64: 1, 32>}, {transform_indices = @transform_5, window_bounds = array<i64: 1, 8, 32>}]} {
    %c8_i32 = arith.constant 8 : i32
    %0 = arith.muli %arg1, %c8_i32 : i32
    %1 = tpu.assume_multiple %0, 8 : i32
    %c0 = arith.constant 0 : index
    %c0_0 = arith.constant 0 : index
    %c0_1 = arith.constant 0 : index
    %2 = vector.load %arg2[%c0, %c0_0, %c0_1] : memref<1x8x32xf32, #tpu.memory_space<vmem>>, vector<1x8x32xf32>
    %3 = vector.shape_cast %2 : vector<1x8x32xf32> to vector<8x32xf32>
    %4 = arith.truncf %3 : vector<8x32xf32> to vector<8x32xbf16>
    %c0_2 = arith.constant 0 : index
    %c0_3 = arith.constant 0 : index
    %5 = vector.load %arg3[%c0_2, %c0_3] : memref<32x96xbf16, #tpu.memory_space<vmem>>, vector<32x96xbf16>
    %cst = arith.constant dense<0.000000e+00> : vector<8x96xf32>
    %6 = tpu.matmul %4, %5, %cst {dimension_numbers = #tpu.dot_dimension_numbers<[1], [0], [0], [1], [0, 0, 1, 1], [], []>} : vector<8x32xbf16>, vector<32x96xbf16>, vector<8x96xf32> -> vector<8x96xf32>
    %c0_4 = arith.constant 0 : index
    %c0_5 = arith.constant 0 : index
    %7 = vector.load %arg4[%c0_4, %c0_5] : memref<1x96xbf16, #tpu.memory_space<vmem>>, vector<1x96xbf16>
    %8 = arith.extf %7 : vector<1x96xbf16> to vector<1x96xf32>
    %9 = vector.broadcast %8 : vector<1x96xf32> to vector<8x96xf32>
    %10 = arith.addf %6, %9 : vector<8x96xf32>
    %11 = arith.truncf %10 : vector<8x96xf32> to vector<8x96xbf16>
    %12 = vector.extract_strided_slice %11 {offsets = [0, 0], sizes = [8, 8], strides = [1, 1]} : vector<8x96xbf16> to vector<8x8xbf16>
    %c0_6 = arith.constant 0 : index
    %c0_7 = arith.constant 0 : index
    %c0_8 = arith.constant 0 : index
    %13 = vector.load %arg8[%c0_6, %c0_7, %c0_8] : memref<4x8x8xbf16, #tpu.memory_space<vmem>>, vector<1x8x8xbf16>
    %14 = vector.shape_cast %13 : vector<1x8x8xbf16> to vector<8x8xbf16>
    %15 = vector.shape_cast %12 : vector<8x8xbf16> to vector<1x8x8xbf16>
    tpu.vector_store %arg8[%c0_6, %c0_7, %c0_8], %15 {strides = array<i32>} : memref<4x8x8xbf16, #tpu.memory_space<vmem>>, vector<1x8x8xbf16>,
    %16 = vector.extract_strided_slice %11 {offsets = [0, 32], sizes = [8, 8], strides = [1, 1]} : vector<8x96xbf16> to vector<8x8xbf16>
    %c0_9 = arith.constant 0 : index
    %17 = arith.index_cast %1 : i32 to index
    %c0_10 = arith.constant 0 : index
    %18 = vector.load %arg9[%c0_9, %17, %c0_10] : memref<4x8x8xbf16, #tpu.memory_space<vmem>>, vector<1x8x8xbf16>
    %19 = vector.shape_cast %18 : vector<1x8x8xbf16> to vector<8x8xbf16>
    %20 = vector.shape_cast %16 : vector<8x8xbf16> to vector<1x8x8xbf16>
    tpu.vector_store %arg9[%c0_9, %17, %c0_10], %20 {strides = array<i32>} : memref<4x8x8xbf16, #tpu.memory_space<vmem>>, vector<1x8x8xbf16>,
    %21 = vector.extract_strided_slice %11 {offsets = [0, 64], sizes = [8, 8], strides = [1, 1]} : vector<8x96xbf16> to vector<8x8xbf16>
    %c0_11 = arith.constant 0 : index
    %22 = arith.index_cast %1 : i32 to index
    %c0_12 = arith.constant 0 : index
    %23 = vector.load %arg10[%c0_11, %22, %c0_12] : memref<4x8x8xbf16, #tpu.memory_space<vmem>>, vector<1x8x8xbf16>
    %24 = vector.shape_cast %23 : vector<1x8x8xbf16> to vector<8x8xbf16>
    %25 = vector.shape_cast %21 : vector<8x8xbf16> to vector<1x8x8xbf16>
    tpu.vector_store %arg10[%c0_11, %22, %c0_12], %25 {strides = array<i32>} : memref<4x8x8xbf16, #tpu.memory_space<vmem>>, vector<1x8x8xbf16>,
    %26 = vector.extract_strided_slice %11 {offsets = [0, 8], sizes = [8, 8], strides = [1, 1]} : vector<8x96xbf16> to vector<8x8xbf16>
    %c1 = arith.constant 1 : index
    %c0_13 = arith.constant 0 : index
    %c0_14 = arith.constant 0 : index
    %27 = vector.load %arg8[%c1, %c0_13, %c0_14] : memref<4x8x8xbf16, #tpu.memory_space<vmem>>, vector<1x8x8xbf16>
    %28 = vector.shape_cast %27 : vector<1x8x8xbf16> to vector<8x8xbf16>
    %29 = vector.shape_cast %26 : vector<8x8xbf16> to vector<1x8x8xbf16>
    tpu.vector_store %arg8[%c1, %c0_13, %c0_14], %29 {strides = array<i32>} : memref<4x8x8xbf16, #tpu.memory_space<vmem>>, vector<1x8x8xbf16>,
    %30 = vector.extract_strided_slice %11 {offsets = [0, 40], sizes = [8, 8], strides = [1, 1]} : vector<8x96xbf16> to vector<8x8xbf16>
    %c1_15 = arith.constant 1 : index
    %31 = arith.index_cast %1 : i32 to index
    %c0_16 = arith.constant 0 : index
    %32 = vector.load %arg9[%c1_15, %31, %c0_16] : memref<4x8x8xbf16, #tpu.memory_space<vmem>>, vector<1x8x8xbf16>
    %33 = vector.shape_cast %32 : vector<1x8x8xbf16> to vector<8x8xbf16>
    %34 = vector.shape_cast %30 : vector<8x8xbf16> to vector<1x8x8xbf16>
    tpu.vector_store %arg9[%c1_15, %31, %c0_16], %34 {strides = array<i32>} : memref<4x8x8xbf16, #tpu.memory_space<vmem>>, vector<1x8x8xbf16>,
    %35 = vector.extract_strided_slice %11 {offsets = [0, 72], sizes = [8, 8], strides = [1, 1]} : vector<8x96xbf16> to vector<8x8xbf16>
    %c1_17 = arith.constant 1 : index
    %36 = arith.index_cast %1 : i32 to index
    %c0_18 = arith.constant 0 : index
    %37 = vector.load %arg10[%c1_17, %36, %c0_18] : memref<4x8x8xbf16, #tpu.memory_space<vmem>>, vector<1x8x8xbf16>
    %38 = vector.shape_cast %37 : vector<1x8x8xbf16> to vector<8x8xbf16>
    %39 = vector.shape_cast %35 : vector<8x8xbf16> to vector<1x8x8xbf16>
    tpu.vector_store %arg10[%c1_17, %36, %c0_18], %39 {strides = array<i32>} : memref<4x8x8xbf16, #tpu.memory_space<vmem>>, vector<1x8x8xbf16>,
    %40 = vector.extract_strided_slice %11 {offsets = [0, 16], sizes = [8, 8], strides = [1, 1]} : vector<8x96xbf16> to vector<8x8xbf16>
    %c2 = arith.constant 2 : index
    %c0_19 = arith.constant 0 : index
    %c0_20 = arith.constant 0 : index
    %41 = vector.load %arg8[%c2, %c0_19, %c0_20] : memref<4x8x8xbf16, #tpu.memory_space<vmem>>, vector<1x8x8xbf16>
    %42 = vector.shape_cast %41 : vector<1x8x8xbf16> to vector<8x8xbf16>
    %43 = vector.shape_cast %40 : vector<8x8xbf16> to vector<1x8x8xbf16>
    tpu.vector_store %arg8[%c2, %c0_19, %c0_20], %43 {strides = array<i32>} : memref<4x8x8xbf16, #tpu.memory_space<vmem>>, vector<1x8x8xbf16>,
    %44 = vector.extract_strided_slice %11 {offsets = [0, 48], sizes = [8, 8], strides = [1, 1]} : vector<8x96xbf16> to vector<8x8xbf16>
    %c2_21 = arith.constant 2 : index
    %45 = arith.index_cast %1 : i32 to index
    %c0_22 = arith.constant 0 : index
    %46 = vector.load %arg9[%c2_21, %45, %c0_22] : memref<4x8x8xbf16, #tpu.memory_space<vmem>>, vector<1x8x8xbf16>
    %47 = vector.shape_cast %46 : vector<1x8x8xbf16> to vector<8x8xbf16>
    %48 = vector.shape_cast %44 : vector<8x8xbf16> to vector<1x8x8xbf16>
    tpu.vector_store %arg9[%c2_21, %45, %c0_22], %48 {strides = array<i32>} : memref<4x8x8xbf16, #tpu.memory_space<vmem>>, vector<1x8x8xbf16>,
    %49 = vector.extract_strided_slice %11 {offsets = [0, 80], sizes = [8, 8], strides = [1, 1]} : vector<8x96xbf16> to vector<8x8xbf16>
    %c2_23 = arith.constant 2 : index
    %50 = arith.index_cast %1 : i32 to index
    %c0_24 = arith.constant 0 : index
    %51 = vector.load %arg10[%c2_23, %50, %c0_24] : memref<4x8x8xbf16, #tpu.memory_space<vmem>>, vector<1x8x8xbf16>
    %52 = vector.shape_cast %51 : vector<1x8x8xbf16> to vector<8x8xbf16>
    %53 = vector.shape_cast %49 : vector<8x8xbf16> to vector<1x8x8xbf16>
    tpu.vector_store %arg10[%c2_23, %50, %c0_24], %53 {strides = array<i32>} : memref<4x8x8xbf16, #tpu.memory_space<vmem>>, vector<1x8x8xbf16>,
    %54 = vector.extract_strided_slice %11 {offsets = [0, 24], sizes = [8, 8], strides = [1, 1]} : vector<8x96xbf16> to vector<8x8xbf16>
    %c3 = arith.constant 3 : index
    %c0_25 = arith.constant 0 : index
    %c0_26 = arith.constant 0 : index
    %55 = vector.load %arg8[%c3, %c0_25, %c0_26] : memref<4x8x8xbf16, #tpu.memory_space<vmem>>, vector<1x8x8xbf16>
    %56 = vector.shape_cast %55 : vector<1x8x8xbf16> to vector<8x8xbf16>
    %57 = vector.shape_cast %54 : vector<8x8xbf16> to vector<1x8x8xbf16>
    tpu.vector_store %arg8[%c3, %c0_25, %c0_26], %57 {strides = array<i32>} : memref<4x8x8xbf16, #tpu.memory_space<vmem>>, vector<1x8x8xbf16>,
    %58 = vector.extract_strided_slice %11 {offsets = [0, 56], sizes = [8, 8], strides = [1, 1]} : vector<8x96xbf16> to vector<8x8xbf16>
    %c3_27 = arith.constant 3 : index
    %59 = arith.index_cast %1 : i32 to index
    %c0_28 = arith.constant 0 : index
    %60 = vector.load %arg9[%c3_27, %59, %c0_28] : memref<4x8x8xbf16, #tpu.memory_space<vmem>>, vector<1x8x8xbf16>
    %61 = vector.shape_cast %60 : vector<1x8x8xbf16> to vector<8x8xbf16>
    %62 = vector.shape_cast %58 : vector<8x8xbf16> to vector<1x8x8xbf16>
    tpu.vector_store %arg9[%c3_27, %59, %c0_28], %62 {strides = array<i32>} : memref<4x8x8xbf16, #tpu.memory_space<vmem>>, vector<1x8x8xbf16>,
    %63 = vector.extract_strided_slice %11 {offsets = [0, 88], sizes = [8, 8], strides = [1, 1]} : vector<8x96xbf16> to vector<8x8xbf16>
    %c3_29 = arith.constant 3 : index
    %64 = arith.index_cast %1 : i32 to index
    %c0_30 = arith.constant 0 : index
    %65 = vector.load %arg10[%c3_29, %64, %c0_30] : memref<4x8x8xbf16, #tpu.memory_space<vmem>>, vector<1x8x8xbf16>
    %66 = vector.shape_cast %65 : vector<1x8x8xbf16> to vector<8x8xbf16>
    %67 = vector.shape_cast %63 : vector<8x8xbf16> to vector<1x8x8xbf16>
    tpu.vector_store %arg10[%c3_29, %64, %c0_30], %67 {strides = array<i32>} : memref<4x8x8xbf16, #tpu.memory_space<vmem>>, vector<1x8x8xbf16>,
    %c0_31 = arith.constant 0 : index
    %c0_32 = arith.constant 0 : index
    %c0_33 = arith.constant 0 : index
    %68 = vector.load %arg8[%c0_31, %c0_32, %c0_33] : memref<4x8x8xbf16, #tpu.memory_space<vmem>>, vector<4x8x8xbf16>
    %cst_34 = arith.constant -1.000000e+30 : f32
    %69 = vector.broadcast %cst_34 : f32 to vector<4x8x1xf32>
    %c0_35 = arith.constant 0 : index
    %c0_36 = arith.constant 0 : index
    %c0_37 = arith.constant 0 : index
    %70 = vector.load %arg11[%c0_35, %c0_36, %c0_37] : memref<4x8x1xf32, #tpu.memory_space<vmem>>, vector<4x8x1xf32>
    tpu.vector_store %arg11[%c0_35, %c0_36, %c0_37], %69 {strides = array<i32>} : memref<4x8x1xf32, #tpu.memory_space<vmem>>, vector<4x8x1xf32>,
    %cst_38 = arith.constant 0.000000e+00 : f32
    %71 = vector.broadcast %cst_38 : f32 to vector<4x8x1xf32>
    %c0_39 = arith.constant 0 : index
    %c0_40 = arith.constant 0 : index
    %c0_41 = arith.constant 0 : index
    %72 = vector.load %arg12[%c0_39, %c0_40, %c0_41] : memref<4x8x1xf32, #tpu.memory_space<vmem>>, vector<4x8x1xf32>
    tpu.vector_store %arg12[%c0_39, %c0_40, %c0_41], %71 {strides = array<i32>} : memref<4x8x1xf32, #tpu.memory_space<vmem>>, vector<4x8x1xf32>,
    %cst_42 = arith.constant 0.000000e+00 : f32
    %73 = vector.broadcast %cst_42 : f32 to vector<4x8x8xf32>
    %c0_43 = arith.constant 0 : index
    %c0_44 = arith.constant 0 : index
    %c0_45 = arith.constant 0 : index
    %74 = vector.load %arg13[%c0_43, %c0_44, %c0_45] : memref<4x8x8xf32, #tpu.memory_space<vmem>>, vector<4x8x8xf32>
    tpu.vector_store %arg13[%c0_43, %c0_44, %c0_45], %73 {strides = array<i32>} : memref<4x8x8xf32, #tpu.memory_space<vmem>>, vector<4x8x8xf32>,
    %c0_i32 = arith.constant 0 : i32
    %75 = arith.subi %arg1, %c0_i32 : i32
    %c1_i32 = arith.constant 1 : i32
    %c1_i32_46 = arith.constant 1 : i32
    %76 = arith.subi %c1_i32, %c1_i32_46 : i32
    %77 = arith.addi %75, %76 : i32
    %c1_i32_47 = arith.constant 1 : i32
    %78 = arith.divsi %77, %c1_i32_47 : i32
    %c1_i32_48 = arith.constant 1 : i32
    %c0_i32_49 = arith.constant 0 : i32
    %c0_i32_50 = arith.constant 0 : i32
    %79 = arith.subi %78, %c0_i32_50 : i32
    %80 = arith.addi %c0_i32_50, %79 : i32
    %c1_i32_51 = arith.constant 1 : i32
    scf.for %arg14 = %c0_i32_50 to %80 step %c1_i32_51  : i32 {
      %154 = arith.muli %arg14, %c1_i32_48 : i32
      %155 = arith.addi %c0_i32_49, %154 : i32
      %c8_i32_106 = arith.constant 8 : i32
      %156 = arith.muli %155, %c8_i32_106 : i32
      %157 = tpu.assume_multiple %156, 8 : i32
      %c0_107 = arith.constant 0 : index
      %158 = arith.index_cast %157 : i32 to index
      %c0_108 = arith.constant 0 : index
      %159 = vector.load %arg9[%c0_107, %158, %c0_108] : memref<4x8x8xbf16, #tpu.memory_space<vmem>>, vector<4x8x8xbf16>
      %c0_109 = arith.constant 0 : index
      %160 = arith.index_cast %157 : i32 to index
      %c0_110 = arith.constant 0 : index
      %161 = vector.load %arg10[%c0_109, %160, %c0_110] : memref<4x8x8xbf16, #tpu.memory_space<vmem>>, vector<4x8x8xbf16>
      "tpu.trace_start"() <{level = 10 : i32, message = "hqd,hkd->hqk"}> : () -> ()
      %cst_111 = arith.constant dense<0.000000e+00> : vector<4x8x8xf32>
      %162 = tpu.matmul %68, %159, %cst_111 {dimension_numbers = #tpu.dot_dimension_numbers<[2], [2], [1], [1], [0, 0, 0, 1, 1, 1], [0], [0]>} : vector<4x8x8xbf16>, vector<4x8x8xbf16>, vector<4x8x8xf32> -> vector<4x8x8xf32>
      "tpu.trace_stop"() : () -> ()
      %c0_112 = arith.constant 0 : index
      %c0_113 = arith.constant 0 : index
      %c0_114 = arith.constant 0 : index
      %163 = vector.load %arg11[%c0_112, %c0_113, %c0_114] : memref<4x8x1xf32, #tpu.memory_space<vmem>>, vector<4x8x1xf32>
      %cst_115 = arith.constant dense<0xFF800000> : vector<4x8xf32>
      %164 = vector.multi_reduction <maximumf>, %162, %cst_115 [2] : vector<4x8x8xf32> to vector<4x8xf32>
      %165 = vector.shape_cast %164 : vector<4x8xf32> to vector<4x8x1xf32>
      %166 = arith.maximumf %163, %165 : vector<4x8x1xf32>
      %167 = arith.subf %163, %166 : vector<4x8x1xf32>
      %168 = math.exp %167 : vector<4x8x1xf32>
      %169 = vector.broadcast %166 : vector<4x8x1xf32> to vector<4x8x8xf32>
      %170 = arith.subf %162, %169 : vector<4x8x8xf32>
      %171 = arith.truncf %170 : vector<4x8x8xf32> to vector<4x8x8xbf16>
      %172 = math.exp %171 : vector<4x8x8xbf16>
      %c0_116 = arith.constant 0 : index
      %c0_117 = arith.constant 0 : index
      %c0_118 = arith.constant 0 : index
      %173 = vector.load %arg12[%c0_116, %c0_117, %c0_118] : memref<4x8x1xf32, #tpu.memory_space<vmem>>, vector<4x8x1xf32>
      %174 = arith.mulf %168, %173 : vector<4x8x1xf32>
      %175 = arith.extf %172 : vector<4x8x8xbf16> to vector<4x8x8xf32>
      %cst_119 = arith.constant dense<0.000000e+00> : vector<4x8xf32>
      %176 = vector.multi_reduction <add>, %175, %cst_119 [2] : vector<4x8x8xf32> to vector<4x8xf32>
      %177 = vector.shape_cast %176 : vector<4x8xf32> to vector<4x8x1xf32>
      %178 = arith.addf %174, %177 : vector<4x8x1xf32>
      %c0_120 = arith.constant 0 : index
      %c0_121 = arith.constant 0 : index
      %c0_122 = arith.constant 0 : index
      %179 = vector.load %arg12[%c0_120, %c0_121, %c0_122] : memref<4x8x1xf32, #tpu.memory_space<vmem>>, vector<4x8x1xf32>
      tpu.vector_store %arg12[%c0_120, %c0_121, %c0_122], %178 {strides = array<i32>} : memref<4x8x1xf32, #tpu.memory_space<vmem>>, vector<4x8x1xf32>,
      "tpu.trace_start"() <{level = 10 : i32, message = "hqk,hkd->hqd"}> : () -> ()
      %cst_123 = arith.constant dense<0.000000e+00> : vector<4x8x8xf32>
      %180 = tpu.matmul %172, %161, %cst_123 {dimension_numbers = #tpu.dot_dimension_numbers<[2], [1], [1], [2], [0, 0, 0, 1, 1, 2], [0], [0]>} : vector<4x8x8xbf16>, vector<4x8x8xbf16>, vector<4x8x8xf32> -> vector<4x8x8xf32>
      "tpu.trace_stop"() : () -> ()
      %c0_124 = arith.constant 0 : index
      %c0_125 = arith.constant 0 : index
      %c0_126 = arith.constant 0 : index
      %181 = vector.load %arg13[%c0_124, %c0_125, %c0_126] : memref<4x8x8xf32, #tpu.memory_space<vmem>>, vector<4x8x8xf32>
      %182 = vector.broadcast %168 : vector<4x8x1xf32> to vector<4x8x8xf32>
      %183 = arith.mulf %182, %181 : vector<4x8x8xf32>
      %184 = arith.addf %183, %180 : vector<4x8x8xf32>
      %c0_127 = arith.constant 0 : index
      %c0_128 = arith.constant 0 : index
      %c0_129 = arith.constant 0 : index
      %185 = vector.load %arg13[%c0_127, %c0_128, %c0_129] : memref<4x8x8xf32, #tpu.memory_space<vmem>>, vector<4x8x8xf32>
      tpu.vector_store %arg13[%c0_127, %c0_128, %c0_129], %184 {strides = array<i32>} : memref<4x8x8xf32, #tpu.memory_space<vmem>>, vector<4x8x8xf32>,
      %c0_130 = arith.constant 0 : index
      %c0_131 = arith.constant 0 : index
      %c0_132 = arith.constant 0 : index
      %186 = vector.load %arg11[%c0_130, %c0_131, %c0_132] : memref<4x8x1xf32, #tpu.memory_space<vmem>>, vector<4x8x1xf32>
      tpu.vector_store %arg11[%c0_130, %c0_131, %c0_132], %166 {strides = array<i32>} : memref<4x8x1xf32, #tpu.memory_space<vmem>>, vector<4x8x1xf32>,
    }
    %c0_52 = arith.constant 0 : index
    %81 = arith.index_cast %1 : i32 to index
    %c0_53 = arith.constant 0 : index
    %82 = vector.load %arg9[%c0_52, %81, %c0_53] : memref<4x8x8xbf16, #tpu.memory_space<vmem>>, vector<4x8x8xbf16>
    %c0_54 = arith.constant 0 : index
    %83 = arith.index_cast %1 : i32 to index
    %c0_55 = arith.constant 0 : index
    %84 = vector.load %arg10[%c0_54, %83, %c0_55] : memref<4x8x8xbf16, #tpu.memory_space<vmem>>, vector<4x8x8xbf16>
    "tpu.trace_start"() <{level = 10 : i32, message = "hqd,hkd->hqk"}> : () -> ()
    %cst_56 = arith.constant dense<0.000000e+00> : vector<4x8x8xf32>
    %85 = tpu.matmul %68, %82, %cst_56 {dimension_numbers = #tpu.dot_dimension_numbers<[2], [2], [1], [1], [0, 0, 0, 1, 1, 1], [0], [0]>} : vector<4x8x8xbf16>, vector<4x8x8xbf16>, vector<4x8x8xf32> -> vector<4x8x8xf32>
    "tpu.trace_stop"() : () -> ()
    %86 = tpu.iota {dimensions = array<i32: 0>} : vector<8x8xi32>
    %87 = tpu.iota {dimensions = array<i32: 1>} : vector<8x8xi32>
    %88 = arith.cmpi sge, %86, %87 : vector<8x8xi32>
    %89 = vector.shape_cast %88 : vector<8x8xi1> to vector<1x8x8xi1>
    %cst_57 = arith.constant -1.000000e+10 : f32
    %90 = vector.shape_cast %89 : vector<1x8x8xi1> to vector<1x8x8xi1>
    %91 = vector.broadcast %90 : vector<1x8x8xi1> to vector<4x8x8xi1>
    %92 = vector.broadcast %cst_57 : f32 to vector<4x8x8xf32>
    %93 = arith.select %91, %85, %92 : vector<4x8x8xi1>, vector<4x8x8xf32>
    %c0_58 = arith.constant 0 : index
    %c0_59 = arith.constant 0 : index
    %c0_60 = arith.constant 0 : index
    %94 = vector.load %arg11[%c0_58, %c0_59, %c0_60] : memref<4x8x1xf32, #tpu.memory_space<vmem>>, vector<4x8x1xf32>
    %cst_61 = arith.constant dense<0xFF800000> : vector<4x8xf32>
    %95 = vector.multi_reduction <maximumf>, %93, %cst_61 [2] : vector<4x8x8xf32> to vector<4x8xf32>
    %96 = vector.shape_cast %95 : vector<4x8xf32> to vector<4x8x1xf32>
    %97 = arith.maximumf %94, %96 : vector<4x8x1xf32>
    %98 = arith.subf %94, %97 : vector<4x8x1xf32>
    %99 = math.exp %98 : vector<4x8x1xf32>
    %100 = vector.broadcast %97 : vector<4x8x1xf32> to vector<4x8x8xf32>
    %101 = arith.subf %93, %100 : vector<4x8x8xf32>
    %102 = arith.truncf %101 : vector<4x8x8xf32> to vector<4x8x8xbf16>
    %103 = math.exp %102 : vector<4x8x8xbf16>
    %c0_62 = arith.constant 0 : index
    %c0_63 = arith.constant 0 : index
    %c0_64 = arith.constant 0 : index
    %104 = vector.load %arg12[%c0_62, %c0_63, %c0_64] : memref<4x8x1xf32, #tpu.memory_space<vmem>>, vector<4x8x1xf32>
    %105 = arith.mulf %99, %104 : vector<4x8x1xf32>
    %106 = arith.extf %103 : vector<4x8x8xbf16> to vector<4x8x8xf32>
    %cst_65 = arith.constant dense<0.000000e+00> : vector<4x8xf32>
    %107 = vector.multi_reduction <add>, %106, %cst_65 [2] : vector<4x8x8xf32> to vector<4x8xf32>
    %108 = vector.shape_cast %107 : vector<4x8xf32> to vector<4x8x1xf32>
    %109 = arith.addf %105, %108 : vector<4x8x1xf32>
    %c0_66 = arith.constant 0 : index
    %c0_67 = arith.constant 0 : index
    %c0_68 = arith.constant 0 : index
    %110 = vector.load %arg12[%c0_66, %c0_67, %c0_68] : memref<4x8x1xf32, #tpu.memory_space<vmem>>, vector<4x8x1xf32>
    tpu.vector_store %arg12[%c0_66, %c0_67, %c0_68], %109 {strides = array<i32>} : memref<4x8x1xf32, #tpu.memory_space<vmem>>, vector<4x8x1xf32>,
    "tpu.trace_start"() <{level = 10 : i32, message = "hqk,hkd->hqd"}> : () -> ()
    %cst_69 = arith.constant dense<0.000000e+00> : vector<4x8x8xf32>
    %111 = tpu.matmul %103, %84, %cst_69 {dimension_numbers = #tpu.dot_dimension_numbers<[2], [1], [1], [2], [0, 0, 0, 1, 1, 2], [0], [0]>} : vector<4x8x8xbf16>, vector<4x8x8xbf16>, vector<4x8x8xf32> -> vector<4x8x8xf32>
    "tpu.trace_stop"() : () -> ()
    %c0_70 = arith.constant 0 : index
    %c0_71 = arith.constant 0 : index
    %c0_72 = arith.constant 0 : index
    %112 = vector.load %arg13[%c0_70, %c0_71, %c0_72] : memref<4x8x8xf32, #tpu.memory_space<vmem>>, vector<4x8x8xf32>
    %113 = vector.broadcast %99 : vector<4x8x1xf32> to vector<4x8x8xf32>
    %114 = arith.mulf %113, %112 : vector<4x8x8xf32>
    %115 = arith.addf %114, %111 : vector<4x8x8xf32>
    %c0_73 = arith.constant 0 : index
    %c0_74 = arith.constant 0 : index
    %c0_75 = arith.constant 0 : index
    %116 = vector.load %arg13[%c0_73, %c0_74, %c0_75] : memref<4x8x8xf32, #tpu.memory_space<vmem>>, vector<4x8x8xf32>
    tpu.vector_store %arg13[%c0_73, %c0_74, %c0_75], %115 {strides = array<i32>} : memref<4x8x8xf32, #tpu.memory_space<vmem>>, vector<4x8x8xf32>,
    %c0_76 = arith.constant 0 : index
    %c0_77 = arith.constant 0 : index
    %c0_78 = arith.constant 0 : index
    %117 = vector.load %arg11[%c0_76, %c0_77, %c0_78] : memref<4x8x1xf32, #tpu.memory_space<vmem>>, vector<4x8x1xf32>
    tpu.vector_store %arg11[%c0_76, %c0_77, %c0_78], %97 {strides = array<i32>} : memref<4x8x1xf32, #tpu.memory_space<vmem>>, vector<4x8x1xf32>,
    %c0_79 = arith.constant 0 : index
    %c0_80 = arith.constant 0 : index
    %c0_81 = arith.constant 0 : index
    %118 = vector.load %arg12[%c0_79, %c0_80, %c0_81] : memref<4x8x1xf32, #tpu.memory_space<vmem>>, vector<4x8x1xf32>
    %119 = tpu.reciprocal %118 {approx = true} : vector<4x8x1xf32> -> vector<4x8x1xf32>
    %c0_82 = arith.constant 0 : index
    %c0_83 = arith.constant 0 : index
    %c0_84 = arith.constant 0 : index
    %120 = vector.load %arg13[%c0_82, %c0_83, %c0_84] : memref<4x8x8xf32, #tpu.memory_space<vmem>>, vector<4x8x8xf32>
    %121 = vector.broadcast %119 : vector<4x8x1xf32> to vector<4x8x8xf32>
    %122 = arith.mulf %120, %121 : vector<4x8x8xf32>
    %123 = arith.truncf %122 : vector<4x8x8xf32> to vector<4x8x8xbf16>
    %124 = vector.extract_strided_slice %123 {offsets = [0, 0, 0], sizes = [1, 8, 8], strides = [1, 1, 1]} : vector<4x8x8xbf16> to vector<1x8x8xbf16>
    %125 = vector.shape_cast %124 : vector<1x8x8xbf16> to vector<8x8xbf16>
    %c0_85 = arith.constant 0 : index
    %c0_86 = arith.constant 0 : index
    %c0_87 = arith.constant 0 : index
    %126 = vector.load %arg5[%c0_85, %c0_86, %c0_87] : memref<4x8x32xbf16, #tpu.memory_space<vmem>>, vector<1x8x32xbf16>
    %127 = vector.shape_cast %126 : vector<1x8x32xbf16> to vector<8x32xbf16>
    %cst_88 = arith.constant dense<0.000000e+00> : vector<8x32xf32>
    %128 = tpu.matmul %125, %127, %cst_88 {dimension_numbers = #tpu.dot_dimension_numbers<[1], [0], [0], [1], [0, 0, 1, 1], [], []>} : vector<8x8xbf16>, vector<8x32xbf16>, vector<8x32xf32> -> vector<8x32xf32>
    %129 = vector.extract_strided_slice %123 {offsets = [1, 0, 0], sizes = [1, 8, 8], strides = [1, 1, 1]} : vector<4x8x8xbf16> to vector<1x8x8xbf16>
    %130 = vector.shape_cast %129 : vector<1x8x8xbf16> to vector<8x8xbf16>
    %c1_89 = arith.constant 1 : index
    %c0_90 = arith.constant 0 : index
    %c0_91 = arith.constant 0 : index
    %131 = vector.load %arg5[%c1_89, %c0_90, %c0_91] : memref<4x8x32xbf16, #tpu.memory_space<vmem>>, vector<1x8x32xbf16>
    %132 = vector.shape_cast %131 : vector<1x8x32xbf16> to vector<8x32xbf16>
    %cst_92 = arith.constant dense<0.000000e+00> : vector<8x32xf32>
    %133 = tpu.matmul %130, %132, %cst_92 {dimension_numbers = #tpu.dot_dimension_numbers<[1], [0], [0], [1], [0, 0, 1, 1], [], []>} : vector<8x8xbf16>, vector<8x32xbf16>, vector<8x32xf32> -> vector<8x32xf32>
    %134 = arith.addf %128, %133 : vector<8x32xf32>
    %135 = vector.extract_strided_slice %123 {offsets = [2, 0, 0], sizes = [1, 8, 8], strides = [1, 1, 1]} : vector<4x8x8xbf16> to vector<1x8x8xbf16>
    %136 = vector.shape_cast %135 : vector<1x8x8xbf16> to vector<8x8xbf16>
    %c2_93 = arith.constant 2 : index
    %c0_94 = arith.constant 0 : index
    %c0_95 = arith.constant 0 : index
    %137 = vector.load %arg5[%c2_93, %c0_94, %c0_95] : memref<4x8x32xbf16, #tpu.memory_space<vmem>>, vector<1x8x32xbf16>
    %138 = vector.shape_cast %137 : vector<1x8x32xbf16> to vector<8x32xbf16>
    %cst_96 = arith.constant dense<0.000000e+00> : vector<8x32xf32>
    %139 = tpu.matmul %136, %138, %cst_96 {dimension_numbers = #tpu.dot_dimension_numbers<[1], [0], [0], [1], [0, 0, 1, 1], [], []>} : vector<8x8xbf16>, vector<8x32xbf16>, vector<8x32xf32> -> vector<8x32xf32>
    %140 = arith.addf %134, %139 : vector<8x32xf32>
    %141 = vector.extract_strided_slice %123 {offsets = [3, 0, 0], sizes = [1, 8, 8], strides = [1, 1, 1]} : vector<4x8x8xbf16> to vector<1x8x8xbf16>
    %142 = vector.shape_cast %141 : vector<1x8x8xbf16> to vector<8x8xbf16>
    %c3_97 = arith.constant 3 : index
    %c0_98 = arith.constant 0 : index
    %c0_99 = arith.constant 0 : index
    %143 = vector.load %arg5[%c3_97, %c0_98, %c0_99] : memref<4x8x32xbf16, #tpu.memory_space<vmem>>, vector<1x8x32xbf16>
    %144 = vector.shape_cast %143 : vector<1x8x32xbf16> to vector<8x32xbf16>
    %cst_100 = arith.constant dense<0.000000e+00> : vector<8x32xf32>
    %145 = tpu.matmul %142, %144, %cst_100 {dimension_numbers = #tpu.dot_dimension_numbers<[1], [0], [0], [1], [0, 0, 1, 1], [], []>} : vector<8x8xbf16>, vector<8x32xbf16>, vector<8x32xf32> -> vector<8x32xf32>
    %146 = arith.addf %140, %145 : vector<8x32xf32>
    %c0_101 = arith.constant 0 : index
    %c0_102 = arith.constant 0 : index
    %147 = vector.load %arg6[%c0_101, %c0_102] : memref<1x32xbf16, #tpu.memory_space<vmem>>, vector<1x32xbf16>
    %148 = arith.extf %147 : vector<1x32xbf16> to vector<1x32xf32>
    %149 = vector.broadcast %148 : vector<1x32xf32> to vector<8x32xf32>
    %150 = arith.addf %146, %149 : vector<8x32xf32>
    %c0_103 = arith.constant 0 : index
    %c0_104 = arith.constant 0 : index
    %c0_105 = arith.constant 0 : index
    %151 = vector.load %arg7[%c0_103, %c0_104, %c0_105] : memref<1x8x32xf32, #tpu.memory_space<vmem>>, vector<1x8x32xf32>
    %152 = vector.shape_cast %151 : vector<1x8x32xf32> to vector<8x32xf32>
    %153 = vector.shape_cast %150 : vector<8x32xf32> to vector<1x8x32xf32>
    tpu.vector_store %arg7[%c0_103, %c0_104, %c0_105], %153 {strides = array<i32>} : memref<1x8x32xf32, #tpu.memory_space<vmem>>, vector<1x8x32xf32>,
    return
  }
  func.func @transform_0(%arg0: i32, %arg1: i32) -> (i32, i32, i32) {
    %c0_i32 = arith.constant 0 : i32
    %c0_i32_0 = arith.constant 0 : i32
    return %arg0, %arg1, %c0_i32 : i32, i32, i32
  }
  func.func @transform_1(%arg0: i32, %arg1: i32) -> (i32, i32) {
    %c0_i32 = arith.constant 0 : i32
    %c0_i32_0 = arith.constant 0 : i32
    %c0_i32_1 = arith.constant 0 : i32
    return %c0_i32, %c0_i32_0 : i32, i32
  }
  func.func @transform_2(%arg0: i32, %arg1: i32) -> (i32, i32) {
    %c0_i32 = arith.constant 0 : i32
    %c0_i32_0 = arith.constant 0 : i32
    %c0_i32_1 = arith.constant 0 : i32
    return %c0_i32, %c0_i32_0 : i32, i32
  }
  func.func @transform_3(%arg0: i32, %arg1: i32) -> (i32, i32, i32) {
    %c0_i32 = arith.constant 0 : i32
    %c0_i32_0 = arith.constant 0 : i32
    %c0_i32_1 = arith.constant 0 : i32
    %c0_i32_2 = arith.constant 0 : i32
    return %c0_i32, %c0_i32_0, %c0_i32_1 : i32, i32, i32
  }
  func.func @transform_4(%arg0: i32, %arg1: i32) -> (i32, i32) {
    %c0_i32 = arith.constant 0 : i32
    %c0_i32_0 = arith.constant 0 : i32
    %c0_i32_1 = arith.constant 0 : i32
    return %c0_i32, %c0_i32_0 : i32, i32
  }
  func.func @transform_5(%arg0: i32, %arg1: i32) -> (i32, i32, i32) {
    %c0_i32 = arith.constant 0 : i32
    %c0_i32_0 = arith.constant 0 : i32
    return %arg0, %arg1, %c0_i32 : i32, i32, i32
  }
}

</mosaic_0001>

<bundles_post_ra>
// kernel: tpu_custom_call.1
= control target key start
LH: loop header
LB: loop body
LE: loop exit
PB: predicated region body
PF: predicated region fallthrough
CT: control target
= control target key end

     0   :  { %10 = vsyncpa [#allocation9], 0  ;;  %s2873_s0 = inlined_call_operand.hbm [shape: f32[2,8,32], index: 0, kind: input, shape index: {}]   ;;  %s2874_s1 = inlined_call_operand.hbm [shape: bf16[32,96], index: 1, kind: input, shape index: {}]   ;;  %s2875_s2 = inlined_call_operand.vmem [shape: bf16[1,96], index: 2, kind: input, shape index: {}]   ;;  %s2876_s3 = inlined_call_operand.hbm [shape: bf16[4,8,32], index: 3, kind: input, shape index: {}]   ;;  %s2877_s4 = inlined_call_operand.vmem [shape: bf16[1,32], index: 4, kind: input, shape index: {}]   ;;  %s2878_s5 = inlined_call_operand.hbm [shape: f32[2,8,32], index: 5, kind: output, shape index: {}]  }
   0x1   :  { %12 = vsyncpa [#allocation9 + $0x1], 0 }
   0x2   :  { %13 = vsyncpa [#allocation12], 0 }
   0x3   :  { %14 = vsyncpa [#allocation10], 0 }
   0x4   :  { %16 = vsyncpa [#allocation10 + $0x1], 0  ;;  %s2411_s18 = smov 0   ;;  %s2413_s19 = smov 0  }
   0x5   :  { %s2415_s20 = smov 0   ;;  %s2417_s21 = smov 0  }
   0x6   :  { %s2419_s22 = smov 0   ;;  %s2421_s23 = smov 0  }
   0x7 LB: > { %s1900_s24 = sadd.s32 4294967295, %s2358_s23   ;;  %s1901_s25 = sadd.s32 4294967294, %s2358_s23   ;;  %s2358_s23 = sphi %s2421_s23, %s22_s23   ;;  %s2354_s22 = sphi %s2419_s22, %s2900_s22   ;;  %s2350_s21 = sphi %s2417_s21, %s2899_s21   ;;  %s2346_s20 = sphi %s2415_s20, %s2898_s20   ;;  %s2342_s19 = sphi %s2413_s19, %s2897_s19   ;;  %s2338_s18 = sphi %s2411_s18, %s2896_s18  }
   0x8   : > { %p56_p0 = scmp.ne.s32.totalorder %s2342_s19, %s2338_s18  ;;  %p2445_p1 = scmp.eq.s32.totalorder %s1900_s24, 0 }
   0x9   : > { %p2449_p2 = scmp.eq.s32.totalorder %s1900_s24, 1  ;;  %p172_p3 = scmp.eq.s32.totalorder %s1901_s25, 1 }
   0xa   : > { %s2883_s26 = scalar_select %p2445_p1, 1, 0 }
   0xb   : > { %p2455_p4 = por %p2445_p1, %p56_p0  ;;  %p1902_p5 = scmp.ge.s32.totalorder %s2358_s23, 1 }
   0xc   : > { %p2460_p6 = por %p172_p3, %p56_p0  ;;  %p179_p7 = scmp.lt.s32.totalorder %s2358_s23, 3 }
   0xd   : > { %s2885_s28 = scalar_select %p2455_p4, 1, 0 }
   0xe   : > { %s2886_s29 = scalar_select %p2460_p6, 1, 0 }
   0xf   : > { %p2465_p8 = pnand %p1902_p5, %p179_p7  ;;  %s2360_s6 = smov [#allocation11]  }
  0x10   : > { %s191_s7 = sshll.u32 %s2360_s6, 4  ;;  %s2361_s9 = smov [#allocation13]   ;;  %s2469_s7 = int_to_ptr.vmem [resolvable:$true] %s191_s7 }
  0x11   : > { %p2070_p9 = pneg %p2465_p8  ;;  %s207_s10 = sshll.u32 %s2361_s9, 4  ;;  %s2480_s10 = int_to_ptr.vmem [resolvable:$true] %s207_s10 }
  0x12   : > { %s2186_s13 = scalar_lea.hbm %s2874_s1, 256 }
  0x13   : > { %p2476_p11 = pnand %p2070_p9, %p2445_p1  ;;  %p2187_p12 = scmp.ne.s32.totalorder %s2874_s1, %s2186_s13 }
  0x14   : > { %p2193_p5 = scmp.lt.u32.totalorder %s2186_s13, %s2874_s1 }
  0x15   : > { %p2188_p13 = pneg %p2476_p11 }
  0x17   : > { %p2189_p0 = pnand %p2188_p13, %p2187_p12 }
  0x19   : > { %p2190_p3 = pneg %p2189_p0 }
  0x1b   : > { %p2195_p7 = pnand %p2193_p5, %p2190_p3 }
  0x1d   : > { %2198 = shalt.err (!%p2195_p7)
}
  0x1e   : > { %s2199_s24 = scalar_lea.vmem %s2469_s7, 256  ;;  %p2207_p1 = scmp.lt.s32.totalorder %s2469_s7, %s2469_s7 }
  0x1f   : > { %p2200_p9 = scmp.ne.s32.totalorder %s2469_s7, %s2199_s24  ;;  %p2208_p12 = scmp.lt.s32.totalorder %s2199_s24, %s2199_s24 }
  0x21   : > { %p2202_p10 = pnand %p2200_p9, %p2188_p13  ;;  %p2209_p0 = por %p2208_p12, %p2207_p1 }
  0x23   : > { %p2203_p6 = pneg %p2202_p10 }
  0x25   : > { %p2210_p4 = pnand %p2209_p0, %p2203_p6 }
  0x27   : > { %2213 = shalt.err (!%p2210_p4)
}
  0x28   : > { %s2362_s25 = smov 64   ;;  %s2363_s6 = smov 4  }
  0x29   : > { %2073 = dma.hbm_to_vmem [thread:$0]  (!%p2476_p11), %s2874_s1, 256, %s2469_s7, [#allocation12], %s2362_s25, %s2362_s25, %s2363_s6  }
  0x2a   : > { %s2214_s14 = scalar_lea.hbm %s2876_s3, 256 }
  0x2b   : > { %p2215_p1 = scmp.ne.s32.totalorder %s2876_s3, %s2214_s14  ;;  %p2221_p10 = scmp.lt.u32.totalorder %s2214_s14, %s2876_s3 }
  0x2d   : > { %p2217_p4 = pnand %p2215_p1, %p2188_p13 }
  0x2f   : > { %p2218_p6 = pneg %p2217_p4 }
  0x31   : > { %p2223_p3 = pnand %p2221_p10, %p2218_p6 }
  0x33   : > { %2226 = shalt.err (!%p2223_p3)
}
  0x34   : > { %s2227_s7 = scalar_lea.vmem %s2480_s10, 256  ;;  %p2235_p12 = scmp.lt.s32.totalorder %s2480_s10, %s2480_s10 }
  0x35   : > { %p2228_p5 = scmp.ne.s32.totalorder %s2480_s10, %s2227_s7  ;;  %p2236_p0 = scmp.lt.s32.totalorder %s2227_s7, %s2227_s7 }
  0x37   : > { %p2230_p7 = pnand %p2228_p5, %p2188_p13  ;;  %p2237_p1 = por %p2236_p0, %p2235_p12 }
  0x39   : > { %p2231_p9 = pneg %p2230_p7 }
  0x3b   : > { %p2238_p4 = pnand %p2237_p1, %p2231_p9 }
  0x3d   : > { %2241 = shalt.err (!%p2238_p4)
}
  0x3e   : > { %2076 = dma.hbm_to_vmem [thread:$0]  (!%p2476_p11), %s2876_s3, 256, %s2480_s10, [#allocation12], %s2362_s25, %s2362_s25, %s2363_s6  }
  0x3f   : > { %s34_s12 = sadd.s32 1, %s2354_s22  ;;  %s43_s13 = sadd.s32 1, %s2346_s20 }
  0x40   : > { %p36_p13 = scmp.ge.s32.totalorder %s34_s12, 2  ;;  %p50_p6 = scmp.ne.s32.totalorder %s2346_s20, %s2342_s19 }
  0x41   : > { %p51_p10 = scmp.eq.s32.totalorder %s2358_s23, 0  ;;  %p2087_p3 = scmp.lt.s32.totalorder %s2358_s23, 2 }
  0x42   : > { %s2902_s12 = smov (%p36_p13, %s34_s12), 0  ;;  %p2544_p7 = por %p2449_p2, %p50_p6 }
  0x43   : > { %p52_p5 = por %p51_p10, %p50_p6  ;;  %s38_s14 = ssub.s32 %s2354_s22, %s2902_s12 }
  0x44   : > { %s2889_s8 = scalar_select %p2544_p7, 1, 0 }
  0x45   : > { %s224_s15 = sand.u32 1, %s2346_s20   ;;  %p41_p9 = scmp.eq.s32.totalorder %s38_s14, 0 }
  0x46   : > { %s1906_s10 = sshll.u32 %s224_s15, 3  ;;  %s1907_s25 = sshll.u32 %s2354_s22, 7 }
  0x47   : > { %s2553_s6 = scalar_select %p41_p9, %s2346_s20, %s43_s13  }
  0x48   : > { %s2558_s24 = scalar_lea.hbm %s2873_s0, %s1907_s25  ;;  %s228_s27 = scalar_lea.vmem [#allocation8], %s1906_s10 }
  0x49   : > { %s236_s7 = sshll.u32 %s228_s27, 4  ;;  %p2562_p2 = pnand %p2087_p3, %p52_p5  ;;  %s2566_s7 = int_to_ptr.vmem [resolvable:$true] %s236_s7 }
  0x4a   : > { %s225_s11 = scalar_lea.sflag [#allocation9], %s224_s15  ;;  %s2242_s13 = scalar_lea.hbm %s2558_s24, 128 }
  0x4b   : > { %p2243_p11 = scmp.ne.s32.totalorder %s2558_s24, %s2242_s13  ;;  %p2244_p12 = pneg %p2562_p2 }
  0x4c   : > { %s2247_s25 = scalar_lea.hbm %s2873_s0, 256  ;;  %p2248_p4 = scmp.lt.u32.totalorder %s2558_s24, %s2873_s0 }
  0x4d   : > { %p2245_p0 = pnand %p2244_p12, %p2243_p11  ;;  %p2249_p13 = scmp.lt.u32.totalorder %s2247_s25, %s2242_s13 }
  0x4e   : > { %p2251_p10 = scmp.lt.u32.totalorder %s2242_s13, %s2558_s24 }
  0x4f   : > { %p2246_p1 = pneg %p2245_p0  ;;  %p2250_p6 = por %p2249_p13, %p2248_p4 }
  0x51   : > { %p2252_p3 = por %p2251_p10, %p2250_p6 }
  0x53   : > { %p2253_p5 = pnand %p2252_p3, %p2246_p1 }
  0x55   : > { %2256 = shalt.err (!%p2253_p5)
}
  0x56   : > { %s2257_s15 = scalar_lea.vmem %s2566_s7, 128  ;;  %s2364_s27 = smov [#allocation8]  }
  0x57   : > { %p2258_p9 = scmp.ne.s32.totalorder %s2566_s7, %s2257_s15  ;;  %s2262_s14 = sshll.u32 %s2364_s27, 4  ;;  %s2263_s14 = int_to_ptr.vmem [resolvable:$false] %s2262_s14 }
  0x58   : > { %s2264_s10 = scalar_lea.vmem %s2263_s14, 256  ;;  %p2265_p7 = scmp.lt.s32.totalorder %s2566_s7, %s2263_s14 }
  0x59   : > { %p2260_p11 = pnand %p2258_p9, %p2244_p12  ;;  %p2266_p4 = scmp.lt.s32.totalorder %s2264_s10, %s2257_s15 }
  0x5b   : > { %p2261_p0 = pneg %p2260_p11  ;;  %p2267_p13 = por %p2266_p4, %p2265_p7 }
  0x5d   : > { %p2268_p6 = pnand %p2267_p13, %p2261_p0 }
  0x5f   : > { %2271 = shalt.err (!%p2268_p6)
}
  0x60   : > { %2080 = dma.hbm_to_vmem [thread:$0]  (!%p2562_p2), %s2558_s24, 128, %s2566_s7, %s225_s11  }
  0x61   : > { %245 = sbr.rel (%p2465_p8) target bundleno = 1513 (0x5e9), region = 40  ;;  %s2596_s13 = sand.u32 (!%p2465_p8), 1, %s2342_s19  }
  0x62   : > { %s1909_s25 = sshll.u32 (!%p2465_p8), %s2596_s13, 3  ;;  %s248_s16 = scalar_lea.sflag (!%p2465_p8), [#allocation9], %s2596_s13 }
  0x63   : > { %s251_s17 = scalar_lea.vmem (!%p2465_p8), [#allocation8], %s1909_s25  ;;  %p2891_p7 = scmp.ne.s32.totalorder (!%p2465_p8), %s2885_s28, 0 }
  0x68   : > { %2325 = dma.done.wait (%p2891_p7), %s248_s16, 128  }
  0x69   : > { %2327 = vsyncadd (%p2891_p7), %s248_s16, 4294967168  ;;  %p2892_p2 = scmp.ne.s32.totalorder %s2883_s26, 0 }
  0x6b   : > { %2329 = dma.done.wait (%p2892_p2), [#allocation12], 512  }
  0x6c   : > { %2331 = vsyncadd (%p2892_p2), [#allocation12], 4294966784  ;;  %v2365_v0 = vmov 0.0   ;;  %vm2366_vm0 = vmmov 0   ;;  %v2160_v1 = vld [vmem:[#allocation11] sm:$0xff]   ;;  %v2161_v2 = vld [vmem:[#allocation11 + $0x8] sm:$0xff]   ;;  %v296_v5 = vlaneseq }
  0x6d   : > { %1978 = vmatprep.subr.bf16.mxu0 %v2365_v0  ;;  %1982 = vmatprep.mubr.msk.bf16.mxu0 %vm2366_vm0, %v2365_v0  ;;  %v288_v3 = vld [vmem:[%s251_s17] sm:$0xff]  ;;  %vm312_vm1 = vcmask 261120   ;;  %v294_v7 = vld [vmem:[%s2875_s2] sm:$0x1]  ;;  %vm443_vm2 = vcmask 64512   ;;  %vm357_vm3 = vcmask 60416  }
  0x6e   : > { %1986 = vmatprep.subr.bf16.mxu1 %v2365_v0  ;;  %1988 = vmatprep.mubr.msk.bf16.mxu1 %vm2366_vm0, %v2365_v0  ;;  %v289_v4 = vpack.c.bf16 %v288_v3, %v288_v3  ;;  %v2622_v6 = vshrl.u32 %v296_v5, 7  ;;  %v295_v8 = vunpack.c.l.bf16 %v294_v7  ;;  %444 = vst.msk [vmem:[#allocation7] sm:$0xff] %vm443_vm2, %v2365_v0  ;;  %445 = vst.msk [vmem:[#allocation7 + $0x8] sm:$0xff] %vm443_vm2, %v2365_v0  ;;  %s2367_s30 = smov 120   ;;  %s2368_s24 = smov 96   ;;  %vm434_vm4 = vcmask 7168  }
  0x6f   : > { %1979 = vmatpush3.bf16.msra.mxu0 %v2160_v1  ;;  %446 = vst.msk [vmem:[#allocation7 + $0x10] sm:$0xff] %vm443_vm2, %v2365_v0  ;;  %447 = vst.msk [vmem:[#allocation7 + $0x18] sm:$0xff] %vm443_vm2, %v2365_v0  ;;  %s2369_s7 = smov 80   ;;  %s2370_s9 = smov 88   ;;  %v2374_v36 = vmov -1e+30  }
  0x70   : > { %1980 = vmatprep.subr.bf16.mxu0 %v2365_v0  ;;  %v298_v9 = vsub.s32 0, %v2622_v6  ;;  %s2371_s11 = smov 112   ;;  %s2372_s15 = smov 72   ;;  %435 = vst.msk [vmem:[#allocation5] sm:$0xff] %vm434_vm4, %v2374_v36  ;;  %436 = vst.msk [vmem:[#allocation5 + $0x8] sm:$0xff] %vm434_vm4, %v2374_v36  ;;  %v1177_v37 = vand.u32 127, %v296_v5 }
  0x71   : > { %s2373_s27 = smov 104   ;;  %437 = vst.msk [vmem:[#allocation5 + $0x10] sm:$0xff] %vm434_vm4, %v2374_v36  ;;  %438 = vst.msk [vmem:[#allocation5 + $0x18] sm:$0xff] %vm434_vm4, %v2374_v36  ;;  %v2375_v62 = vmov 0   ;;  %s2376_s14 = smov 64   ;;  %vm1292_vm6 = vcmask 1043456  }
  0x72   : > { %v299_v10 = vrot.slane %v295_v8, %v298_v9  ;;  %439 = vst.msk [vmem:[#allocation6] sm:$0xff] %vm434_vm4, %v2365_v0  ;;  %440 = vst.msk [vmem:[#allocation6 + $0x8] sm:$0xff] %vm434_vm4, %v2365_v0  ;;  %vm1178_vm5 = vcmp.ge.s32.totalorder %v2622_v6, %v1177_v37  ;;  %2158 = vset.pattern.permute.xlu0 %v2375_v62  ;;  %2159 = vset.pattern.permute.xlu1 %v2375_v62  ;;  %s2377_s10 = smov 56   ;;  %s2378_s16 = smov 48  }
  0x73   : > { %1981 = vmatpush3.bf16.msra.mxu0 %v2161_v2  ;;  %441 = vst.msk [vmem:[#allocation6 + $0x10] sm:$0xff] %vm434_vm4, %v2365_v0  ;;  %442 = vst.msk [vmem:[#allocation6 + $0x18] sm:$0xff] %vm434_vm4, %v2365_v0  ;;  %s2379_s17 = smov 40   ;;  %p2893_p12 = scmp.ne.s32.totalorder %s2889_s8, 0 }
  0x74   : > { %1992 = vmatprep.subr.bf16.mxu0 %v2365_v0 }
  0x76   : > { %1983 = vmatmul.mubr.msk.bf16.vlgmr.msra.gmra.mrb[0].mxu0 %vm312_vm1, %v289_v4 }
  0x77   : > { %1994 = vmatprep.mubr.msk.bf16.mxu0 %vm2366_vm0, %v2365_v0  ;;  %v2705_v63 = vld [vmem:[#allocation5] sm:$0xff]  ;;  %v2710_v3 = vld [vmem:[#allocation5 + $0x8] sm:$0xff] }
  0x78   : > { %v2720_v8 = vld [vmem:[#allocation5 + $0x10] sm:$0xff] }
 0x149   : > { %v350_v11 = vpop.f32.mrb[0].mxu0 }
 0x14a   : > { %v351_v12 = vadd.f32 %v350_v11, %v299_v10  ;;  %v1984_v13 = vpop.f32.mrb[1].mxu0 }
 0x14b   : > { %v353_v14 = vpop.f32.mrb[2].mxu0  ;;  %v2730_v13 = vld [vmem:[#allocation5 + $0x18] sm:$0xff] }
 0x14c   : > { %v2638_v15 = vpack.c.bf16 %v351_v12, %v351_v12  ;;  %v1985_v16 = vpop.f32.mrb[3].mxu0 }
 0x14e   : > { %376 = vrot.lane.b32.xlu1 %v2638_v15, %s2367_s30  ;;  %362 = vrot.lane.b32.xlu0 %v2638_v15, %s2368_s24  ;;  %358 = vst.msk [vmem:[#allocation2] sm:$0xf] %vm357_vm3, %v2638_v15  ;;  %s1947_s30 = sshll.u32 %s2350_s21, 7  ;;  %s285_s24 = scalar_lea.vmem [#allocation14], %s1909_s25 }
 0x14f   : > { %s1756_s21 = scalar_lea.sflag [#allocation10], %s2596_s13 }
 0x152   : > { %399 = vrot.lane.b32.xlu1 %v2638_v15, %s2369_s7  ;;  %381 = vrot.lane.b32.xlu0 %v2638_v15, %s2370_s9  ;;  %s1770_s7 = sshll.u32 %s285_s24, 4  ;;  %s2825_s7 = int_to_ptr.vmem [resolvable:$true] %s1770_s7 }
 0x153   : > { %s2272_s25 = scalar_lea.vmem %s2825_s7, 128 }
 0x154   : > { %p2273_p8 = scmp.ne.s32.totalorder %s2825_s7, %s2272_s25 }
 0x155   : > { %v430_v29 = vld [vmem:[#allocation2] sm:$0xf] }
 0x156   : > { %394 = vrot.lane.b32.xlu1 %v2638_v15, %s2371_s11  ;;  %417 = vrot.lane.b32.xlu0 %v2638_v15, %s2372_s15  ;;  %s2823_s15 = scalar_lea.hbm %s2878_s5, %s1947_s30  ;;  %p2274_p1 = pnand %p2273_p8, %p2893_p12 }
 0x158   : > { %p2275_p10 = pneg %p2274_p1 }
 0x15a   : > { %412 = vrot.lane.b32.xlu0 %v2638_v15, %s2373_s27  ;;  %s2380_s27 = smov [#allocation14]  }
 0x1c0   : > { %v377_v17 = vpop.permute.xlu1 %376  ;;  %v363_v18 = vpop.permute.xlu0 %362 }
 0x1c1   : > { %380 = vst.msk [vmem:[#allocation2 + $0x4] sm:$0xf] %vm357_vm3, %v377_v17  ;;  %369 = vst.msk [vmem:[#allocation3] sm:$0xf] %vm357_vm3, %v363_v18 }
 0x1c4   : > { %v400_v19 = vpop.permute.xlu1 %399  ;;  %v382_v20 = vpop.permute.xlu0 %381 }
 0x1c5   : > { %1919 = vst.msk [vmem:[#allocation3 + $0x8] sm:$0xf] %vm357_vm3, %v400_v19  ;;  %1917 = vst.msk [vmem:[#allocation3 + $0x4] sm:$0xf] %vm357_vm3, %v382_v20 }
 0x1c8   : > { %v395_v21 = vpop.permute.xlu1 %394  ;;  %v418_v22 = vpop.permute.xlu0 %417  ;;  %v982_v23 = vld [vmem:[#allocation3] sm:$0xf]  ;;  %v431_v32 = vld [vmem:[#allocation2 + $0x4] sm:$0xf] }
 0x1c9   : > { %398 = vst.msk [vmem:[#allocation2 + $0x8] sm:$0xf] %vm357_vm3, %v395_v21  ;;  %1921 = vst.msk [vmem:[#allocation3 + $0xc] sm:$0xf] %vm357_vm3, %v418_v22  ;;  %v994_v24 = vsel %vm443_vm2, %v982_v23, 0 }
 0x1ca   : > { %1987 = vmatpush3.bf16.xpose.msra.mxu1 %v994_v24 }
 0x1cb   : > { %1998 = vmatprep.subr.bf16.mxu1 %v2365_v0 }
 0x1cc   : > { %v413_v25 = vpop.permute.xlu0 %412  ;;  %v983_v26 = vld [vmem:[#allocation3 + $0x4] sm:$0xf]  ;;  %v984_v28 = vld [vmem:[#allocation3 + $0x8] sm:$0xf] }
 0x1cd   : > { %416 = vst.msk [vmem:[#allocation2 + $0xc] sm:$0xf] %vm357_vm3, %v413_v25  ;;  %v1040_v27 = vsel %vm443_vm2, %v983_v26, 0  ;;  %v1086_v30 = vsel %vm443_vm2, %v984_v28, 0 }
 0x1ce   : > { %1993 = vmatpush3.bf16.xpose.msra.mxu0 %v1040_v27 }
 0x1cf   : > { %2004 = vmatprep.subr.bf16.mxu0 %v2365_v0 }
 0x1d0   : > { %v985_v31 = vld [vmem:[#allocation3 + $0xc] sm:$0xf]  ;;  %v432_v34 = vld [vmem:[#allocation2 + $0x8] sm:$0xf] }
 0x1d1   : > { %1989 = vmatmul.mubr.msk.bf16.vlgmr.msra.gmra.mrb[0].mxu1 %vm443_vm2, %v430_v29  ;;  %v1132_v33 = vsel %vm443_vm2, %v985_v31, 0 }
 0x1d2   : > { %1999 = vmatpush3.bf16.xpose.msra.mxu1 %v1086_v30  ;;  %2000 = vmatprep.mubr.msk.bf16.mxu1 %vm2366_vm0, %v2365_v0 }
 0x1d3   : > { %2010 = vmatprep.subr.bf16.mxu1 %v2365_v0 }
 0x1d4   : > { %v433_v35 = vld [vmem:[#allocation2 + $0xc] sm:$0xf] }
 0x1d5   : > { %1995 = vmatmul.mubr.msk.bf16.vlgmr.msra.gmra.mrb[4].mxu0 %vm443_vm2, %v431_v32 }
 0x1d6   : > { %2005 = vmatpush3.bf16.xpose.msra.mxu0 %v1132_v33  ;;  %2006 = vmatprep.mubr.msk.bf16.mxu0 %vm2366_vm0, %v2365_v0 }
 0x1d7   : > { %2016 = vmatprep.subr.bf16.mxu0 %v2365_v0 }
 0x1d9   : > { %2001 = vmatmul.mubr.msk.bf16.vlgmr.msra.gmra.mrb[4].mxu1 %vm443_vm2, %v432_v34 }
 0x1da   : > { %2012 = vmatprep.mubr.msk.bf16.mxu1 %vm2366_vm0, %v2365_v0 }
 0x1dd   : > { %2007 = vmatmul.mubr.msk.bf16.vlgmr.msra.gmra.mrb[8].mxu0 %vm443_vm2, %v433_v35 }
 0x1de   : > { %2018 = vmatprep.mubr.msk.bf16.mxu0 %vm2366_vm0, %v2365_v0 }
 0x2a4   : > { %v1030_v38 = vpop.f32.mrb[0].mxu1 }
 0x2a5   : > { %v2692_v39 = vsel %vm1178_vm5, %v1030_v38, -1e+10  ;;  %v1990_v40 = vpop.f32.mrb[1].mxu1 }
 0x2a6   : > { %v1033_v41 = vpop.f32.mrb[2].mxu1  ;;  %v1189_v42 = vsel %vm443_vm2, %v2692_v39, -inf }
 0x2a7   : > { %1190 = vmax.xlane.f32.xlu1 %v1189_v42  ;;  %v1991_v43 = vpop.f32.mrb[3].mxu1 }
 0x2a8   : > { %v1076_v44 = vpop.f32.mrb[4].mxu0 }
 0x2a9   : > { %v1182_v45 = vsel %vm1178_vm5, %v1076_v44, -1e+10  ;;  %v1996_v46 = vpop.f32.mrb[5].mxu0 }
 0x2aa   : > { %v1079_v47 = vpop.f32.mrb[6].mxu0  ;;  %v1192_v48 = vsel %vm443_vm2, %v1182_v45, -inf }
 0x2ab   : > { %1193 = vmax.xlane.f32.xlu0 %v1192_v48  ;;  %v1997_v49 = vpop.f32.mrb[7].mxu0 }
 0x2ac   : > { %v1122_v50 = vpop.f32.mrb[4].mxu1 }
 0x2ad   : > { %v1183_v51 = vsel %vm1178_vm5, %v1122_v50, -1e+10  ;;  %v2002_v52 = vpop.f32.mrb[5].mxu1 }
 0x2ae   : > { %v1125_v53 = vpop.f32.mrb[6].mxu1  ;;  %v1195_v54 = vsel %vm443_vm2, %v1183_v51, -inf }
 0x2af   : > { %v2003_v55 = vpop.f32.mrb[7].mxu1  ;;  %1196 = vmax.xlane.f32.xlu0 %v1195_v54 }
 0x2b0   : > { %v1168_v56 = vpop.f32.mrb[8].mxu0 }
 0x2b1   : > { %v1184_v57 = vsel %vm1178_vm5, %v1168_v56, -1e+10  ;;  %v2008_v58 = vpop.f32.mrb[9].mxu0 }
 0x2b2   : > { %v1171_v59 = vpop.f32.mrb[10].mxu0  ;;  %v1198_v60 = vsel %vm443_vm2, %v1184_v57, -inf }
 0x2b3   : > { %1199 = vmax.xlane.f32.xlu1 %v1198_v60  ;;  %v2009_v61 = vpop.f32.mrb[11].mxu0 }
 0x334   : > { %v1191_v1 = vpop.xlane.xlu1 %1190 }
 0x335   : > { %v2708_v2 = vmax.f32 %v2705_v63, %v1191_v1 }
 0x337   : > { %v1205_v4 = vsub.f32 %v2705_v63, %v2708_v2  ;;  %1510 = vst.msk [vmem:[#allocation5] sm:$0xff] %vm434_vm4, %v2708_v2  ;;  %1219 = vperm.xlu0 %2158, %v2708_v2  }
 0x338   : > { %v1194_v5 = vpop.xlane.xlu0 %1193 }
 0x339   : > { %v2718_v7 = vmax.f32 %v2710_v3, %v1194_v5  ;;  %v1209_v58 = vmul.f32 1.442695, %v1205_v4 }
 0x33b   : > { %v1206_v10 = vsub.f32 %v2710_v3, %v2718_v7  ;;  %1511 = vst.msk [vmem:[#allocation5 + $0x8] sm:$0xff] %vm434_vm4, %v2718_v7  ;;  %1224 = vperm.xlu1 %2159, %v2718_v7   ;;  %v1257_v3 = vld [vmem:[#allocation6] sm:$0xff]  ;;  %v1258_v7 = vld [vmem:[#allocation6 + $0x8] sm:$0xff] }
 0x33c   : > { %v1197_v11 = vpop.xlane.xlu0 %1196 }
 0x33d   : > { %v2728_v12 = vmax.f32 %v2720_v8, %v1197_v11  ;;  %v1211_v59 = vmul.f32 1.442695, %v1206_v10 }
 0x33f   : > { %v1207_v14 = vsub.f32 %v2720_v8, %v2728_v12  ;;  %1512 = vst.msk [vmem:[#allocation5 + $0x10] sm:$0xff] %vm434_vm4, %v2728_v12  ;;  %370 = vrot.lane.b32.xlu1 %v2638_v15, %s2376_s14  ;;  %s2276_s14 = sshll.u32 %s2380_s27, 4  ;;  %s2277_s14 = int_to_ptr.vmem [resolvable:$false] %s2276_s14 }
 0x340   : > { %v1200_v16 = vpop.xlane.xlu1 %1199  ;;  %p2279_p3 = scmp.lt.s32.totalorder %s2825_s7, %s2277_s14 }
 0x341   : > { %v2738_v17 = vmax.f32 %v2730_v13, %v1200_v16  ;;  %v1213_v60 = vmul.f32 1.442695, %v1207_v14 }
 0x343   : > { %v1208_v18 = vsub.f32 %v2730_v13, %v2738_v17  ;;  %1513 = vst.msk [vmem:[#allocation5 + $0x18] sm:$0xff] %vm434_vm4, %v2738_v17  ;;  %1229 = vperm.xlu1 %2159, %v2728_v12   ;;  %v1259_v13 = vld [vmem:[#allocation6 + $0x10] sm:$0xff] }
 0x345   : > { %v1215_v61 = vmul.f32 1.442695, %v1208_v18  ;;  %v1260_v18 = vld [vmem:[#allocation6 + $0x18] sm:$0xff] }
 0x347   : > { %1234 = vperm.xlu1 %2159, %v2738_v17  }
 0x34b   : > { %388 = vrot.lane.b32.xlu1 %v2638_v15, %s2377_s10  ;;  %s2278_s10 = scalar_lea.vmem %s2277_s14, 256 }
 0x34c   : > { %p2280_p5 = scmp.lt.s32.totalorder %s2278_s10, %s2272_s25 }
 0x34e   : > { %p2281_p9 = por %p2280_p5, %p2279_p3 }
 0x34f   : > { %406 = vrot.lane.b32.xlu1 %v2638_v15, %s2378_s16 }
 0x350   : > { %p2282_p11 = pnand %p2281_p9, %p2275_p10 }
 0x353   : > { %424 = vrot.lane.b32.xlu1 %v2638_v15, %s2379_s17 }
 0x3b6   : > { %v1220_v19 = vpop.permute.xlu0 %1219 }
 0x3b7   : > { %v1237_v20 = vsub.f32 %v2692_v39, %v1220_v19 }
 0x3b9   : > { %v1241_v21 = vpack.c.bf16 %v1237_v20, %v1237_v20 }
 0x3ba   : > { %v1225_v22 = vpop.permute.xlu1 %1224 }
 0x3bb   : > { %v1246_v23 = vmul.bf16 1069105081, %v1241_v21  ;;  %v1238_v24 = vsub.f32 %v1182_v45, %v1225_v22 }
 0x3bd   : > { %2162 = vpow.bf16 %v1246_v23  ;;  %v1242_v25 = vpack.c.bf16 %v1238_v24, %v1238_v24 }
 0x3be   : > { %v371_v26 = vpop.permute.xlu1 %370 }
 0x3bf   : > { %v1249_v27 = vmul.bf16 1069105081, %v1242_v25  ;;  %375 = vst.msk [vmem:[#allocation4] sm:$0xf] %vm357_vm3, %v371_v26  ;;  %v1554_v25 = vld [vmem:[#allocation13] sm:$0xf] }
 0x3c1   : > { %2164 = vpow.bf16 %v1249_v27  ;;  %v1607_v27 = vsel %vm1292_vm6, %v1554_v25, 0 }
 0x3c2   : > { %v1230_v28 = vpop.permute.xlu1 %1229 }
 0x3c3   : > { %v1239_v29 = vsub.f32 %v1183_v51, %v1230_v28  ;;  %v1556_v28 = vld [vmem:[#allocation13 + $0x4] sm:$0xf] }
 0x3c5   : > { %v1243_v30 = vpack.c.bf16 %v1239_v29, %v1239_v29 }
 0x3c6   : > { %v1235_v31 = vpop.permute.xlu1 %1234  ;;  %v986_v15 = vld [vmem:[#allocation4] sm:$0xf] }
 0x3c7   : > { %v1252_v32 = vmul.bf16 1069105081, %v1243_v30  ;;  %v1240_v33 = vsub.f32 %v1184_v57, %v1235_v31  ;;  %v1294_v34 = vsel %vm1292_vm6, %v986_v15, 0  ;;  %v1561_v30 = vsel %vm1292_vm6, %v1556_v28, 0 }
 0x3c8   : > { %v2163_v35 = vpop.eup %2162  ;;  %2011 = vmatpush3.bf16.msra.mxu1 %v1294_v34 }
 0x3c9   : > { %2166 = vpow.bf16 %v1252_v32  ;;  %v1244_v36 = vpack.c.bf16 %v1240_v33, %v1240_v33  ;;  %v1265_v37 = vunpack.c.l.bf16 %v2163_v35  ;;  %2022 = vmatprep.subr.bf16.mxu1 %v2365_v0  ;;  %v1474_v33 = vld [vmem:[#allocation7] sm:$0xff] }
 0x3ca   : > { %v389_v38 = vpop.permute.xlu1 %388 }
 0x3cb   : > { %v1255_v39 = vmul.bf16 1069105081, %v1244_v36  ;;  %1918 = vst.msk [vmem:[#allocation4 + $0x4] sm:$0xf] %vm357_vm3, %v389_v38  ;;  %2013 = vmatmul.mubr.msk.bf16.vlgmr.msra.gmra.mrb[8].mxu1 %vm443_vm2, %v2163_v35  ;;  %v1269_v40 = vsel %vm443_vm2, %v1265_v37, 0.0 }
 0x3cc   : > { %v2165_v41 = vpop.eup %2164  ;;  %1270 = vadd.xlane.f32.xlu0 %v1269_v40  ;;  %2024 = vmatprep.mubr.msk.bf16.mxu1 %vm2366_vm0, %v2365_v0 }
 0x3cd   : > { %2168 = vpow.bf16 %v1255_v39  ;;  %v1266_v42 = vunpack.c.l.bf16 %v2165_v41 }
 0x3ce   : > { %v407_v43 = vpop.permute.xlu1 %406  ;;  %2170 = vpow2.f32 %v1209_v58 }
 0x3cf   : > { %1920 = vst.msk [vmem:[#allocation4 + $0x8] sm:$0xf] %vm357_vm3, %v407_v43  ;;  %v1272_v44 = vsel %vm443_vm2, %v1266_v42, 0.0  ;;  %2172 = vpow2.f32 %v1211_v59 }
 0x3d0   : > { %1273 = vadd.xlane.f32.xlu1 %v1272_v44  ;;  %2174 = vpow2.f32 %v1213_v60  ;;  %v1476_v44 = vld [vmem:[#allocation7 + $0x10] sm:$0xff] }
 0x3d1   : > { %2176 = vpow2.f32 %v1215_v61 }
 0x3d2   : > { %v425_v45 = vpop.permute.xlu1 %424  ;;  %v987_v46 = vld [vmem:[#allocation4 + $0x4] sm:$0xf] }
 0x3d3   : > { %1922 = vst.msk [vmem:[#allocation4 + $0xc] sm:$0xf] %vm357_vm3, %v425_v45  ;;  %v1340_v47 = vsel %vm1292_vm6, %v987_v46, 0 }
 0x3d4   : > { %v2167_v48 = vpop.eup %2166  ;;  %2017 = vmatpush3.bf16.msra.mxu0 %v1340_v47 }
 0x3d5   : > { %v1267_v49 = vunpack.c.l.bf16 %v2167_v48  ;;  %2028 = vmatprep.subr.bf16.mxu0 %v2365_v0 }
 0x3d6   : > { %v988_v50 = vld [vmem:[#allocation4 + $0x8] sm:$0xf] }
 0x3d7   : > { %2019 = vmatmul.mubr.msk.bf16.vlgmr.msra.gmra.mrb[12].mxu0 %vm443_vm2, %v2165_v41  ;;  %v1275_v51 = vsel %vm443_vm2, %v1267_v49, 0.0  ;;  %v1386_v52 = vsel %vm1292_vm6, %v988_v50, 0  ;;  %v1475_v41 = vld [vmem:[#allocation7 + $0x8] sm:$0xff] }
 0x3d8   : > { %v2169_v53 = vpop.eup %2168  ;;  %1276 = vadd.xlane.f32.xlu0 %v1275_v51  ;;  %2023 = vmatpush3.bf16.msra.mxu1 %v1386_v52  ;;  %v1477_v52 = vld [vmem:[#allocation7 + $0x18] sm:$0xff] }
 0x3d9   : > { %v1268_v54 = vunpack.c.l.bf16 %v2169_v53  ;;  %2030 = vmatprep.mubr.msk.bf16.mxu0 %vm2366_vm0, %v2365_v0  ;;  %2034 = vmatprep.subr.bf16.mxu1 %v2365_v0  ;;  %v2171_v62 = vpop.eup %2170 }
 0x3da   : > { %v989_v55 = vld [vmem:[#allocation4 + $0xc] sm:$0xf]  ;;  %v2173_v63 = vpop.eup %2172  ;;  %v1261_v4 = vmul.f32 %v2171_v62, %v1257_v3 }
 0x3db   : > { %2025 = vmatmul.mubr.msk.bf16.vlgmr.msra.gmra.mrb[12].mxu1 %vm443_vm2, %v2167_v48  ;;  %v1278_v56 = vsel %vm443_vm2, %v1268_v54, 0.0  ;;  %v1432_v57 = vsel %vm1292_vm6, %v989_v55, 0  ;;  %v2175_v1 = vpop.eup %2174  ;;  %v1262_v10 = vmul.f32 %v2173_v63, %v1258_v7 }
 0x3dc   : > { %1279 = vadd.xlane.f32.xlu1 %v1278_v56  ;;  %2029 = vmatpush3.bf16.msra.mxu0 %v1432_v57  ;;  %v2177_v2 = vpop.eup %2176  ;;  %v1263_v16 = vmul.f32 %v2175_v1, %v1259_v13 }
 0x3dd   : > { %2040 = vmatprep.subr.bf16.mxu0 %v2365_v0  ;;  %2036 = vmatprep.mubr.msk.bf16.mxu1 %vm2366_vm0, %v2365_v0  ;;  %v1264_v21 = vmul.f32 %v2177_v2, %v1260_v18 }
 0x3de   : > { %2035 = vmatpush3.bf16.msra.mxu1 %v1561_v30 }
 0x3df   : > { %2031 = vmatmul.mubr.msk.bf16.vlgmr.msra.gmra.mrb[16].mxu0 %vm443_vm2, %v2169_v53  ;;  %2046 = vmatprep.subr.bf16.mxu1 %v2365_v0 }
 0x3e0   : > { %2042 = vmatprep.mubr.msk.bf16.mxu0 %vm2366_vm0, %v2365_v0  ;;  %2041 = vmatpush3.bf16.msra.mxu0 %v1607_v27 }
 0x3e1   : > { %2052 = vmatprep.subr.bf16.mxu0 %v2365_v0 }
 0x3ed   : > { %1480 = vperm.xlu1 %2159, %v2171_v62  }
 0x3ee   : > { %1485 = vperm.xlu0 %2158, %v2173_v63  }
 0x3f1   : > { %1490 = vperm.xlu1 %2159, %v2175_v1  }
 0x3f2   : > { %1495 = vperm.xlu0 %2158, %v2177_v2  }
 0x459   : > { %v1271_v5 = vpop.xlane.xlu0 %1270 }
 0x45a   : > { %v1281_v8 = vadd.f32 %v1271_v5, %v1261_v4  ;;  %v1699_v4 = vld [vmem:[#allocation13 + $0xc] sm:$0xf] }
 0x45c   : > { %1285 = vst.msk [vmem:[#allocation6] sm:$0xff] %vm434_vm4, %v1281_v8  ;;  %v1704_v8 = vsel %vm1292_vm6, %v1699_v4, 0 }
 0x45d   : > { %v1274_v11 = vpop.xlane.xlu1 %1273 }
 0x45e   : > { %v1282_v12 = vadd.f32 %v1274_v11, %v1262_v10 }
 0x460   : > { %1286 = vst.msk [vmem:[#allocation6 + $0x8] sm:$0xff] %vm434_vm4, %v1282_v12  ;;  %v1650_v12 = vld [vmem:[#allocation13 + $0x8] sm:$0xf] }
 0x463   : > { %v1514_v14 = vld [vmem:[#allocation6] sm:$0xff] }
 0x464   : > { %2178 = vrcp.f32 %v1514_v14 }
 0x465   : > { %v1277_v17 = vpop.xlane.xlu0 %1276 }
 0x466   : > { %v1283_v19 = vadd.f32 %v1277_v17, %v1263_v16  ;;  %v1655_v16 = vsel %vm1292_vm6, %v1650_v12, 0 }
 0x467   : > { %v1515_v20 = vld [vmem:[#allocation6 + $0x8] sm:$0xff] }
 0x468   : > { %1287 = vst.msk [vmem:[#allocation6 + $0x10] sm:$0xff] %vm434_vm4, %v1283_v19  ;;  %2180 = vrcp.f32 %v1515_v20 }
 0x469   : > { %v1280_v22 = vpop.xlane.xlu1 %1279 }
 0x46a   : > { %v1284_v23 = vadd.f32 %v1280_v22, %v1264_v21 }
 0x46c   : > { %1288 = vst.msk [vmem:[#allocation6 + $0x18] sm:$0xff] %vm434_vm4, %v1284_v23 }
 0x46d   : > { %v1481_v34 = vpop.permute.xlu1 %1480  ;;  %v1486_v42 = vpop.permute.xlu0 %1485 }
 0x46e   : > { %v2179_v24 = vpop.eup %2178  ;;  %v1498_v35 = vmul.f32 %v1481_v34, %v1474_v33  ;;  %v1499_v43 = vmul.f32 %v1486_v42, %v1475_v41 }
 0x46f   : > { %1528 = vperm.xlu0 %2158, %v2179_v24   ;;  %v1516_v26 = vld [vmem:[#allocation6 + $0x10] sm:$0xff] }
 0x470   : > { %2182 = vrcp.f32 %v1516_v26 }
 0x471   : > { %v1491_v45 = vpop.permute.xlu1 %1490  ;;  %v1496_v53 = vpop.permute.xlu0 %1495 }
 0x472   : > { %v2181_v29 = vpop.eup %2180  ;;  %v1500_v50 = vmul.f32 %v1491_v45, %v1476_v44  ;;  %v1501_v58 = vmul.f32 %v1496_v53, %v1477_v52 }
 0x473   : > { %1533 = vperm.xlu1 %2159, %v2181_v29   ;;  %v1517_v31 = vld [vmem:[#allocation6 + $0x18] sm:$0xff] }
 0x474   : > { %2184 = vrcp.f32 %v1517_v31 }
 0x47a   : > { %v2183_v15 = vpop.eup %2182 }
 0x47b   : > { %1538 = vperm.xlu1 %2159, %v2183_v15  }
 0x47e   : > { %v2185_v32 = vpop.eup %2184 }
 0x47f   : > { %1543 = vperm.xlu0 %2158, %v2185_v32   ;;  %v1747_v32 = vld [vmem:[%s2877_s4] sm:$0x1] }
 0x480   : > { %v1748_v33 = vunpack.c.l.bf16 %v1747_v32 }
 0x49e   : > { %v1330_v36 = vpop.f32.mrb[8].mxu1 }
 0x49f   : > { %v1502_v37 = vadd.f32 %v1498_v35, %v1330_v36  ;;  %v2014_v38 = vpop.f32.mrb[9].mxu1 }
 0x4a0   : > { %v1333_v39 = vpop.f32.mrb[10].mxu1 }
 0x4a1   : > { %1506 = vst.msk [vmem:[#allocation7] sm:$0xff] %vm443_vm2, %v1502_v37  ;;  %v2015_v40 = vpop.f32.mrb[11].mxu1  ;;  %v1752_v39 = vrot.slane %v1748_v33, %v298_v9 }
 0x4a8   : > { %v1522_v3 = vld [vmem:[#allocation7] sm:$0xff] }
 0x4aa   : > { %v1376_v46 = vpop.f32.mrb[12].mxu0 }
 0x4ab   : > { %v1503_v47 = vadd.f32 %v1499_v43, %v1376_v46  ;;  %v2020_v48 = vpop.f32.mrb[13].mxu0 }
 0x4ac   : > { %v1379_v49 = vpop.f32.mrb[14].mxu0 }
 0x4ad   : > { %1507 = vst.msk [vmem:[#allocation7 + $0x8] sm:$0xff] %vm443_vm2, %v1503_v47  ;;  %v2021_v51 = vpop.f32.mrb[15].mxu0 }
 0x4ae   : > { %v1422_v54 = vpop.f32.mrb[12].mxu1 }
 0x4af   : > { %v1504_v55 = vadd.f32 %v1500_v50, %v1422_v54  ;;  %v2026_v56 = vpop.f32.mrb[13].mxu1 }
 0x4b0   : > { %v1425_v57 = vpop.f32.mrb[14].mxu1 }
 0x4b1   : > { %1508 = vst.msk [vmem:[#allocation7 + $0x10] sm:$0xff] %vm443_vm2, %v1504_v55  ;;  %v2027_v59 = vpop.f32.mrb[15].mxu1 }
 0x4b2   : > { %v1468_v60 = vpop.f32.mrb[16].mxu0 }
 0x4b3   : > { %v1505_v61 = vadd.f32 %v1501_v58, %v1468_v60  ;;  %v2032_v62 = vpop.f32.mrb[17].mxu0 }
 0x4b4   : > { %v1471_v63 = vpop.f32.mrb[18].mxu0  ;;  %v1523_v11 = vld [vmem:[#allocation7 + $0x8] sm:$0xff] }
 0x4b5   : > { %1509 = vst.msk [vmem:[#allocation7 + $0x18] sm:$0xff] %vm443_vm2, %v1505_v61  ;;  %v2033_v1 = vpop.f32.mrb[19].mxu0 }
 0x4b8   : > { %v1524_v17 = vld [vmem:[#allocation7 + $0x10] sm:$0xff] }
 0x4bc   : > { %v1525_v22 = vld [vmem:[#allocation7 + $0x18] sm:$0xff] }
 0x4ee   : > { %v1529_v2 = vpop.permute.xlu0 %1528 }
 0x4ef   : > { %v1546_v5 = vmul.f32 %v1529_v2, %v1522_v3 }
 0x4f1   : > { %v1550_v7 = vpack.c.bf16 %v1546_v5, %v1546_v5 }
 0x4f2   : > { %v1534_v10 = vpop.permute.xlu1 %1533 }
 0x4f3   : > { %v1547_v13 = vmul.f32 %v1534_v10, %v1523_v11  ;;  %2043 = vmatmul.mubr.msk.bf16.vlgmr.msra.gmra.mrb[20].mxu0 %vm443_vm2, %v1550_v7 }
 0x4f4   : > { %2053 = vmatpush3.bf16.msra.mxu0 %v1704_v8  ;;  %2054 = vmatprep.mubr.msk.bf16.mxu0 %vm2366_vm0, %v2365_v0 }
 0x4f5   : > { %v1551_v14 = vpack.c.bf16 %v1547_v13, %v1547_v13 }
 0x4f7   : > { %2037 = vmatmul.mubr.msk.bf16.vlgmr.msra.gmra.mrb[16].mxu1 %vm443_vm2, %v1551_v14 }
 0x4f8   : > { %2047 = vmatpush3.bf16.msra.mxu1 %v1655_v16  ;;  %2048 = vmatprep.mubr.msk.bf16.mxu1 %vm2366_vm0, %v2365_v0 }
 0x4fa   : > { %v1539_v18 = vpop.permute.xlu1 %1538 }
 0x4fb   : > { %v1548_v19 = vmul.f32 %v1539_v18, %v1524_v17 }
 0x4fd   : > { %v1552_v20 = vpack.c.bf16 %v1548_v19, %v1548_v19 }
 0x4fe   : > { %v1544_v21 = vpop.permute.xlu0 %1543 }
 0x4ff   : > { %v1549_v23 = vmul.f32 %v1544_v21, %v1525_v22  ;;  %2049 = vmatmul.mubr.msk.bf16.vlgmr.msra.gmra.mrb[20].mxu1 %vm443_vm2, %v1552_v20 }
 0x501   : > { %v1553_v24 = vpack.c.bf16 %v1549_v23, %v1549_v23 }
 0x503   : > { %2055 = vmatmul.mubr.msk.bf16.vlgmr.msra.gmra.mrb[24].mxu0 %vm443_vm2, %v1553_v24 }
 0x5c6   : > { %v1643_v25 = vpop.f32.mrb[20].mxu0 }
 0x5c7   : > { %v2044_v26 = vpop.f32.mrb[21].mxu0 }
 0x5c8   : > { %v1646_v27 = vpop.f32.mrb[22].mxu0 }
 0x5c9   : > { %v2045_v28 = vpop.f32.mrb[23].mxu0 }
 0x5ca   : > { %v1597_v29 = vpop.f32.mrb[16].mxu1 }
 0x5cb   : > { %v1644_v0 = vadd.f32 %v1643_v25, %v1597_v29  ;;  %v2038_v30 = vpop.f32.mrb[17].mxu1 }
 0x5cc   : > { %v1600_v31 = vpop.f32.mrb[18].mxu1 }
 0x5cd   : > { %v2039_v15 = vpop.f32.mrb[19].mxu1 }
 0x5d2   : > { %v1691_v34 = vpop.f32.mrb[20].mxu1 }
 0x5d3   : > { %v1697_v35 = vadd.f32 %v1691_v34, %v1644_v0  ;;  %v2050_v36 = vpop.f32.mrb[21].mxu1 }
 0x5d4   : > { %v1694_v37 = vpop.f32.mrb[22].mxu1 }
 0x5d5   : > { %v2051_v38 = vpop.f32.mrb[23].mxu1 }
 0x5d6   : > { %v1740_v40 = vpop.f32.mrb[24].mxu0 }
 0x5d7   : > { %v1746_v41 = vadd.f32 %v1740_v40, %v1697_v35  ;;  %v2056_v42 = vpop.f32.mrb[25].mxu0 }
 0x5d8   : > { %v1743_v43 = vpop.f32.mrb[26].mxu0 }
 0x5d9   : > { %v1753_v44 = vadd.f32 %v1752_v39, %v1746_v41  ;;  %v2057_v45 = vpop.f32.mrb[27].mxu0 }
 0x5db   : > { %1754 = vst.msk [vmem:[%s285_s24] sm:$0xff] %vm312_vm1, %v1753_v44 }
 0x5dc   : > { %2285 = shalt.err (!%p2282_p11)
}
 0x5dd   : > { %s2286_s13 = scalar_lea.hbm %s2823_s15, 128  ;;  %s2290_s26 = scalar_lea.hbm %s2878_s5, 256 }
 0x5de   : > { %p2287_p0 = scmp.ne.s32.totalorder %s2823_s15, %s2286_s13  ;;  %p2291_p6 = scmp.lt.u32.totalorder %s2823_s15, %s2878_s5 }
 0x5df   : > { %p2292_p7 = scmp.lt.u32.totalorder %s2290_s26, %s2286_s13  ;;  %p2294_p8 = scmp.lt.u32.totalorder %s2286_s13, %s2823_s15 }
 0x5e0   : > { %p2288_p4 = pnand %p2287_p0, %p2893_p12 }
 0x5e1   : > { %p2293_p2 = por %p2292_p7, %p2291_p6 }
 0x5e2   : > { %p2289_p13 = pneg %p2288_p4 }
 0x5e3   : > { %p2295_p1 = por %p2294_p8, %p2293_p2 }
 0x5e5   : > { %p2296_p10 = pnand %p2295_p1, %p2289_p13 }
 0x5e7   : > { %2299 = shalt.err (!%p2296_p10)
}
 0x5e8   : > { %2068 = dma.vmem_to_hbm [thread:$0]  (%p2893_p12), %s2825_s7, 128, %s2823_s15, %s1756_s21  }
 0x5e9 PF: > { %s1782_s24 = sand.u32 1, %s2338_s18   ;;  %p2894_p3 = scmp.ne.s32.totalorder %s2886_s29, 0 }
 0x5ea   : > { %p2895_p5 = scmp.ge.s32.totalorder %s2358_s23, 2  ;;  %s1783_s9 = scalar_lea.sflag [#allocation10], %s1782_s24 }
 0x5ec   : > { %p2082_p9 = pnand %p2895_p5, %p2894_p3 }
 0x5ee   : > { %2333 = dma.done.wait (!%p2082_p9), %s1783_s9, 128  }
 0x5ef   : > { %2335 = vsyncadd (!%p2082_p9), %s1783_s9, 4294967168  ;;  %s22_s23 = sadd.s32 1, %s2358_s23   ;;  %s2896_s18 = smov %s2342_s19 }
 0x5f0   : > { %p19_p11 = scmp.ge.s32.totalorder %s22_s23, 4   ;;  %s2897_s19 = smov %s2346_s20 }
 0x5f1   : > { %s2898_s20 = smov %s2553_s6  ;;  %s2899_s21 = smov %s2354_s22 }
 0x5f2   : > { %s2900_s22 = smov %s2902_s12  ;;  %21 = sbr.rel (!%p19_p11) target bundleno = 7 (0x7), region = 127 }
 0x5f9   :  { %1788 = vsyncpa [#allocation9], 1 }
 0x5fa   :  { %1790 = vsyncpa [#allocation9 + $0x1], 1 }
 0x5fb   :  { %1791 = vsyncpa [#allocation12], 1 }
 0x5fc   :  { %1792 = vsyncpa [#allocation10], 1 }
 0x5fd   :  { %1794 = vsyncpa [#allocation10 + $0x1], 1 }

// kernel: tpu_custom_call.1
= control target key start
LH: loop header
LB: loop body
LE: loop exit
PB: predicated region body
PF: predicated region fallthrough
CT: control target
= control target key end

     0   :  { %10 = vsyncpa [#allocation9], 0  ;;  %s2873_s0 = inlined_call_operand.hbm [shape: f32[2,8,32], index: 0, kind: input, shape index: {}]   ;;  %s2874_s1 = inlined_call_operand.hbm [shape: bf16[32,96], index: 1, kind: input, shape index: {}]   ;;  %s2875_s2 = inlined_call_operand.vmem [shape: bf16[1,96], index: 2, kind: input, shape index: {}]   ;;  %s2876_s3 = inlined_call_operand.hbm [shape: bf16[4,8,32], index: 3, kind: input, shape index: {}]   ;;  %s2877_s4 = inlined_call_operand.vmem [shape: bf16[1,32], index: 4, kind: input, shape index: {}]   ;;  %s2878_s5 = inlined_call_operand.hbm [shape: f32[2,8,32], index: 5, kind: output, shape index: {}]  }
   0x1   :  { %12 = vsyncpa [#allocation9 + $0x1], 0 }
   0x2   :  { %13 = vsyncpa [#allocation12], 0 }
   0x3   :  { %14 = vsyncpa [#allocation10], 0 }
   0x4   :  { %16 = vsyncpa [#allocation10 + $0x1], 0  ;;  %s2411_s18 = smov 0   ;;  %s2413_s19 = smov 0  }
   0x5   :  { %s2415_s20 = smov 0   ;;  %s2417_s21 = smov 0  }
   0x6   :  { %s2419_s22 = smov 0   ;;  %s2421_s23 = smov 0  }
   0x7 LB: > { %s1900_s24 = sadd.s32 4294967295, %s2358_s23   ;;  %s1901_s25 = sadd.s32 4294967294, %s2358_s23   ;;  %s2358_s23 = sphi %s2421_s23, %s22_s23   ;;  %s2354_s22 = sphi %s2419_s22, %s2900_s22   ;;  %s2350_s21 = sphi %s2417_s21, %s2899_s21   ;;  %s2346_s20 = sphi %s2415_s20, %s2898_s20   ;;  %s2342_s19 = sphi %s2413_s19, %s2897_s19   ;;  %s2338_s18 = sphi %s2411_s18, %s2896_s18  }
   0x8   : > { %p56_p0 = scmp.ne.s32.totalorder %s2342_s19, %s2338_s18  ;;  %p2445_p1 = scmp.eq.s32.totalorder %s1900_s24, 0 }
   0x9   : > { %p2449_p2 = scmp.eq.s32.totalorder %s1900_s24, 1  ;;  %p172_p3 = scmp.eq.s32.totalorder %s1901_s25, 1 }
   0xa   : > { %s2883_s26 = scalar_select %p2445_p1, 1, 0 }
   0xb   : > { %p2455_p4 = por %p2445_p1, %p56_p0  ;;  %p1902_p5 = scmp.ge.s32.totalorder %s2358_s23, 1 }
   0xc   : > { %p2460_p6 = por %p172_p3, %p56_p0  ;;  %p179_p7 = scmp.lt.s32.totalorder %s2358_s23, 3 }
   0xd   : > { %s2885_s28 = scalar_select %p2455_p4, 1, 0 }
   0xe   : > { %s2886_s29 = scalar_select %p2460_p6, 1, 0 }
   0xf   : > { %p2465_p8 = pnand %p1902_p5, %p179_p7  ;;  %s2360_s6 = smov [#allocation11]  }
  0x10   : > { %s191_s7 = sshll.u32 %s2360_s6, 4  ;;  %s2361_s9 = smov [#allocation13]   ;;  %s2469_s7 = int_to_ptr.vmem [resolvable:$true] %s191_s7 }
  0x11   : > { %p2070_p9 = pneg %p2465_p8  ;;  %s207_s10 = sshll.u32 %s2361_s9, 4  ;;  %s2480_s10 = int_to_ptr.vmem [resolvable:$true] %s207_s10 }
  0x12   : > { %s2186_s13 = scalar_lea.hbm %s2874_s1, 256 }
  0x13   : > { %p2476_p11 = pnand %p2070_p9, %p2445_p1  ;;  %p2187_p12 = scmp.ne.s32.totalorder %s2874_s1, %s2186_s13 }
  0x14   : > { %p2193_p5 = scmp.lt.u32.totalorder %s2186_s13, %s2874_s1 }
  0x15   : > { %p2188_p13 = pneg %p2476_p11 }
  0x17   : > { %p2189_p0 = pnand %p2188_p13, %p2187_p12 }
  0x19   : > { %p2190_p3 = pneg %p2189_p0 }
  0x1b   : > { %p2195_p7 = pnand %p2193_p5, %p2190_p3 }
  0x1d   : > { %2198 = shalt.err (!%p2195_p7)
}
  0x1e   : > { %s2199_s24 = scalar_lea.vmem %s2469_s7, 256  ;;  %p2207_p1 = scmp.lt.s32.totalorder %s2469_s7, %s2469_s7 }
  0x1f   : > { %p2200_p9 = scmp.ne.s32.totalorder %s2469_s7, %s2199_s24  ;;  %p2208_p12 = scmp.lt.s32.totalorder %s2199_s24, %s2199_s24 }
  0x21   : > { %p2202_p10 = pnand %p2200_p9, %p2188_p13  ;;  %p2209_p0 = por %p2208_p12, %p2207_p1 }
  0x23   : > { %p2203_p6 = pneg %p2202_p10 }
  0x25   : > { %p2210_p4 = pnand %p2209_p0, %p2203_p6 }
  0x27   : > { %2213 = shalt.err (!%p2210_p4)
}
  0x28   : > { %s2362_s25 = smov 64   ;;  %s2363_s6 = smov 4  }
  0x29   : > { %2073 = dma.hbm_to_vmem [thread:$0]  (!%p2476_p11), %s2874_s1, 256, %s2469_s7, [#allocation12], %s2362_s25, %s2362_s25, %s2363_s6  }
  0x2a   : > { %s2214_s14 = scalar_lea.hbm %s2876_s3, 256 }
  0x2b   : > { %p2215_p1 = scmp.ne.s32.totalorder %s2876_s3, %s2214_s14  ;;  %p2221_p10 = scmp.lt.u32.totalorder %s2214_s14, %s2876_s3 }
  0x2d   : > { %p2217_p4 = pnand %p2215_p1, %p2188_p13 }
  0x2f   : > { %p2218_p6 = pneg %p2217_p4 }
  0x31   : > { %p2223_p3 = pnand %p2221_p10, %p2218_p6 }
  0x33   : > { %2226 = shalt.err (!%p2223_p3)
}
  0x34   : > { %s2227_s7 = scalar_lea.vmem %s2480_s10, 256  ;;  %p2235_p12 = scmp.lt.s32.totalorder %s2480_s10, %s2480_s10 }
  0x35   : > { %p2228_p5 = scmp.ne.s32.totalorder %s2480_s10, %s2227_s7  ;;  %p2236_p0 = scmp.lt.s32.totalorder %s2227_s7, %s2227_s7 }
  0x37   : > { %p2230_p7 = pnand %p2228_p5, %p2188_p13  ;;  %p2237_p1 = por %p2236_p0, %p2235_p12 }
  0x39   : > { %p2231_p9 = pneg %p2230_p7 }
  0x3b   : > { %p2238_p4 = pnand %p2237_p1, %p2231_p9 }
  0x3d   : > { %2241 = shalt.err (!%p2238_p4)
}
  0x3e   : > { %2076 = dma.hbm_to_vmem [thread:$0]  (!%p2476_p11), %s2876_s3, 256, %s2480_s10, [#allocation12], %s2362_s25, %s2362_s25, %s2363_s6  }
  0x3f   : > { %s34_s12 = sadd.s32 1, %s2354_s22  ;;  %s43_s13 = sadd.s32 1, %s2346_s20 }
  0x40   : > { %p36_p13 = scmp.ge.s32.totalorder %s34_s12, 2  ;;  %p50_p6 = scmp.ne.s32.totalorder %s2346_s20, %s2342_s19 }
  0x41   : > { %p51_p10 = scmp.eq.s32.totalorder %s2358_s23, 0  ;;  %p2087_p3 = scmp.lt.s32.totalorder %s2358_s23, 2 }
  0x42   : > { %s2902_s12 = smov (%p36_p13, %s34_s12), 0  ;;  %p2544_p7 = por %p2449_p2, %p50_p6 }
  0x43   : > { %p52_p5 = por %p51_p10, %p50_p6  ;;  %s38_s14 = ssub.s32 %s2354_s22, %s2902_s12 }
  0x44   : > { %s2889_s8 = scalar_select %p2544_p7, 1, 0 }
  0x45   : > { %s224_s15 = sand.u32 1, %s2346_s20   ;;  %p41_p9 = scmp.eq.s32.totalorder %s38_s14, 0 }
  0x46   : > { %s1906_s10 = sshll.u32 %s224_s15, 3  ;;  %s1907_s25 = sshll.u32 %s2354_s22, 7 }
  0x47   : > { %s2553_s6 = scalar_select %p41_p9, %s2346_s20, %s43_s13  }
  0x48   : > { %s2558_s24 = scalar_lea.hbm %s2873_s0, %s1907_s25  ;;  %s228_s27 = scalar_lea.vmem [#allocation8], %s1906_s10 }
  0x49   : > { %s236_s7 = sshll.u32 %s228_s27, 4  ;;  %p2562_p2 = pnand %p2087_p3, %p52_p5  ;;  %s2566_s7 = int_to_ptr.vmem [resolvable:$true] %s236_s7 }
  0x4a   : > { %s225_s11 = scalar_lea.sflag [#allocation9], %s224_s15  ;;  %s2242_s13 = scalar_lea.hbm %s2558_s24, 128 }
  0x4b   : > { %p2243_p11 = scmp.ne.s32.totalorder %s2558_s24, %s2242_s13  ;;  %p2244_p12 = pneg %p2562_p2 }
  0x4c   : > { %s2247_s25 = scalar_lea.hbm %s2873_s0, 256  ;;  %p2248_p4 = scmp.lt.u32.totalorder %s2558_s24, %s2873_s0 }
  0x4d   : > { %p2245_p0 = pnand %p2244_p12, %p2243_p11  ;;  %p2249_p13 = scmp.lt.u32.totalorder %s2247_s25, %s2242_s13 }
  0x4e   : > { %p2251_p10 = scmp.lt.u32.totalorder %s2242_s13, %s2558_s24 }
  0x4f   : > { %p2246_p1 = pneg %p2245_p0  ;;  %p2250_p6 = por %p2249_p13, %p2248_p4 }
  0x51   : > { %p2252_p3 = por %p2251_p10, %p2250_p6 }
  0x53   : > { %p2253_p5 = pnand %p2252_p3, %p2246_p1 }
  0x55   : > { %2256 = shalt.err (!%p2253_p5)
}
  0x56   : > { %s2257_s15 = scalar_lea.vmem %s2566_s7, 128  ;;  %s2364_s27 = smov [#allocation8]  }
  0x57   : > { %p2258_p9 = scmp.ne.s32.totalorder %s2566_s7, %s2257_s15  ;;  %s2262_s14 = sshll.u32 %s2364_s27, 4  ;;  %s2263_s14 = int_to_ptr.vmem [resolvable:$false] %s2262_s14 }
  0x58   : > { %s2264_s10 = scalar_lea.vmem %s2263_s14, 256  ;;  %p2265_p7 = scmp.lt.s32.totalorder %s2566_s7, %s2263_s14 }
  0x59   : > { %p2260_p11 = pnand %p2258_p9, %p2244_p12  ;;  %p2266_p4 = scmp.lt.s32.totalorder %s2264_s10, %s2257_s15 }
  0x5b   : > { %p2261_p0 = pneg %p2260_p11  ;;  %p2267_p13 = por %p2266_p4, %p2265_p7 }
  0x5d   : > { %p2268_p6 = pnand %p2267_p13, %p2261_p0 }
  0x5f   : > { %2271 = shalt.err (!%p2268_p6)
}
  0x60   : > { %2080 = dma.hbm_to_vmem [thread:$0]  (!%p2562_p2), %s2558_s24, 128, %s2566_s7, %s225_s11  }
  0x61   : > { %245 = sbr.rel (%p2465_p8) target bundleno = 1513 (0x5e9), region = 40  ;;  %s2596_s13 = sand.u32 (!%p2465_p8), 1, %s2342_s19  }
  0x62   : > { %s1909_s25 = sshll.u32 (!%p2465_p8), %s2596_s13, 3  ;;  %s248_s16 = scalar_lea.sflag (!%p2465_p8), [#allocation9], %s2596_s13 }
  0x63   : > { %s251_s17 = scalar_lea.vmem (!%p2465_p8), [#allocation8], %s1909_s25  ;;  %p2891_p7 = scmp.ne.s32.totalorder (!%p2465_p8), %s2885_s28, 0 }
  0x68   : > { %2325 = dma.done.wait (%p2891_p7), %s248_s16, 128  }
  0x69   : > { %2327 = vsyncadd (%p2891_p7), %s248_s16, 4294967168  ;;  %p2892_p2 = scmp.ne.s32.totalorder %s2883_s26, 0 }
  0x6b   : > { %2329 = dma.done.wait (%p2892_p2), [#allocation12], 512  }
  0x6c   : > { %2331 = vsyncadd (%p2892_p2), [#allocation12], 4294966784  ;;  %v2365_v0 = vmov 0.0   ;;  %vm2366_vm0 = vmmov 0   ;;  %v2160_v1 = vld [vmem:[#allocation11] sm:$0xff]   ;;  %v2161_v2 = vld [vmem:[#allocation11 + $0x8] sm:$0xff]   ;;  %v296_v5 = vlaneseq }
  0x6d   : > { %1978 = vmatprep.subr.bf16.mxu0 %v2365_v0  ;;  %1982 = vmatprep.mubr.msk.bf16.mxu0 %vm2366_vm0, %v2365_v0  ;;  %v288_v3 = vld [vmem:[%s251_s17] sm:$0xff]  ;;  %vm312_vm1 = vcmask 261120   ;;  %v294_v7 = vld [vmem:[%s2875_s2] sm:$0x1]  ;;  %vm443_vm2 = vcmask 64512   ;;  %vm357_vm3 = vcmask 60416  }
  0x6e   : > { %1986 = vmatprep.subr.bf16.mxu1 %v2365_v0  ;;  %1988 = vmatprep.mubr.msk.bf16.mxu1 %vm2366_vm0, %v2365_v0  ;;  %v289_v4 = vpack.c.bf16 %v288_v3, %v288_v3  ;;  %v2622_v6 = vshrl.u32 %v296_v5, 7  ;;  %v295_v8 = vunpack.c.l.bf16 %v294_v7  ;;  %444 = vst.msk [vmem:[#allocation7] sm:$0xff] %vm443_vm2, %v2365_v0  ;;  %445 = vst.msk [vmem:[#allocation7 + $0x8] sm:$0xff] %vm443_vm2, %v2365_v0  ;;  %s2367_s30 = smov 120   ;;  %s2368_s24 = smov 96   ;;  %vm434_vm4 = vcmask 7168  }
  0x6f   : > { %1979 = vmatpush3.bf16.msra.mxu0 %v2160_v1  ;;  %446 = vst.msk [vmem:[#allocation7 + $0x10] sm:$0xff] %vm443_vm2, %v2365_v0  ;;  %447 = vst.msk [vmem:[#allocation7 + $0x18] sm:$0xff] %vm443_vm2, %v2365_v0  ;;  %s2369_s7 = smov 80   ;;  %s2370_s9 = smov 88   ;;  %v2374_v36 = vmov -1e+30  }
  0x70   : > { %1980 = vmatprep.subr.bf16.mxu0 %v2365_v0  ;;  %v298_v9 = vsub.s32 0, %v2622_v6  ;;  %s2371_s11 = smov 112   ;;  %s2372_s15 = smov 72   ;;  %435 = vst.msk [vmem:[#allocation5] sm:$0xff] %vm434_vm4, %v2374_v36  ;;  %436 = vst.msk [vmem:[#allocation5 + $0x8] sm:$0xff] %vm434_vm4, %v2374_v36  ;;  %v1177_v37 = vand.u32 127, %v296_v5 }
  0x71   : > { %s2373_s27 = smov 104   ;;  %437 = vst.msk [vmem:[#allocation5 + $0x10] sm:$0xff] %vm434_vm4, %v2374_v36  ;;  %438 = vst.msk [vmem:[#allocation5 + $0x18] sm:$0xff] %vm434_vm4, %v2374_v36  ;;  %v2375_v62 = vmov 0   ;;  %s2376_s14 = smov 64   ;;  %vm1292_vm6 = vcmask 1043456  }
  0x72   : > { %v299_v10 = vrot.slane %v295_v8, %v298_v9  ;;  %439 = vst.msk [vmem:[#allocation6] sm:$0xff] %vm434_vm4, %v2365_v0  ;;  %440 = vst.msk [vmem:[#allocation6 + $0x8] sm:$0xff] %vm434_vm4, %v2365_v0  ;;  %vm1178_vm5 = vcmp.ge.s32.totalorder %v2622_v6, %v1177_v37  ;;  %2158 = vset.pattern.permute.xlu0 %v2375_v62  ;;  %2159 = vset.pattern.permute.xlu1 %v2375_v62  ;;  %s2377_s10 = smov 56   ;;  %s2378_s16 = smov 48  }
  0x73   : > { %1981 = vmatpush3.bf16.msra.mxu0 %v2161_v2  ;;  %441 = vst.msk [vmem:[#allocation6 + $0x10] sm:$0xff] %vm434_vm4, %v2365_v0  ;;  %442 = vst.msk [vmem:[#allocation6 + $0x18] sm:$0xff] %vm434_vm4, %v2365_v0  ;;  %s2379_s17 = smov 40   ;;  %p2893_p12 = scmp.ne.s32.totalorder %s2889_s8, 0 }
  0x74   : > { %1992 = vmatprep.subr.bf16.mxu0 %v2365_v0 }
  0x76   : > { %1983 = vmatmul.mubr.msk.bf16.vlgmr.msra.gmra.mrb[0].mxu0 %vm312_vm1, %v289_v4 }
  0x77   : > { %1994 = vmatprep.mubr.msk.bf16.mxu0 %vm2366_vm0, %v2365_v0  ;;  %v2705_v63 = vld [vmem:[#allocation5] sm:$0xff]  ;;  %v2710_v3 = vld [vmem:[#allocation5 + $0x8] sm:$0xff] }
  0x78   : > { %v2720_v8 = vld [vmem:[#allocation5 + $0x10] sm:$0xff] }
 0x149   : > { %v350_v11 = vpop.f32.mrb[0].mxu0 }
 0x14a   : > { %v351_v12 = vadd.f32 %v350_v11, %v299_v10  ;;  %v1984_v13 = vpop.f32.mrb[1].mxu0 }
 0x14b   : > { %v353_v14 = vpop.f32.mrb[2].mxu0  ;;  %v2730_v13 = vld [vmem:[#allocation5 + $0x18] sm:$0xff] }
 0x14c   : > { %v2638_v15 = vpack.c.bf16 %v351_v12, %v351_v12  ;;  %v1985_v16 = vpop.f32.mrb[3].mxu0 }
 0x14e   : > { %376 = vrot.lane.b32.xlu1 %v2638_v15, %s2367_s30  ;;  %362 = vrot.lane.b32.xlu0 %v2638_v15, %s2368_s24  ;;  %358 = vst.msk [vmem:[#allocation2] sm:$0xf] %vm357_vm3, %v2638_v15  ;;  %s1947_s30 = sshll.u32 %s2350_s21, 7  ;;  %s285_s24 = scalar_lea.vmem [#allocation14], %s1909_s25 }
 0x14f   : > { %s1756_s21 = scalar_lea.sflag [#allocation10], %s2596_s13 }
 0x152   : > { %399 = vrot.lane.b32.xlu1 %v2638_v15, %s2369_s7  ;;  %381 = vrot.lane.b32.xlu0 %v2638_v15, %s2370_s9  ;;  %s1770_s7 = sshll.u32 %s285_s24, 4  ;;  %s2825_s7 = int_to_ptr.vmem [resolvable:$true] %s1770_s7 }
 0x153   : > { %s2272_s25 = scalar_lea.vmem %s2825_s7, 128 }
 0x154   : > { %p2273_p8 = scmp.ne.s32.totalorder %s2825_s7, %s2272_s25 }
 0x155   : > { %v430_v29 = vld [vmem:[#allocation2] sm:$0xf] }
 0x156   : > { %394 = vrot.lane.b32.xlu1 %v2638_v15, %s2371_s11  ;;  %417 = vrot.lane.b32.xlu0 %v2638_v15, %s2372_s15  ;;  %s2823_s15 = scalar_lea.hbm %s2878_s5, %s1947_s30  ;;  %p2274_p1 = pnand %p2273_p8, %p2893_p12 }
 0x158   : > { %p2275_p10 = pneg %p2274_p1 }
 0x15a   : > { %412 = vrot.lane.b32.xlu0 %v2638_v15, %s2373_s27  ;;  %s2380_s27 = smov [#allocation14]  }
 0x1c0   : > { %v377_v17 = vpop.permute.xlu1 %376  ;;  %v363_v18 = vpop.permute.xlu0 %362 }
 0x1c1   : > { %380 = vst.msk [vmem:[#allocation2 + $0x4] sm:$0xf] %vm357_vm3, %v377_v17  ;;  %369 = vst.msk [vmem:[#allocation3] sm:$0xf] %vm357_vm3, %v363_v18 }
 0x1c4   : > { %v400_v19 = vpop.permute.xlu1 %399  ;;  %v382_v20 = vpop.permute.xlu0 %381 }
 0x1c5   : > { %1919 = vst.msk [vmem:[#allocation3 + $0x8] sm:$0xf] %vm357_vm3, %v400_v19  ;;  %1917 = vst.msk [vmem:[#allocation3 + $0x4] sm:$0xf] %vm357_vm3, %v382_v20 }
 0x1c8   : > { %v395_v21 = vpop.permute.xlu1 %394  ;;  %v418_v22 = vpop.permute.xlu0 %417  ;;  %v982_v23 = vld [vmem:[#allocation3] sm:$0xf]  ;;  %v431_v32 = vld [vmem:[#allocation2 + $0x4] sm:$0xf] }
 0x1c9   : > { %398 = vst.msk [vmem:[#allocation2 + $0x8] sm:$0xf] %vm357_vm3, %v395_v21  ;;  %1921 = vst.msk [vmem:[#allocation3 + $0xc] sm:$0xf] %vm357_vm3, %v418_v22  ;;  %v994_v24 = vsel %vm443_vm2, %v982_v23, 0 }
 0x1ca   : > { %1987 = vmatpush3.bf16.xpose.msra.mxu1 %v994_v24 }
 0x1cb   : > { %1998 = vmatprep.subr.bf16.mxu1 %v2365_v0 }
 0x1cc   : > { %v413_v25 = vpop.permute.xlu0 %412  ;;  %v983_v26 = vld [vmem:[#allocation3 + $0x4] sm:$0xf]  ;;  %v984_v28 = vld [vmem:[#allocation3 + $0x8] sm:$0xf] }
 0x1cd   : > { %416 = vst.msk [vmem:[#allocation2 + $0xc] sm:$0xf] %vm357_vm3, %v413_v25  ;;  %v1040_v27 = vsel %vm443_vm2, %v983_v26, 0  ;;  %v1086_v30 = vsel %vm443_vm2, %v984_v28, 0 }
 0x1ce   : > { %1993 = vmatpush3.bf16.xpose.msra.mxu0 %v1040_v27 }
 0x1cf   : > { %2004 = vmatprep.subr.bf16.mxu0 %v2365_v0 }
 0x1d0   : > { %v985_v31 = vld [vmem:[#allocation3 + $0xc] sm:$0xf]  ;;  %v432_v34 = vld [vmem:[#allocation2 + $0x8] sm:$0xf] }
 0x1d1   : > { %1989 = vmatmul.mubr.msk.bf16.vlgmr.msra.gmra.mrb[0].mxu1 %vm443_vm2, %v430_v29  ;;  %v1132_v33 = vsel %vm443_vm2, %v985_v31, 0 }
 0x1d2   : > { %1999 = vmatpush3.bf16.xpose.msra.mxu1 %v1086_v30  ;;  %2000 = vmatprep.mubr.msk.bf16.mxu1 %vm2366_vm0, %v2365_v0 }
 0x1d3   : > { %2010 = vmatprep.subr.bf16.mxu1 %v2365_v0 }
 0x1d4   : > { %v433_v35 = vld [vmem:[#allocation2 + $0xc] sm:$0xf] }
 0x1d5   : > { %1995 = vmatmul.mubr.msk.bf16.vlgmr.msra.gmra.mrb[4].mxu0 %vm443_vm2, %v431_v32 }
 0x1d6   : > { %2005 = vmatpush3.bf16.xpose.msra.mxu0 %v1132_v33  ;;  %2006 = vmatprep.mubr.msk.bf16.mxu0 %vm2366_vm0, %v2365_v0 }
 0x1d7   : > { %2016 = vmatprep.subr.bf16.mxu0 %v2365_v0 }
 0x1d9   : > { %2001 = vmatmul.mubr.msk.bf16.vlgmr.msra.gmra.mrb[4].mxu1 %vm443_vm2, %v432_v34 }
 0x1da   : > { %2012 = vmatprep.mubr.msk.bf16.mxu1 %vm2366_vm0, %v2365_v0 }
 0x1dd   : > { %2007 = vmatmul.mubr.msk.bf16.vlgmr.msra.gmra.mrb[8].mxu0 %vm443_vm2, %v433_v35 }
 0x1de   : > { %2018 = vmatprep.mubr.msk.bf16.mxu0 %vm2366_vm0, %v2365_v0 }
 0x2a4   : > { %v1030_v38 = vpop.f32.mrb[0].mxu1 }
 0x2a5   : > { %v2692_v39 = vsel %vm1178_vm5, %v1030_v38, -1e+10  ;;  %v1990_v40 = vpop.f32.mrb[1].mxu1 }
 0x2a6   : > { %v1033_v41 = vpop.f32.mrb[2].mxu1  ;;  %v1189_v42 = vsel %vm443_vm2, %v2692_v39, -inf }
 0x2a7   : > { %1190 = vmax.xlane.f32.xlu1 %v1189_v42  ;;  %v1991_v43 = vpop.f32.mrb[3].mxu1 }
 0x2a8   : > { %v1076_v44 = vpop.f32.mrb[4].mxu0 }
 0x2a9   : > { %v1182_v45 = vsel %vm1178_vm5, %v1076_v44, -1e+10  ;;  %v1996_v46 = vpop.f32.mrb[5].mxu0 }
 0x2aa   : > { %v1079_v47 = vpop.f32.mrb[6].mxu0  ;;  %v1192_v48 = vsel %vm443_vm2, %v1182_v45, -inf }
 0x2ab   : > { %1193 = vmax.xlane.f32.xlu0 %v1192_v48  ;;  %v1997_v49 = vpop.f32.mrb[7].mxu0 }
 0x2ac   : > { %v1122_v50 = vpop.f32.mrb[4].mxu1 }
 0x2ad   : > { %v1183_v51 = vsel %vm1178_vm5, %v1122_v50, -1e+10  ;;  %v2002_v52 = vpop.f32.mrb[5].mxu1 }
 0x2ae   : > { %v1125_v53 = vpop.f32.mrb[6].mxu1  ;;  %v1195_v54 = vsel %vm443_vm2, %v1183_v51, -inf }
 0x2af   : > { %v2003_v55 = vpop.f32.mrb[7].mxu1  ;;  %1196 = vmax.xlane.f32.xlu0 %v1195_v54 }
 0x2b0   : > { %v1168_v56 = vpop.f32.mrb[8].mxu0 }
 0x2b1   : > { %v1184_v57 = vsel %vm1178_vm5, %v1168_v56, -1e+10  ;;  %v2008_v58 = vpop.f32.mrb[9].mxu0 }
 0x2b2   : > { %v1171_v59 = vpop.f32.mrb[10].mxu0  ;;  %v1198_v60 = vsel %vm443_vm2, %v1184_v57, -inf }
 0x2b3   : > { %1199 = vmax.xlane.f32.xlu1 %v1198_v60  ;;  %v2009_v61 = vpop.f32.mrb[11].mxu0 }
 0x334   : > { %v1191_v1 = vpop.xlane.xlu1 %1190 }
 0x335   : > { %v2708_v2 = vmax.f32 %v2705_v63, %v1191_v1 }
 0x337   : > { %v1205_v4 = vsub.f32 %v2705_v63, %v2708_v2  ;;  %1510 = vst.msk [vmem:[#allocation5] sm:$0xff] %vm434_vm4, %v2708_v2  ;;  %1219 = vperm.xlu0 %2158, %v2708_v2  }
 0x338   : > { %v1194_v5 = vpop.xlane.xlu0 %1193 }
 0x339   : > { %v2718_v7 = vmax.f32 %v2710_v3, %v1194_v5  ;;  %v1209_v58 = vmul.f32 1.442695, %v1205_v4 }
 0x33b   : > { %v1206_v10 = vsub.f32 %v2710_v3, %v2718_v7  ;;  %1511 = vst.msk [vmem:[#allocation5 + $0x8] sm:$0xff] %vm434_vm4, %v2718_v7  ;;  %1224 = vperm.xlu1 %2159, %v2718_v7   ;;  %v1257_v3 = vld [vmem:[#allocation6] sm:$0xff]  ;;  %v1258_v7 = vld [vmem:[#allocation6 + $0x8] sm:$0xff] }
 0x33c   : > { %v1197_v11 = vpop.xlane.xlu0 %1196 }
 0x33d   : > { %v2728_v12 = vmax.f32 %v2720_v8, %v1197_v11  ;;  %v1211_v59 = vmul.f32 1.442695, %v1206_v10 }
 0x33f   : > { %v1207_v14 = vsub.f32 %v2720_v8, %v2728_v12  ;;  %1512 = vst.msk [vmem:[#allocation5 + $0x10] sm:$0xff] %vm434_vm4, %v2728_v12  ;;  %370 = vrot.lane.b32.xlu1 %v2638_v15, %s2376_s14  ;;  %s2276_s14 = sshll.u32 %s2380_s27, 4  ;;  %s2277_s14 = int_to_ptr.vmem [resolvable:$false] %s2276_s14 }
 0x340   : > { %v1200_v16 = vpop.xlane.xlu1 %1199  ;;  %p2279_p3 = scmp.lt.s32.totalorder %s2825_s7, %s2277_s14 }
 0x341   : > { %v2738_v17 = vmax.f32 %v2730_v13, %v1200_v16  ;;  %v1213_v60 = vmul.f32 1.442695, %v1207_v14 }
 0x343   : > { %v1208_v18 = vsub.f32 %v2730_v13, %v2738_v17  ;;  %1513 = vst.msk [vmem:[#allocation5 + $0x18] sm:$0xff] %vm434_vm4, %v2738_v17  ;;  %1229 = vperm.xlu1 %2159, %v2728_v12   ;;  %v1259_v13 = vld [vmem:[#allocation6 + $0x10] sm:$0xff] }
 0x345   : > { %v1215_v61 = vmul.f32 1.442695, %v1208_v18  ;;  %v1260_v18 = vld [vmem:[#allocation6 + $0x18] sm:$0xff] }
 0x347   : > { %1234 = vperm.xlu1 %2159, %v2738_v17  }
 0x34b   : > { %388 = vrot.lane.b32.xlu1 %v2638_v15, %s2377_s10  ;;  %s2278_s10 = scalar_lea.vmem %s2277_s14, 256 }
 0x34c   : > { %p2280_p5 = scmp.lt.s32.totalorder %s2278_s10, %s2272_s25 }
 0x34e   : > { %p2281_p9 = por %p2280_p5, %p2279_p3 }
 0x34f   : > { %406 = vrot.lane.b32.xlu1 %v2638_v15, %s2378_s16 }
 0x350   : > { %p2282_p11 = pnand %p2281_p9, %p2275_p10 }
 0x353   : > { %424 = vrot.lane.b32.xlu1 %v2638_v15, %s2379_s17 }
 0x3b6   : > { %v1220_v19 = vpop.permute.xlu0 %1219 }
 0x3b7   : > { %v1237_v20 = vsub.f32 %v2692_v39, %v1220_v19 }
 0x3b9   : > { %v1241_v21 = vpack.c.bf16 %v1237_v20, %v1237_v20 }
 0x3ba   : > { %v1225_v22 = vpop.permute.xlu1 %1224 }
 0x3bb   : > { %v1246_v23 = vmul.bf16 1069105081, %v1241_v21  ;;  %v1238_v24 = vsub.f32 %v1182_v45, %v1225_v22 }
 0x3bd   : > { %2162 = vpow.bf16 %v1246_v23  ;;  %v1242_v25 = vpack.c.bf16 %v1238_v24, %v1238_v24 }
 0x3be   : > { %v371_v26 = vpop.permute.xlu1 %370 }
 0x3bf   : > { %v1249_v27 = vmul.bf16 1069105081, %v1242_v25  ;;  %375 = vst.msk [vmem:[#allocation4] sm:$0xf] %vm357_vm3, %v371_v26  ;;  %v1554_v25 = vld [vmem:[#allocation13] sm:$0xf] }
 0x3c1   : > { %2164 = vpow.bf16 %v1249_v27  ;;  %v1607_v27 = vsel %vm1292_vm6, %v1554_v25, 0 }
 0x3c2   : > { %v1230_v28 = vpop.permute.xlu1 %1229 }
 0x3c3   : > { %v1239_v29 = vsub.f32 %v1183_v51, %v1230_v28  ;;  %v1556_v28 = vld [vmem:[#allocation13 + $0x4] sm:$0xf] }
 0x3c5   : > { %v1243_v30 = vpack.c.bf16 %v1239_v29, %v1239_v29 }
 0x3c6   : > { %v1235_v31 = vpop.permute.xlu1 %1234  ;;  %v986_v15 = vld [vmem:[#allocation4] sm:$0xf] }
 0x3c7   : > { %v1252_v32 = vmul.bf16 1069105081, %v1243_v30  ;;  %v1240_v33 = vsub.f32 %v1184_v57, %v1235_v31  ;;  %v1294_v34 = vsel %vm1292_vm6, %v986_v15, 0  ;;  %v1561_v30 = vsel %vm1292_vm6, %v1556_v28, 0 }
 0x3c8   : > { %v2163_v35 = vpop.eup %2162  ;;  %2011 = vmatpush3.bf16.msra.mxu1 %v1294_v34 }
 0x3c9   : > { %2166 = vpow.bf16 %v1252_v32  ;;  %v1244_v36 = vpack.c.bf16 %v1240_v33, %v1240_v33  ;;  %v1265_v37 = vunpack.c.l.bf16 %v2163_v35  ;;  %2022 = vmatprep.subr.bf16.mxu1 %v2365_v0  ;;  %v1474_v33 = vld [vmem:[#allocation7] sm:$0xff] }
 0x3ca   : > { %v389_v38 = vpop.permute.xlu1 %388 }
 0x3cb   : > { %v1255_v39 = vmul.bf16 1069105081, %v1244_v36  ;;  %1918 = vst.msk [vmem:[#allocation4 + $0x4] sm:$0xf] %vm357_vm3, %v389_v38  ;;  %2013 = vmatmul.mubr.msk.bf16.vlgmr.msra.gmra.mrb[8].mxu1 %vm443_vm2, %v2163_v35  ;;  %v1269_v40 = vsel %vm443_vm2, %v1265_v37, 0.0 }
 0x3cc   : > { %v2165_v41 = vpop.eup %2164  ;;  %1270 = vadd.xlane.f32.xlu0 %v1269_v40  ;;  %2024 = vmatprep.mubr.msk.bf16.mxu1 %vm2366_vm0, %v2365_v0 }
 0x3cd   : > { %2168 = vpow.bf16 %v1255_v39  ;;  %v1266_v42 = vunpack.c.l.bf16 %v2165_v41 }
 0x3ce   : > { %v407_v43 = vpop.permute.xlu1 %406  ;;  %2170 = vpow2.f32 %v1209_v58 }
 0x3cf   : > { %1920 = vst.msk [vmem:[#allocation4 + $0x8] sm:$0xf] %vm357_vm3, %v407_v43  ;;  %v1272_v44 = vsel %vm443_vm2, %v1266_v42, 0.0  ;;  %2172 = vpow2.f32 %v1211_v59 }
 0x3d0   : > { %1273 = vadd.xlane.f32.xlu1 %v1272_v44  ;;  %2174 = vpow2.f32 %v1213_v60  ;;  %v1476_v44 = vld [vmem:[#allocation7 + $0x10] sm:$0xff] }
 0x3d1   : > { %2176 = vpow2.f32 %v1215_v61 }
 0x3d2   : > { %v425_v45 = vpop.permute.xlu1 %424  ;;  %v987_v46 = vld [vmem:[#allocation4 + $0x4] sm:$0xf] }
 0x3d3   : > { %1922 = vst.msk [vmem:[#allocation4 + $0xc] sm:$0xf] %vm357_vm3, %v425_v45  ;;  %v1340_v47 = vsel %vm1292_vm6, %v987_v46, 0 }
 0x3d4   : > { %v2167_v48 = vpop.eup %2166  ;;  %2017 = vmatpush3.bf16.msra.mxu0 %v1340_v47 }
 0x3d5   : > { %v1267_v49 = vunpack.c.l.bf16 %v2167_v48  ;;  %2028 = vmatprep.subr.bf16.mxu0 %v2365_v0 }
 0x3d6   : > { %v988_v50 = vld [vmem:[#allocation4 + $0x8] sm:$0xf] }
 0x3d7   : > { %2019 = vmatmul.mubr.msk.bf16.vlgmr.msra.gmra.mrb[12].mxu0 %vm443_vm2, %v2165_v41  ;;  %v1275_v51 = vsel %vm443_vm2, %v1267_v49, 0.0  ;;  %v1386_v52 = vsel %vm1292_vm6, %v988_v50, 0  ;;  %v1475_v41 = vld [vmem:[#allocation7 + $0x8] sm:$0xff] }
 0x3d8   : > { %v2169_v53 = vpop.eup %2168  ;;  %1276 = vadd.xlane.f32.xlu0 %v1275_v51  ;;  %2023 = vmatpush3.bf16.msra.mxu1 %v1386_v52  ;;  %v1477_v52 = vld [vmem:[#allocation7 + $0x18] sm:$0xff] }
 0x3d9   : > { %v1268_v54 = vunpack.c.l.bf16 %v2169_v53  ;;  %2030 = vmatprep.mubr.msk.bf16.mxu0 %vm2366_vm0, %v2365_v0  ;;  %2034 = vmatprep.subr.bf16.mxu1 %v2365_v0  ;;  %v2171_v62 = vpop.eup %2170 }
 0x3da   : > { %v989_v55 = vld [vmem:[#allocation4 + $0xc] sm:$0xf]  ;;  %v2173_v63 = vpop.eup %2172  ;;  %v1261_v4 = vmul.f32 %v2171_v62, %v1257_v3 }
 0x3db   : > { %2025 = vmatmul.mubr.msk.bf16.vlgmr.msra.gmra.mrb[12].mxu1 %vm443_vm2, %v2167_v48  ;;  %v1278_v56 = vsel %vm443_vm2, %v1268_v54, 0.0  ;;  %v1432_v57 = vsel %vm1292_vm6, %v989_v55, 0  ;;  %v2175_v1 = vpop.eup %2174  ;;  %v1262_v10 = vmul.f32 %v2173_v63, %v1258_v7 }
 0x3dc   : > { %1279 = vadd.xlane.f32.xlu1 %v1278_v56  ;;  %2029 = vmatpush3.bf16.msra.mxu0 %v1432_v57  ;;  %v2177_v2 = vpop.eup %2176  ;;  %v1263_v16 = vmul.f32 %v2175_v1, %v1259_v13 }
 0x3dd   : > { %2040 = vmatprep.subr.bf16.mxu0 %v2365_v0  ;;  %2036 = vmatprep.mubr.msk.bf16.mxu1 %vm2366_vm0, %v2365_v0  ;;  %v1264_v21 = vmul.f32 %v2177_v2, %v1260_v18 }
 0x3de   : > { %2035 = vmatpush3.bf16.msra.mxu1 %v1561_v30 }
 0x3df   : > { %2031 = vmatmul.mubr.msk.bf16.vlgmr.msra.gmra.mrb[16].mxu0 %vm443_vm2, %v2169_v53  ;;  %2046 = vmatprep.subr.bf16.mxu1 %v2365_v0 }
 0x3e0   : > { %2042 = vmatprep.mubr.msk.bf16.mxu0 %vm2366_vm0, %v2365_v0  ;;  %2041 = vmatpush3.bf16.msra.mxu0 %v1607_v27 }
 0x3e1   : > { %2052 = vmatprep.subr.bf16.mxu0 %v2365_v0 }
 0x3ed   : > { %1480 = vperm.xlu1 %2159, %v2171_v62  }
 0x3ee   : > { %1485 = vperm.xlu0 %2158, %v2173_v63  }
 0x3f1   : > { %1490 = vperm.xlu1 %2159, %v2175_v1  }
 0x3f2   : > { %1495 = vperm.xlu0 %2158, %v2177_v2  }
 0x459   : > { %v1271_v5 = vpop.xlane.xlu0 %1270 }
 0x45a   : > { %v1281_v8 = vadd.f32 %v1271_v5, %v1261_v4  ;;  %v1699_v4 = vld [vmem:[#allocation13 + $0xc] sm:$0xf] }
 0x45c   : > { %1285 = vst.msk [vmem:[#allocation6] sm:$0xff] %vm434_vm4, %v1281_v8  ;;  %v1704_v8 = vsel %vm1292_vm6, %v1699_v4, 0 }
 0x45d   : > { %v1274_v11 = vpop.xlane.xlu1 %1273 }
 0x45e   : > { %v1282_v12 = vadd.f32 %v1274_v11, %v1262_v10 }
 0x460   : > { %1286 = vst.msk [vmem:[#allocation6 + $0x8] sm:$0xff] %vm434_vm4, %v1282_v12  ;;  %v1650_v12 = vld [vmem:[#allocation13 + $0x8] sm:$0xf] }
 0x463   : > { %v1514_v14 = vld [vmem:[#allocation6] sm:$0xff] }
 0x464   : > { %2178 = vrcp.f32 %v1514_v14 }
 0x465   : > { %v1277_v17 = vpop.xlane.xlu0 %1276 }
 0x466   : > { %v1283_v19 = vadd.f32 %v1277_v17, %v1263_v16  ;;  %v1655_v16 = vsel %vm1292_vm6, %v1650_v12, 0 }
 0x467   : > { %v1515_v20 = vld [vmem:[#allocation6 + $0x8] sm:$0xff] }
 0x468   : > { %1287 = vst.msk [vmem:[#allocation6 + $0x10] sm:$0xff] %vm434_vm4, %v1283_v19  ;;  %2180 = vrcp.f32 %v1515_v20 }
 0x469   : > { %v1280_v22 = vpop.xlane.xlu1 %1279 }
 0x46a   : > { %v1284_v23 = vadd.f32 %v1280_v22, %v1264_v21 }
 0x46c   : > { %1288 = vst.msk [vmem:[#allocation6 + $0x18] sm:$0xff] %vm434_vm4, %v1284_v23 }
 0x46d   : > { %v1481_v34 = vpop.permute.xlu1 %1480  ;;  %v1486_v42 = vpop.permute.xlu0 %1485 }
 0x46e   : > { %v2179_v24 = vpop.eup %2178  ;;  %v1498_v35 = vmul.f32 %v1481_v34, %v1474_v33  ;;  %v1499_v43 = vmul.f32 %v1486_v42, %v1475_v41 }
 0x46f   : > { %1528 = vperm.xlu0 %2158, %v2179_v24   ;;  %v1516_v26 = vld [vmem:[#allocation6 + $0x10] sm:$0xff] }
 0x470   : > { %2182 = vrcp.f32 %v1516_v26 }
 0x471   : > { %v1491_v45 = vpop.permute.xlu1 %1490  ;;  %v1496_v53 = vpop.permute.xlu0 %1495 }
 0x472   : > { %v2181_v29 = vpop.eup %2180  ;;  %v1500_v50 = vmul.f32 %v1491_v45, %v1476_v44  ;;  %v1501_v58 = vmul.f32 %v1496_v53, %v1477_v52 }
 0x473   : > { %1533 = vperm.xlu1 %2159, %v2181_v29   ;;  %v1517_v31 = vld [vmem:[#allocation6 + $0x18] sm:$0xff] }
 0x474   : > { %2184 = vrcp.f32 %v1517_v31 }
 0x47a   : > { %v2183_v15 = vpop.eup %2182 }
 0x47b   : > { %1538 = vperm.xlu1 %2159, %v2183_v15  }
 0x47e   : > { %v2185_v32 = vpop.eup %2184 }
 0x47f   : > { %1543 = vperm.xlu0 %2158, %v2185_v32   ;;  %v1747_v32 = vld [vmem:[%s2877_s4] sm:$0x1] }
 0x480   : > { %v1748_v33 = vunpack.c.l.bf16 %v1747_v32 }
 0x49e   : > { %v1330_v36 = vpop.f32.mrb[8].mxu1 }
 0x49f   : > { %v1502_v37 = vadd.f32 %v1498_v35, %v1330_v36  ;;  %v2014_v38 = vpop.f32.mrb[9].mxu1 }
 0x4a0   : > { %v1333_v39 = vpop.f32.mrb[10].mxu1 }
 0x4a1   : > { %1506 = vst.msk [vmem:[#allocation7] sm:$0xff] %vm443_vm2, %v1502_v37  ;;  %v2015_v40 = vpop.f32.mrb[11].mxu1  ;;  %v1752_v39 = vrot.slane %v1748_v33, %v298_v9 }
 0x4a8   : > { %v1522_v3 = vld [vmem:[#allocation7] sm:$0xff] }
 0x4aa   : > { %v1376_v46 = vpop.f32.mrb[12].mxu0 }
 0x4ab   : > { %v1503_v47 = vadd.f32 %v1499_v43, %v1376_v46  ;;  %v2020_v48 = vpop.f32.mrb[13].mxu0 }
 0x4ac   : > { %v1379_v49 = vpop.f32.mrb[14].mxu0 }
 0x4ad   : > { %1507 = vst.msk [vmem:[#allocation7 + $0x8] sm:$0xff] %vm443_vm2, %v1503_v47  ;;  %v2021_v51 = vpop.f32.mrb[15].mxu0 }
 0x4ae   : > { %v1422_v54 = vpop.f32.mrb[12].mxu1 }
 0x4af   : > { %v1504_v55 = vadd.f32 %v1500_v50, %v1422_v54  ;;  %v2026_v56 = vpop.f32.mrb[13].mxu1 }
 0x4b0   : > { %v1425_v57 = vpop.f32.mrb[14].mxu1 }
 0x4b1   : > { %1508 = vst.msk [vmem:[#allocation7 + $0x10] sm:$0xff] %vm443_vm2, %v1504_v55  ;;  %v2027_v59 = vpop.f32.mrb[15].mxu1 }
 0x4b2   : > { %v1468_v60 = vpop.f32.mrb[16].mxu0 }
 0x4b3   : > { %v1505_v61 = vadd.f32 %v1501_v58, %v1468_v60  ;;  %v2032_v62 = vpop.f32.mrb[17].mxu0 }
 0x4b4   : > { %v1471_v63 = vpop.f32.mrb[18].mxu0  ;;  %v1523_v11 = vld [vmem:[#allocation7 + $0x8] sm:$0xff] }
 0x4b5   : > { %1509 = vst.msk [vmem:[#allocation7 + $0x18] sm:$0xff] %vm443_vm2, %v1505_v61  ;;  %v2033_v1 = vpop.f32.mrb[19].mxu0 }
 0x4b8   : > { %v1524_v17 = vld [vmem:[#allocation7 + $0x10] sm:$0xff] }
 0x4bc   : > { %v1525_v22 = vld [vmem:[#allocation7 + $0x18] sm:$0xff] }
 0x4ee   : > { %v1529_v2 = vpop.permute.xlu0 %1528 }
 0x4ef   : > { %v1546_v5 = vmul.f32 %v1529_v2, %v1522_v3 }
 0x4f1   : > { %v1550_v7 = vpack.c.bf16 %v1546_v5, %v1546_v5 }
 0x4f2   : > { %v1534_v10 = vpop.permute.xlu1 %1533 }
 0x4f3   : > { %v1547_v13 = vmul.f32 %v1534_v10, %v1523_v11  ;;  %2043 = vmatmul.mubr.msk.bf16.vlgmr.msra.gmra.mrb[20].mxu0 %vm443_vm2, %v1550_v7 }
 0x4f4   : > { %2053 = vmatpush3.bf16.msra.mxu0 %v1704_v8  ;;  %2054 = vmatprep.mubr.msk.bf16.mxu0 %vm2366_vm0, %v2365_v0 }
 0x4f5   : > { %v1551_v14 = vpack.c.bf16 %v1547_v13, %v1547_v13 }
 0x4f7   : > { %2037 = vmatmul.mubr.msk.bf16.vlgmr.msra.gmra.mrb[16].mxu1 %vm443_vm2, %v1551_v14 }
 0x4f8   : > { %2047 = vmatpush3.bf16.msra.mxu1 %v1655_v16  ;;  %2048 = vmatprep.mubr.msk.bf16.mxu1 %vm2366_vm0, %v2365_v0 }
 0x4fa   : > { %v1539_v18 = vpop.permute.xlu1 %1538 }
 0x4fb   : > { %v1548_v19 = vmul.f32 %v1539_v18, %v1524_v17 }
 0x4fd   : > { %v1552_v20 = vpack.c.bf16 %v1548_v19, %v1548_v19 }
 0x4fe   : > { %v1544_v21 = vpop.permute.xlu0 %1543 }
 0x4ff   : > { %v1549_v23 = vmul.f32 %v1544_v21, %v1525_v22  ;;  %2049 = vmatmul.mubr.msk.bf16.vlgmr.msra.gmra.mrb[20].mxu1 %vm443_vm2, %v1552_v20 }
 0x501   : > { %v1553_v24 = vpack.c.bf16 %v1549_v23, %v1549_v23 }
 0x503   : > { %2055 = vmatmul.mubr.msk.bf16.vlgmr.msra.gmra.mrb[24].mxu0 %vm443_vm2, %v1553_v24 }
 0x5c6   : > { %v1643_v25 = vpop.f32.mrb[20].mxu0 }
 0x5c7   : > { %v2044_v26 = vpop.f32.mrb[21].mxu0 }
 0x5c8   : > { %v1646_v27 = vpop.f32.mrb[22].mxu0 }
 0x5c9   : > { %v2045_v28 = vpop.f32.mrb[23].mxu0 }
 0x5ca   : > { %v1597_v29 = vpop.f32.mrb[16].mxu1 }
 0x5cb   : > { %v1644_v0 = vadd.f32 %v1643_v25, %v1597_v29  ;;  %v2038_v30 = vpop.f32.mrb[17].mxu1 }
 0x5cc   : > { %v1600_v31 = vpop.f32.mrb[18].mxu1 }
 0x5cd   : > { %v2039_v15 = vpop.f32.mrb[19].mxu1 }
 0x5d2   : > { %v1691_v34 = vpop.f32.mrb[20].mxu1 }
 0x5d3   : > { %v1697_v35 = vadd.f32 %v1691_v34, %v1644_v0  ;;  %v2050_v36 = vpop.f32.mrb[21].mxu1 }
 0x5d4   : > { %v1694_v37 = vpop.f32.mrb[22].mxu1 }
 0x5d5   : > { %v2051_v38 = vpop.f32.mrb[23].mxu1 }
 0x5d6   : > { %v1740_v40 = vpop.f32.mrb[24].mxu0 }
 0x5d7   : > { %v1746_v41 = vadd.f32 %v1740_v40, %v1697_v35  ;;  %v2056_v42 = vpop.f32.mrb[25].mxu0 }
 0x5d8   : > { %v1743_v43 = vpop.f32.mrb[26].mxu0 }
 0x5d9   : > { %v1753_v44 = vadd.f32 %v1752_v39, %v1746_v41  ;;  %v2057_v45 = vpop.f32.mrb[27].mxu0 }
 0x5db   : > { %1754 = vst.msk [vmem:[%s285_s24] sm:$0xff] %vm312_vm1, %v1753_v44 }
 0x5dc   : > { %2285 = shalt.err (!%p2282_p11)
}
 0x5dd   : > { %s2286_s13 = scalar_lea.hbm %s2823_s15, 128  ;;  %s2290_s26 = scalar_lea.hbm %s2878_s5, 256 }
 0x5de   : > { %p2287_p0 = scmp.ne.s32.totalorder %s2823_s15, %s2286_s13  ;;  %p2291_p6 = scmp.lt.u32.totalorder %s2823_s15, %s2878_s5 }
 0x5df   : > { %p2292_p7 = scmp.lt.u32.totalorder %s2290_s26, %s2286_s13  ;;  %p2294_p8 = scmp.lt.u32.totalorder %s2286_s13, %s2823_s15 }
 0x5e0   : > { %p2288_p4 = pnand %p2287_p0, %p2893_p12 }
 0x5e1   : > { %p2293_p2 = por %p2292_p7, %p2291_p6 }
 0x5e2   : > { %p2289_p13 = pneg %p2288_p4 }
 0x5e3   : > { %p2295_p1 = por %p2294_p8, %p2293_p2 }
 0x5e5   : > { %p2296_p10 = pnand %p2295_p1, %p2289_p13 }
 0x5e7   : > { %2299 = shalt.err (!%p2296_p10)
}
 0x5e8   : > { %2068 = dma.vmem_to_hbm [thread:$0]  (%p2893_p12), %s2825_s7, 128, %s2823_s15, %s1756_s21  }
 0x5e9 PF: > { %s1782_s24 = sand.u32 1, %s2338_s18   ;;  %p2894_p3 = scmp.ne.s32.totalorder %s2886_s29, 0 }
 0x5ea   : > { %p2895_p5 = scmp.ge.s32.totalorder %s2358_s23, 2  ;;  %s1783_s9 = scalar_lea.sflag [#allocation10], %s1782_s24 }
 0x5ec   : > { %p2082_p9 = pnand %p2895_p5, %p2894_p3 }
 0x5ee   : > { %2333 = dma.done.wait (!%p2082_p9), %s1783_s9, 128  }
 0x5ef   : > { %2335 = vsyncadd (!%p2082_p9), %s1783_s9, 4294967168  ;;  %s22_s23 = sadd.s32 1, %s2358_s23   ;;  %s2896_s18 = smov %s2342_s19 }
 0x5f0   : > { %p19_p11 = scmp.ge.s32.totalorder %s22_s23, 4   ;;  %s2897_s19 = smov %s2346_s20 }
 0x5f1   : > { %s2898_s20 = smov %s2553_s6  ;;  %s2899_s21 = smov %s2354_s22 }
 0x5f2   : > { %s2900_s22 = smov %s2902_s12  ;;  %21 = sbr.rel (!%p19_p11) target bundleno = 7 (0x7), region = 127 }
 0x5f9   :  { %1788 = vsyncpa [#allocation9], 1 }
 0x5fa   :  { %1790 = vsyncpa [#allocation9 + $0x1], 1 }
 0x5fb   :  { %1791 = vsyncpa [#allocation12], 1 }
 0x5fc   :  { %1792 = vsyncpa [#allocation10], 1 }
 0x5fd   :  { %1794 = vsyncpa [#allocation10 + $0x1], 1 }

</bundles_post_ra>
